<compile_context>
chip_gen: v6e
topology: v6e:2x2x1
jax: 0.10.0
libtpu: 0.0.40
codegen_flags: <defaults>
</compile_context>

<pallas_src>
import functools

import jax
import jax.numpy as jnp
from jax import lax
from jax.experimental import pallas as pl
from jax.experimental.pallas import tpu as pltpu


def _round_up(x, m):
    return ((x + m - 1) // m) * m


# ---------------------------------------------------------------------------
# Fused kernel: [2x2 max-pool] -> conv3x3+ReLU -> conv3x3+ReLU, per B-image
# batch block.
# ---------------------------------------------------------------------------
def _encoder_fused_kernel(x_ref, w1_ref, b1_ref, w2_ref, b2_ref, o_ref,
                          xpad1_ref, xpad2_ref, *,
                          B, Hp, Wp, Cin, Cout_pad, Cin_pad, if_pool):
    # Zero the padded scratches ONCE.  Only the 1-pixel halo / padded lanes /
    # padded W columns need zeros; the interior [1:Hp+1, 1:Wp+1, :C] is fully
    # rewritten every grid step, so no stale data can leak between steps.
    # (Grid axis is "arbitrary" => sequential, so step 0 always runs first.)
    @pl.when(pl.program_id(0) == 0)
    def _():
        xpad1_ref[...] = jnp.zeros_like(xpad1_ref)
        xpad2_ref[...] = jnp.zeros_like(xpad2_ref)

    # ---- 1. (optional) 2x2 max pooling, entirely in VMEM ------------------
    if if_pool:
        x = x_ref[...]                                # (B, Hp, 2, Wp, 2*Cin)
        a = x[:, :, 0, :, :Cin]                       # x[2h  , 2w  , :]
        b = x[:, :, 0, :, Cin:]                       # x[2h  , 2w+1, :]
        c = x[:, :, 1, :, :Cin]                       # x[2h+1, 2w  , :]
        d = x[:, :, 1, :, Cin:]                       # x[2h+1, 2w+1, :]
        act = jnp.maximum(jnp.maximum(a, b), jnp.maximum(c, d))
    else:
        act = x_ref[...]                              # (B, Hp, Wp, Cin)

    M = B * Hp * Wp                                   # matmul rows (MXU M dim)

    # ---- 2./3. 3x3 conv (pad=1) + ReLU: 9 accumulated shifted matmuls -----
    def conv3x3_relu(y, xpad_ref, w_ref, b_ref, C, Cpad):
        # Interior write covers exactly [1:Hp+1, 1:Wp+1, :C] every iteration
        # (invariant required by the zero-once halo).
        xpad_ref[:, 1:Hp + 1, 1:Wp + 1, :C] = y.astype(jnp.float32)
        acc = jnp.zeros((M, Cout_pad), jnp.float32)
        for dy in range(3):
            for dx in range(3):
                k = dy * 3 + dx
                patch = xpad_ref[:, dy:dy + Hp, dx:dx + Wp, :].reshape(M, Cpad)
                acc = acc + jnp.dot(patch,
                                    w_ref[k * Cpad:(k + 1) * Cpad, :],
                                    preferred_element_type=jnp.float32)
        return jnp.maximum(acc + b_ref[...], 0.0)     # (M, Cout_pad), f32

    y1 = conv3x3_relu(act, xpad1_ref, w1_ref, b1_ref, Cin, Cin_pad)
    # y1's padded channels are exactly 0 (zero weight cols + zero bias pad),
    # so conv2 sees a correctly zero-padded Cout_pad-channel input.
    y2 = conv3x3_relu(y1.reshape(B, Hp, Wp, Cout_pad), xpad2_ref,
                      w2_ref, b2_ref, Cout_pad, Cout_pad)

    o_ref[...] = y2.reshape(B, Hp, Wp, Cout_pad).astype(o_ref.dtype)


def _pick_batch_block(N, Hp, Wp, Cin_pad, Cout_pad):
    """Largest divisor B of N that keeps the MXU M dim well-filled without
    blowing up the per-step scratch."""
    best = 1
    wpad = _round_up(Wp + 2, 8)
    for B in range(1, N + 1):
        if N % B:
            continue
        rows_ok = B * Hp * Wp <= max(512, Hp * Wp)
        scratch_bytes = B * (Hp + 2) * wpad * (Cin_pad + Cout_pad) * 4
        if rows_ok and scratch_bytes <= (8 << 20):
            best = B
    return best


# ---------------------------------------------------------------------------
# Encoder forward (single fused pallas_call)
# ---------------------------------------------------------------------------
def encoder_forward(x_nhwc, params, if_pool=True):
    """x_nhwc: (N, H, W, Cin); params: w1 (3,3,Cin,Cout) HWIO, b1 (Cout,),
    w2 (3,3,Cout,Cout), b2 (Cout,)."""
    N, H, W, Cin = x_nhwc.shape
    Cout = params["w1"].shape[-1]
    Cin_pad = _round_up(Cin, 128)
    Cout_pad = _round_up(Cout, 128)

    if if_pool:
        Hp, Wp = H // 2, W // 2                       # PyTorch floor semantics
        # crop odd remainder (no-op for even H, W), then a contiguous reshape
        # so the 2x2 window parity lands in (axis=2, lane-halves).
        x_in = x_nhwc[:, :2 * Hp, :2 * Wp, :].reshape(N, Hp, 2, Wp, 2 * Cin)
    else:
        Hp, Wp = H, W
        x_in = x_nhwc

    B = _pick_batch_block(N, Hp, Wp, Cin_pad, Cout_pad)
    Wpad = _round_up(Wp + 2, 8)                       # sublane-aligned scratch

    if if_pool:
        in_spec = pl.BlockSpec((B, Hp, 2, Wp, 2 * Cin),
                               lambda n: (n, 0, 0, 0, 0))
    else:
        in_spec = pl.BlockSpec((B, Hp, Wp, Cin), lambda n: (n, 0, 0, 0))

    # Weights: pad channels to lane multiples, then reshape to per-tap row
    # blocks (9*Cpad, Cout_pad).  Padded rows/cols are zero -> padded lanes of
    # the activations contribute nothing.
    w1p = jnp.pad(params["w1"], ((0, 0), (0, 0), (0, Cin_pad - Cin),
                                 (0, Cout_pad - Cout))
                  ).reshape(9 * Cin_pad, Cout_pad)
    w2p = jnp.pad(params["w2"], ((0, 0), (0, 0), (0, Cout_pad - Cout),
                                 (0, Cout_pad - Cout))
                  ).reshape(9 * Cout_pad, Cout_pad)
    b1p = jnp.pad(params["b1"], (0, Cout_pad - Cout)).reshape(1, Cout_pad)
    b2p = jnp.pad(params["b2"], (0, Cout_pad - Cout)).reshape(1, Cout_pad)

    kern = functools.partial(_encoder_fused_kernel,
                             B=B, Hp=Hp, Wp=Wp, Cin=Cin,
                             Cout_pad=Cout_pad, Cin_pad=Cin_pad,
                             if_pool=if_pool)

    itemsize = x_nhwc.dtype.itemsize
    flops = 2 * N * Hp * Wp * 9 * (Cin_pad * Cout_pad + Cout_pad * Cout_pad)
    bytes_accessed = (x_in.size * itemsize
                      + (w1p.size + w2p.size + b1p.size + b2p.size) * 4
                      + N * Hp * Wp * Cout_pad * itemsize)

    # VMEM budget: double-buffered input/weights/output + scratches + working
    # set for the shifted-matmul temporaries; generous headroom, v7x-safe cap.
    in_block = B * (Hp * 2 * Wp * 2 * Cin if if_pool else Hp * Wp * Cin) * itemsize
    w_bytes = (w1p.size + w2p.size + b1p.size + b2p.size) * 4
    out_block = B * Hp * Wp * Cout_pad * itemsize
    scratch_bytes = B * (Hp + 2) * Wpad * (Cin_pad + Cout_pad) * 4
    work_bytes = 4 * B * Hp * Wp * max(Cin_pad, Cout_pad) * 4
    est = 2 * (in_block + w_bytes + out_block) + scratch_bytes + work_bytes
    vmem_limit = int(min(max(2 * est, 32 << 20), 64 << 20))

    out = pl.pallas_call(
        kern,
        out_shape=jax.ShapeDtypeStruct((N, Hp, Wp, Cout_pad), x_nhwc.dtype),
        grid=(N // B,),
        in_specs=[
            in_spec,
            pl.BlockSpec((9 * Cin_pad, Cout_pad), lambda n: (0, 0)),
            pl.BlockSpec((1, Cout_pad), lambda n: (0, 0)),
            pl.BlockSpec((9 * Cout_pad, Cout_pad), lambda n: (0, 0)),
            pl.BlockSpec((1, Cout_pad), lambda n: (0, 0)),
        ],
        out_specs=pl.BlockSpec((B, Hp, Wp, Cout_pad), lambda n: (n, 0, 0, 0)),
        scratch_shapes=[
            pltpu.VMEM((B, Hp + 2, Wpad, Cin_pad), jnp.float32),   # conv1 pad
            pltpu.VMEM((B, Hp + 2, Wpad, Cout_pad), jnp.float32),  # conv2 pad
        ],
        compiler_params=pltpu.CompilerParams(
            # "arbitrary": sequential grid => the zero-once scratch init at
            # program_id==0 is valid on every core.  (Measured ~no cost vs
            # "parallel" on 1-TC chips; see TODO for the v7x 2-TC row tiling.)
            dimension_semantics=("arbitrary",),
            vmem_limit_bytes=vmem_limit),
        cost_estimate=pl.CostEstimate(flops=flops, transcendentals=0,
                                      bytes_accessed=bytes_accessed),
    )(x_in, w1p, b1p, w2p, b2p)

    return out[..., :Cout]                            # drop padded channels


def init_params(key, in_channels, out_channels):
    k1, k2, k3, k4 = jax.random.split(key, 4)
    scale1 = 1.0 / jnp.sqrt(in_channels * 9.0)
    scale2 = 1.0 / jnp.sqrt(out_channels * 9.0)
    return {
        "w1": (jax.random.normal(k1, (3, 3, in_channels, out_channels),
                                 jnp.float32) * scale1),
        "b1": (jax.random.normal(k2, (out_channels,), jnp.float32) * scale1),
        "w2": (jax.random.normal(k3, (3, 3, out_channels, out_channels),
                                 jnp.float32) * scale2),
        "b2": (jax.random.normal(k4, (out_channels,), jnp.float32) * scale2),
    }


# Pure-JAX reference for correctness checking.
def reference_encoder(x_nhwc, params, if_pool=True):
    x = x_nhwc
    if if_pool:
        x = lax.reduce_window(x, -jnp.inf, lax.max,
                              (1, 2, 2, 1), (1, 2, 2, 1), "VALID")

    def conv(y, w, b):
        z = lax.conv_general_dilated(
            y, w, (1, 1), "SAME",
            dimension_numbers=("NHWC", "HWIO", "NHWC"))
        return jnp.maximum(z + b, 0.0)

    x = conv(x, params["w1"], params["b1"])
    x = conv(x, params["w2"], params["b2"])
    return x


if __name__ == "__main__":
    key = jax.random.PRNGKey(0)
    kx, kp = jax.random.split(key)

    N, Cin, H, W = 2, 4, 16, 16
    Cout = 8

    # PyTorch-style NCHW input -> NHWC for the kernel.
    x_nchw = jax.random.normal(kx, (N, Cin, H, W), jnp.float32)
    x_nhwc = jnp.transpose(x_nchw, (0, 2, 3, 1))

    params = init_params(kp, Cin, Cout)

    # if_pool=True path
    out = encoder_forward(x_nhwc, params, if_pool=True)
    out = jax.block_until_ready(out)
    ref = reference_encoder(x_nhwc, params, if_pool=True)
    assert out.shape == (N, H // 2, W // 2, Cout), out.shape
    assert jnp.allclose(out, ref, atol=1e-4, rtol=1e-4), (
        float(jnp.max(jnp.abs(out - ref))))

    # if_pool=False path
    out2 = encoder_forward(x_nhwc, params, if_pool=False)
    out2 = jax.block_until_ready(out2)
    ref2 = reference_encoder(x_nhwc, params, if_pool=False)
    assert out2.shape == (N, H, W, Cout), out2.shape
    assert jnp.allclose(out2, ref2, atol=1e-4, rtol=1e-4), (
        float(jnp.max(jnp.abs(out2 - ref2))))

    print("KERNEL_OK")
</pallas_src>

<mosaic_0001>
module attributes {stable_mosaic.version = 11 : i64} {
  func.func @_encoder_fused_kernel(%arg0: i32, %arg1: memref<2x8x2x8x8xf32, #tpu.memory_space<vmem>>, %arg2: memref<1152x128xf32, #tpu.memory_space<vmem>>, %arg3: memref<1x128xf32, #tpu.memory_space<vmem>>, %arg4: memref<1152x128xf32, #tpu.memory_space<vmem>>, %arg5: memref<1x128xf32, #tpu.memory_space<vmem>>, %arg6: memref<2x8x8x128xf32, #tpu.memory_space<vmem>>, %arg7: memref<2x10x16x128xf32, #tpu.memory_space<vmem>>, %arg8: memref<2x10x16x128xf32, #tpu.memory_space<vmem>>) attributes {dimension_semantics = [#tpu.dimension_semantics<arbitrary>], iteration_bounds = array<i64: 1>, scalar_prefetch = 0 : i64, scratch_operands = 2 : i64, tpu.core_type = #tpu.core_type<tc>, window_params = [{transform_indices = @transform_0, window_bounds = array<i64: 2, 8, 2, 8, 8>}, {pipeline_mode = #tpu.pipeline_mode<synchronous>, transform_indices = @transform_1, window_bounds = array<i64: 1152, 128>}, {pipeline_mode = #tpu.pipeline_mode<synchronous>, transform_indices = @transform_2, window_bounds = array<i64: 1, 128>}, {pipeline_mode = #tpu.pipeline_mode<synchronous>, transform_indices = @transform_3, window_bounds = array<i64: 1152, 128>}, {pipeline_mode = #tpu.pipeline_mode<synchronous>, transform_indices = @transform_4, window_bounds = array<i64: 1, 128>}, {transform_indices = @transform_5, window_bounds = array<i64: 2, 8, 8, 128>}]} {
    %c0_i32 = arith.constant 0 : i32
    %0 = arith.cmpi eq, %arg0, %c0_i32 : i32
    %1 = arith.extui %0 : i1 to i32
    %c0_i32_0 = arith.constant 0 : i32
    %2 = arith.cmpi ne, %1, %c0_i32_0 : i32
    scf.if %2 {
      %cst_140 = arith.constant 0.000000e+00 : f32
      %122 = vector.broadcast %cst_140 : f32 to vector<2x10x16x128xf32>
      %c0_141 = arith.constant 0 : index
      %c0_142 = arith.constant 0 : index
      %c0_143 = arith.constant 0 : index
      %c0_144 = arith.constant 0 : index
      %123 = vector.load %arg7[%c0_141, %c0_142, %c0_143, %c0_144] : memref<2x10x16x128xf32, #tpu.memory_space<vmem>>, vector<2x10x16x128xf32>
      tpu.vector_store %arg7[%c0_141, %c0_142, %c0_143, %c0_144], %122 {strides = array<i32>} : memref<2x10x16x128xf32, #tpu.memory_space<vmem>>, vector<2x10x16x128xf32>,
      %cst_145 = arith.constant 0.000000e+00 : f32
      %124 = vector.broadcast %cst_145 : f32 to vector<2x10x16x128xf32>
      %c0_146 = arith.constant 0 : index
      %c0_147 = arith.constant 0 : index
      %c0_148 = arith.constant 0 : index
      %c0_149 = arith.constant 0 : index
      %125 = vector.load %arg8[%c0_146, %c0_147, %c0_148, %c0_149] : memref<2x10x16x128xf32, #tpu.memory_space<vmem>>, vector<2x10x16x128xf32>
      tpu.vector_store %arg8[%c0_146, %c0_147, %c0_148, %c0_149], %124 {strides = array<i32>} : memref<2x10x16x128xf32, #tpu.memory_space<vmem>>, vector<2x10x16x128xf32>,
    } else {
    }
    %c0 = arith.constant 0 : index
    %c0_1 = arith.constant 0 : index
    %c0_2 = arith.constant 0 : index
    %c0_3 = arith.constant 0 : index
    %c0_4 = arith.constant 0 : index
    %3 = vector.load %arg1[%c0, %c0_1, %c0_2, %c0_3, %c0_4] : memref<2x8x2x8x8xf32, #tpu.memory_space<vmem>>, vector<2x8x2x8x8xf32>
    %4 = vector.extract_strided_slice %3 {offsets = [0, 0, 0, 0, 0], sizes = [2, 8, 1, 8, 4], strides = [1, 1, 1, 1, 1]} : vector<2x8x2x8x8xf32> to vector<2x8x1x8x4xf32>
    %5 = vector.shape_cast %4 : vector<2x8x1x8x4xf32> to vector<2x8x8x4xf32>
    %6 = vector.extract_strided_slice %3 {offsets = [0, 0, 0, 0, 4], sizes = [2, 8, 1, 8, 4], strides = [1, 1, 1, 1, 1]} : vector<2x8x2x8x8xf32> to vector<2x8x1x8x4xf32>
    %7 = vector.shape_cast %6 : vector<2x8x1x8x4xf32> to vector<2x8x8x4xf32>
    %8 = vector.extract_strided_slice %3 {offsets = [0, 0, 1, 0, 0], sizes = [2, 8, 1, 8, 4], strides = [1, 1, 1, 1, 1]} : vector<2x8x2x8x8xf32> to vector<2x8x1x8x4xf32>
    %9 = vector.shape_cast %8 : vector<2x8x1x8x4xf32> to vector<2x8x8x4xf32>
    %10 = vector.extract_strided_slice %3 {offsets = [0, 0, 1, 0, 4], sizes = [2, 8, 1, 8, 4], strides = [1, 1, 1, 1, 1]} : vector<2x8x2x8x8xf32> to vector<2x8x1x8x4xf32>
    %11 = vector.shape_cast %10 : vector<2x8x1x8x4xf32> to vector<2x8x8x4xf32>
    %12 = arith.maximumf %5, %7 : vector<2x8x8x4xf32>
    %13 = arith.maximumf %9, %11 : vector<2x8x8x4xf32>
    %14 = arith.maximumf %12, %13 : vector<2x8x8x4xf32>
    %c0_5 = arith.constant 0 : index
    %c1 = arith.constant 1 : index
    %c1_6 = arith.constant 1 : index
    %c0_7 = arith.constant 0 : index
    %15 = vector.load %arg7[%c0_5, %c1, %c1_6, %c0_7] : memref<2x10x16x128xf32, #tpu.memory_space<vmem>>, vector<2x8x8x4xf32>
    tpu.vector_store %arg7[%c0_5, %c1, %c1_6, %c0_7], %14 {strides = array<i32>} : memref<2x10x16x128xf32, #tpu.memory_space<vmem>>, vector<2x8x8x4xf32>,
    %cst = arith.constant 0.000000e+00 : f32
    %16 = vector.broadcast %cst : f32 to vector<128x128xf32>
    %c0_8 = arith.constant 0 : index
    %c0_9 = arith.constant 0 : index
    %c0_10 = arith.constant 0 : index
    %c0_11 = arith.constant 0 : index
    %17 = vector.load %arg7[%c0_8, %c0_9, %c0_10, %c0_11] : memref<2x10x16x128xf32, #tpu.memory_space<vmem>>, vector<2x8x8x128xf32>
    %18 = vector.shape_cast %17 : vector<2x8x8x128xf32> to vector<128x128xf32>
    %c0_12 = arith.constant 0 : index
    %c0_13 = arith.constant 0 : index
    %19 = vector.load %arg2[%c0_12, %c0_13] : memref<1152x128xf32, #tpu.memory_space<vmem>>, vector<128x128xf32>
    %cst_14 = arith.constant dense<0.000000e+00> : vector<128x128xf32>
    %20 = tpu.matmul %18, %19, %cst_14 {dimension_numbers = #tpu.dot_dimension_numbers<[1], [0], [0], [1], [0, 0, 1, 1], [], []>} : vector<128x128xf32>, vector<128x128xf32>, vector<128x128xf32> -> vector<128x128xf32>
    %21 = arith.addf %16, %20 : vector<128x128xf32>
    %c0_15 = arith.constant 0 : index
    %c0_16 = arith.constant 0 : index
    %c1_17 = arith.constant 1 : index
    %c0_18 = arith.constant 0 : index
    %22 = vector.load %arg7[%c0_15, %c0_16, %c1_17, %c0_18] : memref<2x10x16x128xf32, #tpu.memory_space<vmem>>, vector<2x8x8x128xf32>
    %23 = vector.shape_cast %22 : vector<2x8x8x128xf32> to vector<128x128xf32>
    %c128 = arith.constant 128 : index
    %c0_19 = arith.constant 0 : index
    %24 = vector.load %arg2[%c128, %c0_19] : memref<1152x128xf32, #tpu.memory_space<vmem>>, vector<128x128xf32>
    %cst_20 = arith.constant dense<0.000000e+00> : vector<128x128xf32>
    %25 = tpu.matmul %23, %24, %cst_20 {dimension_numbers = #tpu.dot_dimension_numbers<[1], [0], [0], [1], [0, 0, 1, 1], [], []>} : vector<128x128xf32>, vector<128x128xf32>, vector<128x128xf32> -> vector<128x128xf32>
    %26 = arith.addf %21, %25 : vector<128x128xf32>
    %c0_21 = arith.constant 0 : index
    %c0_22 = arith.constant 0 : index
    %c2 = arith.constant 2 : index
    %c0_23 = arith.constant 0 : index
    %27 = vector.load %arg7[%c0_21, %c0_22, %c2, %c0_23] : memref<2x10x16x128xf32, #tpu.memory_space<vmem>>, vector<2x8x8x128xf32>
    %28 = vector.shape_cast %27 : vector<2x8x8x128xf32> to vector<128x128xf32>
    %c256 = arith.constant 256 : index
    %c0_24 = arith.constant 0 : index
    %29 = vector.load %arg2[%c256, %c0_24] : memref<1152x128xf32, #tpu.memory_space<vmem>>, vector<128x128xf32>
    %cst_25 = arith.constant dense<0.000000e+00> : vector<128x128xf32>
    %30 = tpu.matmul %28, %29, %cst_25 {dimension_numbers = #tpu.dot_dimension_numbers<[1], [0], [0], [1], [0, 0, 1, 1], [], []>} : vector<128x128xf32>, vector<128x128xf32>, vector<128x128xf32> -> vector<128x128xf32>
    %31 = arith.addf %26, %30 : vector<128x128xf32>
    %c0_26 = arith.constant 0 : index
    %c1_27 = arith.constant 1 : index
    %c0_28 = arith.constant 0 : index
    %c0_29 = arith.constant 0 : index
    %32 = vector.load %arg7[%c0_26, %c1_27, %c0_28, %c0_29] : memref<2x10x16x128xf32, #tpu.memory_space<vmem>>, vector<2x8x8x128xf32>
    %33 = vector.shape_cast %32 : vector<2x8x8x128xf32> to vector<128x128xf32>
    %c384 = arith.constant 384 : index
    %c0_30 = arith.constant 0 : index
    %34 = vector.load %arg2[%c384, %c0_30] : memref<1152x128xf32, #tpu.memory_space<vmem>>, vector<128x128xf32>
    %cst_31 = arith.constant dense<0.000000e+00> : vector<128x128xf32>
    %35 = tpu.matmul %33, %34, %cst_31 {dimension_numbers = #tpu.dot_dimension_numbers<[1], [0], [0], [1], [0, 0, 1, 1], [], []>} : vector<128x128xf32>, vector<128x128xf32>, vector<128x128xf32> -> vector<128x128xf32>
    %36 = arith.addf %31, %35 : vector<128x128xf32>
    %c0_32 = arith.constant 0 : index
    %c1_33 = arith.constant 1 : index
    %c1_34 = arith.constant 1 : index
    %c0_35 = arith.constant 0 : index
    %37 = vector.load %arg7[%c0_32, %c1_33, %c1_34, %c0_35] : memref<2x10x16x128xf32, #tpu.memory_space<vmem>>, vector<2x8x8x128xf32>
    %38 = vector.shape_cast %37 : vector<2x8x8x128xf32> to vector<128x128xf32>
    %c512 = arith.constant 512 : index
    %c0_36 = arith.constant 0 : index
    %39 = vector.load %arg2[%c512, %c0_36] : memref<1152x128xf32, #tpu.memory_space<vmem>>, vector<128x128xf32>
    %cst_37 = arith.constant dense<0.000000e+00> : vector<128x128xf32>
    %40 = tpu.matmul %38, %39, %cst_37 {dimension_numbers = #tpu.dot_dimension_numbers<[1], [0], [0], [1], [0, 0, 1, 1], [], []>} : vector<128x128xf32>, vector<128x128xf32>, vector<128x128xf32> -> vector<128x128xf32>
    %41 = arith.addf %36, %40 : vector<128x128xf32>
    %c0_38 = arith.constant 0 : index
    %c1_39 = arith.constant 1 : index
    %c2_40 = arith.constant 2 : index
    %c0_41 = arith.constant 0 : index
    %42 = vector.load %arg7[%c0_38, %c1_39, %c2_40, %c0_41] : memref<2x10x16x128xf32, #tpu.memory_space<vmem>>, vector<2x8x8x128xf32>
    %43 = vector.shape_cast %42 : vector<2x8x8x128xf32> to vector<128x128xf32>
    %c640 = arith.constant 640 : index
    %c0_42 = arith.constant 0 : index
    %44 = vector.load %arg2[%c640, %c0_42] : memref<1152x128xf32, #tpu.memory_space<vmem>>, vector<128x128xf32>
    %cst_43 = arith.constant dense<0.000000e+00> : vector<128x128xf32>
    %45 = tpu.matmul %43, %44, %cst_43 {dimension_numbers = #tpu.dot_dimension_numbers<[1], [0], [0], [1], [0, 0, 1, 1], [], []>} : vector<128x128xf32>, vector<128x128xf32>, vector<128x128xf32> -> vector<128x128xf32>
    %46 = arith.addf %41, %45 : vector<128x128xf32>
    %c0_44 = arith.constant 0 : index
    %c2_45 = arith.constant 2 : index
    %c0_46 = arith.constant 0 : index
    %c0_47 = arith.constant 0 : index
    %47 = vector.load %arg7[%c0_44, %c2_45, %c0_46, %c0_47] : memref<2x10x16x128xf32, #tpu.memory_space<vmem>>, vector<2x8x8x128xf32>
    %48 = vector.shape_cast %47 : vector<2x8x8x128xf32> to vector<128x128xf32>
    %c768 = arith.constant 768 : index
    %c0_48 = arith.constant 0 : index
    %49 = vector.load %arg2[%c768, %c0_48] : memref<1152x128xf32, #tpu.memory_space<vmem>>, vector<128x128xf32>
    %cst_49 = arith.constant dense<0.000000e+00> : vector<128x128xf32>
    %50 = tpu.matmul %48, %49, %cst_49 {dimension_numbers = #tpu.dot_dimension_numbers<[1], [0], [0], [1], [0, 0, 1, 1], [], []>} : vector<128x128xf32>, vector<128x128xf32>, vector<128x128xf32> -> vector<128x128xf32>
    %51 = arith.addf %46, %50 : vector<128x128xf32>
    %c0_50 = arith.constant 0 : index
    %c2_51 = arith.constant 2 : index
    %c1_52 = arith.constant 1 : index
    %c0_53 = arith.constant 0 : index
    %52 = vector.load %arg7[%c0_50, %c2_51, %c1_52, %c0_53] : memref<2x10x16x128xf32, #tpu.memory_space<vmem>>, vector<2x8x8x128xf32>
    %53 = vector.shape_cast %52 : vector<2x8x8x128xf32> to vector<128x128xf32>
    %c896 = arith.constant 896 : index
    %c0_54 = arith.constant 0 : index
    %54 = vector.load %arg2[%c896, %c0_54] : memref<1152x128xf32, #tpu.memory_space<vmem>>, vector<128x128xf32>
    %cst_55 = arith.constant dense<0.000000e+00> : vector<128x128xf32>
    %55 = tpu.matmul %53, %54, %cst_55 {dimension_numbers = #tpu.dot_dimension_numbers<[1], [0], [0], [1], [0, 0, 1, 1], [], []>} : vector<128x128xf32>, vector<128x128xf32>, vector<128x128xf32> -> vector<128x128xf32>
    %56 = arith.addf %51, %55 : vector<128x128xf32>
    %c0_56 = arith.constant 0 : index
    %c2_57 = arith.constant 2 : index
    %c2_58 = arith.constant 2 : index
    %c0_59 = arith.constant 0 : index
    %57 = vector.load %arg7[%c0_56, %c2_57, %c2_58, %c0_59] : memref<2x10x16x128xf32, #tpu.memory_space<vmem>>, vector<2x8x8x128xf32>
    %58 = vector.shape_cast %57 : vector<2x8x8x128xf32> to vector<128x128xf32>
    %c1024 = arith.constant 1024 : index
    %c0_60 = arith.constant 0 : index
    %59 = vector.load %arg2[%c1024, %c0_60] : memref<1152x128xf32, #tpu.memory_space<vmem>>, vector<128x128xf32>
    %cst_61 = arith.constant dense<0.000000e+00> : vector<128x128xf32>
    %60 = tpu.matmul %58, %59, %cst_61 {dimension_numbers = #tpu.dot_dimension_numbers<[1], [0], [0], [1], [0, 0, 1, 1], [], []>} : vector<128x128xf32>, vector<128x128xf32>, vector<128x128xf32> -> vector<128x128xf32>
    %61 = arith.addf %56, %60 : vector<128x128xf32>
    %c0_62 = arith.constant 0 : index
    %c0_63 = arith.constant 0 : index
    %62 = vector.load %arg3[%c0_62, %c0_63] : memref<1x128xf32, #tpu.memory_space<vmem>>, vector<1x128xf32>
    %63 = vector.broadcast %62 : vector<1x128xf32> to vector<128x128xf32>
    %64 = arith.addf %61, %63 : vector<128x128xf32>
    %cst_64 = arith.constant 0.000000e+00 : f32
    %65 = vector.broadcast %cst_64 : f32 to vector<128x128xf32>
    %66 = arith.maximumf %64, %65 : vector<128x128xf32>
    %67 = vector.shape_cast %66 : vector<128x128xf32> to vector<2x8x8x128xf32>
    %c0_65 = arith.constant 0 : index
    %c1_66 = arith.constant 1 : index
    %c1_67 = arith.constant 1 : index
    %c0_68 = arith.constant 0 : index
    %68 = vector.load %arg8[%c0_65, %c1_66, %c1_67, %c0_68] : memref<2x10x16x128xf32, #tpu.memory_space<vmem>>, vector<2x8x8x128xf32>
    tpu.vector_store %arg8[%c0_65, %c1_66, %c1_67, %c0_68], %67 {strides = array<i32>} : memref<2x10x16x128xf32, #tpu.memory_space<vmem>>, vector<2x8x8x128xf32>,
    %cst_69 = arith.constant 0.000000e+00 : f32
    %69 = vector.broadcast %cst_69 : f32 to vector<128x128xf32>
    %c0_70 = arith.constant 0 : index
    %c0_71 = arith.constant 0 : index
    %c0_72 = arith.constant 0 : index
    %c0_73 = arith.constant 0 : index
    %70 = vector.load %arg8[%c0_70, %c0_71, %c0_72, %c0_73] : memref<2x10x16x128xf32, #tpu.memory_space<vmem>>, vector<2x8x8x128xf32>
    %71 = vector.shape_cast %70 : vector<2x8x8x128xf32> to vector<128x128xf32>
    %c0_74 = arith.constant 0 : index
    %c0_75 = arith.constant 0 : index
    %72 = vector.load %arg4[%c0_74, %c0_75] : memref<1152x128xf32, #tpu.memory_space<vmem>>, vector<128x128xf32>
    %cst_76 = arith.constant dense<0.000000e+00> : vector<128x128xf32>
    %73 = tpu.matmul %71, %72, %cst_76 {dimension_numbers = #tpu.dot_dimension_numbers<[1], [0], [0], [1], [0, 0, 1, 1], [], []>} : vector<128x128xf32>, vector<128x128xf32>, vector<128x128xf32> -> vector<128x128xf32>
    %74 = arith.addf %69, %73 : vector<128x128xf32>
    %c0_77 = arith.constant 0 : index
    %c0_78 = arith.constant 0 : index
    %c1_79 = arith.constant 1 : index
    %c0_80 = arith.constant 0 : index
    %75 = vector.load %arg8[%c0_77, %c0_78, %c1_79, %c0_80] : memref<2x10x16x128xf32, #tpu.memory_space<vmem>>, vector<2x8x8x128xf32>
    %76 = vector.shape_cast %75 : vector<2x8x8x128xf32> to vector<128x128xf32>
    %c128_81 = arith.constant 128 : index
    %c0_82 = arith.constant 0 : index
    %77 = vector.load %arg4[%c128_81, %c0_82] : memref<1152x128xf32, #tpu.memory_space<vmem>>, vector<128x128xf32>
    %cst_83 = arith.constant dense<0.000000e+00> : vector<128x128xf32>
    %78 = tpu.matmul %76, %77, %cst_83 {dimension_numbers = #tpu.dot_dimension_numbers<[1], [0], [0], [1], [0, 0, 1, 1], [], []>} : vector<128x128xf32>, vector<128x128xf32>, vector<128x128xf32> -> vector<128x128xf32>
    %79 = arith.addf %74, %78 : vector<128x128xf32>
    %c0_84 = arith.constant 0 : index
    %c0_85 = arith.constant 0 : index
    %c2_86 = arith.constant 2 : index
    %c0_87 = arith.constant 0 : index
    %80 = vector.load %arg8[%c0_84, %c0_85, %c2_86, %c0_87] : memref<2x10x16x128xf32, #tpu.memory_space<vmem>>, vector<2x8x8x128xf32>
    %81 = vector.shape_cast %80 : vector<2x8x8x128xf32> to vector<128x128xf32>
    %c256_88 = arith.constant 256 : index
    %c0_89 = arith.constant 0 : index
    %82 = vector.load %arg4[%c256_88, %c0_89] : memref<1152x128xf32, #tpu.memory_space<vmem>>, vector<128x128xf32>
    %cst_90 = arith.constant dense<0.000000e+00> : vector<128x128xf32>
    %83 = tpu.matmul %81, %82, %cst_90 {dimension_numbers = #tpu.dot_dimension_numbers<[1], [0], [0], [1], [0, 0, 1, 1], [], []>} : vector<128x128xf32>, vector<128x128xf32>, vector<128x128xf32> -> vector<128x128xf32>
    %84 = arith.addf %79, %83 : vector<128x128xf32>
    %c0_91 = arith.constant 0 : index
    %c1_92 = arith.constant 1 : index
    %c0_93 = arith.constant 0 : index
    %c0_94 = arith.constant 0 : index
    %85 = vector.load %arg8[%c0_91, %c1_92, %c0_93, %c0_94] : memref<2x10x16x128xf32, #tpu.memory_space<vmem>>, vector<2x8x8x128xf32>
    %86 = vector.shape_cast %85 : vector<2x8x8x128xf32> to vector<128x128xf32>
    %c384_95 = arith.constant 384 : index
    %c0_96 = arith.constant 0 : index
    %87 = vector.load %arg4[%c384_95, %c0_96] : memref<1152x128xf32, #tpu.memory_space<vmem>>, vector<128x128xf32>
    %cst_97 = arith.constant dense<0.000000e+00> : vector<128x128xf32>
    %88 = tpu.matmul %86, %87, %cst_97 {dimension_numbers = #tpu.dot_dimension_numbers<[1], [0], [0], [1], [0, 0, 1, 1], [], []>} : vector<128x128xf32>, vector<128x128xf32>, vector<128x128xf32> -> vector<128x128xf32>
    %89 = arith.addf %84, %88 : vector<128x128xf32>
    %c0_98 = arith.constant 0 : index
    %c1_99 = arith.constant 1 : index
    %c1_100 = arith.constant 1 : index
    %c0_101 = arith.constant 0 : index
    %90 = vector.load %arg8[%c0_98, %c1_99, %c1_100, %c0_101] : memref<2x10x16x128xf32, #tpu.memory_space<vmem>>, vector<2x8x8x128xf32>
    %91 = vector.shape_cast %90 : vector<2x8x8x128xf32> to vector<128x128xf32>
    %c512_102 = arith.constant 512 : index
    %c0_103 = arith.constant 0 : index
    %92 = vector.load %arg4[%c512_102, %c0_103] : memref<1152x128xf32, #tpu.memory_space<vmem>>, vector<128x128xf32>
    %cst_104 = arith.constant dense<0.000000e+00> : vector<128x128xf32>
    %93 = tpu.matmul %91, %92, %cst_104 {dimension_numbers = #tpu.dot_dimension_numbers<[1], [0], [0], [1], [0, 0, 1, 1], [], []>} : vector<128x128xf32>, vector<128x128xf32>, vector<128x128xf32> -> vector<128x128xf32>
    %94 = arith.addf %89, %93 : vector<128x128xf32>
    %c0_105 = arith.constant 0 : index
    %c1_106 = arith.constant 1 : index
    %c2_107 = arith.constant 2 : index
    %c0_108 = arith.constant 0 : index
    %95 = vector.load %arg8[%c0_105, %c1_106, %c2_107, %c0_108] : memref<2x10x16x128xf32, #tpu.memory_space<vmem>>, vector<2x8x8x128xf32>
    %96 = vector.shape_cast %95 : vector<2x8x8x128xf32> to vector<128x128xf32>
    %c640_109 = arith.constant 640 : index
    %c0_110 = arith.constant 0 : index
    %97 = vector.load %arg4[%c640_109, %c0_110] : memref<1152x128xf32, #tpu.memory_space<vmem>>, vector<128x128xf32>
    %cst_111 = arith.constant dense<0.000000e+00> : vector<128x128xf32>
    %98 = tpu.matmul %96, %97, %cst_111 {dimension_numbers = #tpu.dot_dimension_numbers<[1], [0], [0], [1], [0, 0, 1, 1], [], []>} : vector<128x128xf32>, vector<128x128xf32>, vector<128x128xf32> -> vector<128x128xf32>
    %99 = arith.addf %94, %98 : vector<128x128xf32>
    %c0_112 = arith.constant 0 : index
    %c2_113 = arith.constant 2 : index
    %c0_114 = arith.constant 0 : index
    %c0_115 = arith.constant 0 : index
    %100 = vector.load %arg8[%c0_112, %c2_113, %c0_114, %c0_115] : memref<2x10x16x128xf32, #tpu.memory_space<vmem>>, vector<2x8x8x128xf32>
    %101 = vector.shape_cast %100 : vector<2x8x8x128xf32> to vector<128x128xf32>
    %c768_116 = arith.constant 768 : index
    %c0_117 = arith.constant 0 : index
    %102 = vector.load %arg4[%c768_116, %c0_117] : memref<1152x128xf32, #tpu.memory_space<vmem>>, vector<128x128xf32>
    %cst_118 = arith.constant dense<0.000000e+00> : vector<128x128xf32>
    %103 = tpu.matmul %101, %102, %cst_118 {dimension_numbers = #tpu.dot_dimension_numbers<[1], [0], [0], [1], [0, 0, 1, 1], [], []>} : vector<128x128xf32>, vector<128x128xf32>, vector<128x128xf32> -> vector<128x128xf32>
    %104 = arith.addf %99, %103 : vector<128x128xf32>
    %c0_119 = arith.constant 0 : index
    %c2_120 = arith.constant 2 : index
    %c1_121 = arith.constant 1 : index
    %c0_122 = arith.constant 0 : index
    %105 = vector.load %arg8[%c0_119, %c2_120, %c1_121, %c0_122] : memref<2x10x16x128xf32, #tpu.memory_space<vmem>>, vector<2x8x8x128xf32>
    %106 = vector.shape_cast %105 : vector<2x8x8x128xf32> to vector<128x128xf32>
    %c896_123 = arith.constant 896 : index
    %c0_124 = arith.constant 0 : index
    %107 = vector.load %arg4[%c896_123, %c0_124] : memref<1152x128xf32, #tpu.memory_space<vmem>>, vector<128x128xf32>
    %cst_125 = arith.constant dense<0.000000e+00> : vector<128x128xf32>
    %108 = tpu.matmul %106, %107, %cst_125 {dimension_numbers = #tpu.dot_dimension_numbers<[1], [0], [0], [1], [0, 0, 1, 1], [], []>} : vector<128x128xf32>, vector<128x128xf32>, vector<128x128xf32> -> vector<128x128xf32>
    %109 = arith.addf %104, %108 : vector<128x128xf32>
    %c0_126 = arith.constant 0 : index
    %c2_127 = arith.constant 2 : index
    %c2_128 = arith.constant 2 : index
    %c0_129 = arith.constant 0 : index
    %110 = vector.load %arg8[%c0_126, %c2_127, %c2_128, %c0_129] : memref<2x10x16x128xf32, #tpu.memory_space<vmem>>, vector<2x8x8x128xf32>
    %111 = vector.shape_cast %110 : vector<2x8x8x128xf32> to vector<128x128xf32>
    %c1024_130 = arith.constant 1024 : index
    %c0_131 = arith.constant 0 : index
    %112 = vector.load %arg4[%c1024_130, %c0_131] : memref<1152x128xf32, #tpu.memory_space<vmem>>, vector<128x128xf32>
    %cst_132 = arith.constant dense<0.000000e+00> : vector<128x128xf32>
    %113 = tpu.matmul %111, %112, %cst_132 {dimension_numbers = #tpu.dot_dimension_numbers<[1], [0], [0], [1], [0, 0, 1, 1], [], []>} : vector<128x128xf32>, vector<128x128xf32>, vector<128x128xf32> -> vector<128x128xf32>
    %114 = arith.addf %109, %113 : vector<128x128xf32>
    %c0_133 = arith.constant 0 : index
    %c0_134 = arith.constant 0 : index
    %115 = vector.load %arg5[%c0_133, %c0_134] : memref<1x128xf32, #tpu.memory_space<vmem>>, vector<1x128xf32>
    %116 = vector.broadcast %115 : vector<1x128xf32> to vector<128x128xf32>
    %117 = arith.addf %114, %116 : vector<128x128xf32>
    %cst_135 = arith.constant 0.000000e+00 : f32
    %118 = vector.broadcast %cst_135 : f32 to vector<128x128xf32>
    %119 = arith.maximumf %117, %118 : vector<128x128xf32>
    %120 = vector.shape_cast %119 : vector<128x128xf32> to vector<2x8x8x128xf32>
    %c0_136 = arith.constant 0 : index
    %c0_137 = arith.constant 0 : index
    %c0_138 = arith.constant 0 : index
    %c0_139 = arith.constant 0 : index
    %121 = vector.load %arg6[%c0_136, %c0_137, %c0_138, %c0_139] : memref<2x8x8x128xf32, #tpu.memory_space<vmem>>, vector<2x8x8x128xf32>
    tpu.vector_store %arg6[%c0_136, %c0_137, %c0_138, %c0_139], %120 {strides = array<i32>} : memref<2x8x8x128xf32, #tpu.memory_space<vmem>>, vector<2x8x8x128xf32>,
    return
  }
  func.func @transform_0(%arg0: i32) -> (i32, i32, i32, i32, i32) {
    %c0_i32 = arith.constant 0 : i32
    %c0_i32_0 = arith.constant 0 : i32
    %c0_i32_1 = arith.constant 0 : i32
    %c0_i32_2 = arith.constant 0 : i32
    %c0_i32_3 = arith.constant 0 : i32
    return %arg0, %c0_i32, %c0_i32_0, %c0_i32_1, %c0_i32_2 : i32, i32, i32, i32, i32
  }
  func.func @transform_1(%arg0: i32) -> (i32, i32) {
    %c0_i32 = arith.constant 0 : i32
    %c0_i32_0 = arith.constant 0 : i32
    %c0_i32_1 = arith.constant 0 : i32
    return %c0_i32, %c0_i32_0 : i32, i32
  }
  func.func @transform_2(%arg0: i32) -> (i32, i32) {
    %c0_i32 = arith.constant 0 : i32
    %c0_i32_0 = arith.constant 0 : i32
    %c0_i32_1 = arith.constant 0 : i32
    return %c0_i32, %c0_i32_0 : i32, i32
  }
  func.func @transform_3(%arg0: i32) -> (i32, i32) {
    %c0_i32 = arith.constant 0 : i32
    %c0_i32_0 = arith.constant 0 : i32
    %c0_i32_1 = arith.constant 0 : i32
    return %c0_i32, %c0_i32_0 : i32, i32
  }
  func.func @transform_4(%arg0: i32) -> (i32, i32) {
    %c0_i32 = arith.constant 0 : i32
    %c0_i32_0 = arith.constant 0 : i32
    %c0_i32_1 = arith.constant 0 : i32
    return %c0_i32, %c0_i32_0 : i32, i32
  }
  func.func @transform_5(%arg0: i32) -> (i32, i32, i32, i32) {
    %c0_i32 = arith.constant 0 : i32
    %c0_i32_0 = arith.constant 0 : i32
    %c0_i32_1 = arith.constant 0 : i32
    %c0_i32_2 = arith.constant 0 : i32
    return %arg0, %c0_i32, %c0_i32_0, %c0_i32_1 : i32, i32, i32, i32
  }
}

</mosaic_0001>

<bundles_post_ra>
// kernel: tpu_custom_call.1
= control target key start
LH: loop header
LB: loop body
LE: loop exit
PB: predicated region body
PF: predicated region fallthrough
CT: control target
= control target key end

     0   :  { %10 = vsyncpa [#allocation5], 0  ;;  %s6977_s0 = inlined_call_operand.hbm [shape: f32[2,8,2,8,8], index: 0, kind: input, shape index: {}]   ;;  %s6978_s1 = inlined_call_operand.hbm [shape: f32[1152,128], index: 1, kind: input, shape index: {}]   ;;  %s6979_s2 = inlined_call_operand.vmem [shape: f32[1,128], index: 2, kind: input, shape index: {}]   ;;  %s6980_s3 = inlined_call_operand.hbm [shape: f32[1152,128], index: 3, kind: input, shape index: {}]   ;;  %s6981_s4 = inlined_call_operand.vmem [shape: f32[1,128], index: 4, kind: input, shape index: {}]   ;;  %s6982_s5 = inlined_call_operand.hbm [shape: f32[2,8,8,128], index: 5, kind: output, shape index: {}]  }
   0x1   :  { %11 = vsyncpa [#allocation8], 0 }
   0x2   :  { %12 = vsyncpa [#allocation6], 0  ;;  %s5595_s18 = smov [#allocation7]   ;;  %s5596_s20 = smov [#allocation4]  }
   0x3   :  { %s30_s19 = sshll.u32 %s5595_s18, 4  ;;  %s18_s21 = sshll.u32 %s5596_s20, 4  ;;  %s31_s19 = int_to_ptr.vmem [resolvable:$true] %s30_s19  ;;  %s19_s21 = int_to_ptr.vmem [resolvable:$true] %s18_s21 }
   0x4   :  { %s5517_s22 = scalar_lea.vmem %s31_s19, 18432  ;;  %p5522_p1 = scmp.lt.s32.totalorder %s31_s19, %s31_s19 }
   0x5   :  { %p5518_p0 = scmp.ne.s32.totalorder %s31_s19, %s5517_s22  ;;  %p5523_p2 = scmp.lt.s32.totalorder %s5517_s22, %s5517_s22 }
   0x7   :  { %p5524_p3 = por %p5523_p2, %p5522_p1 }
   0x9   :  { %p5525_p4 = pnand %p5524_p3, %p5518_p0 }
   0xb   :  { %5528 = shalt.err (!%p5525_p4)
}
   0xc   :  { %s5597_s23 = smov 128   ;;  %s5598_s24 = smov 8  }
   0xd   :  { %36 = dma.hbm_to_vmem [thread:$0]  %s6978_s1, 18432, %s31_s19, [#allocation8], %s5597_s23, %s5597_s23, %s5598_s24  }
   0xe   :  { %s5537_s27 = scalar_lea.vmem %s19_s21, 4096  ;;  %p5542_p6 = scmp.lt.s32.totalorder %s19_s21, %s19_s21 }
   0xf   :  { %p5538_p5 = scmp.ne.s32.totalorder %s19_s21, %s5537_s27  ;;  %p5543_p7 = scmp.lt.s32.totalorder %s5537_s27, %s5537_s27 }
  0x11   :  { %p5544_p8 = por %p5543_p7, %p5542_p6 }
  0x13   :  { %p5545_p9 = pnand %p5544_p8, %p5538_p5 }
  0x15   :  { %5548 = shalt.err (!%p5545_p9)
}
  0x16   :  { %24 = dma.hbm_to_vmem [thread:$0]  %s6977_s0, 4096, %s19_s21, [#allocation5], %s5597_s23, %s5597_s23, %s5598_s24  }
  0x17   :  { %s5599_s30 = smov [#allocation9]  }
  0x18   :  { %s44_s6 = sshll.u32 %s5599_s30, 4  ;;  %s45_s6 = int_to_ptr.vmem [resolvable:$true] %s44_s6 }
  0x19   :  { %s5557_s7 = scalar_lea.vmem %s45_s6, 18432  ;;  %p5562_p11 = scmp.lt.s32.totalorder %s45_s6, %s45_s6 }
  0x1a   :  { %p5558_p10 = scmp.ne.s32.totalorder %s45_s6, %s5557_s7  ;;  %p5563_p12 = scmp.lt.s32.totalorder %s5557_s7, %s5557_s7 }
  0x1c   :  { %p5564_p13 = por %p5563_p12, %p5562_p11 }
  0x1e   :  { %p5565_p0 = pnand %p5564_p13, %p5558_p10 }
  0x20   :  { %5568 = shalt.err (!%p5565_p0)
}
  0x21   :  { %50 = dma.hbm_to_vmem [thread:$0]  %s6980_s3, 18432, %s45_s6, [#allocation8], %s5597_s23, %s5597_s23, %s5598_s24  }
  0x22   :  { %5589 = dma.done.wait [#allocation5], 4096  }
  0x23   :  { %5590 = vsyncadd [#allocation5], 4294963200 }
  0x24   :  { %5591 = dma.done.wait [#allocation8], 36864  }
  0x25   :  { %5592 = vsyncadd [#allocation8], 4294930432  ;;  %v5600_v0 = vmov 0.0   ;;  %v5732_v1 = vld [vmem:[#allocation4 + $0x10] sm:$0xff]  ;;  %v5734_v2 = vld [vmem:[#allocation4] sm:$0xff]  ;;  %s5601_s0 = smov 124  }
  0x26   :  { %70 = vst [vmem:[#allocation2 + $0x20] sm:$0xff] %v5600_v0  ;;  %71 = vst [vmem:[#allocation2 + $0x28] sm:$0xff] %v5600_v0  ;;  %4579 = vmatprep.mubr.f32.mxu1 %v5600_v0  ;;  %196 = vrot.lane.b32.xlu1 %v5732_v1, %s5601_s0  ;;  %v5740_v3 = vld [vmem:[#allocation4 + $0x18] sm:$0xff]  ;;  %v5742_v4 = vld [vmem:[#allocation4 + $0x8] sm:$0xff]  ;;  %vm355_vm0 = vcmask 31744  }
  0x27   :  { %66 = vst [vmem:[#allocation2] sm:$0xff] %v5600_v0  ;;  %67 = vst [vmem:[#allocation2 + $0x8] sm:$0xff] %v5600_v0  ;;  %194 = vrot.lane.b32.xlu0 %v5734_v2, %s5601_s0  ;;  %v5748_v5 = vld [vmem:[#allocation4 + $0x28] sm:$0xff]  ;;  %v5750_v6 = vld [vmem:[#allocation4 + $0x20] sm:$0xff] }
  0x28   :  { %68 = vst [vmem:[#allocation2 + $0x10] sm:$0xff] %v5600_v0  ;;  %69 = vst [vmem:[#allocation2 + $0x18] sm:$0xff] %v5600_v0  ;;  %v5756_v7 = vld [vmem:[#allocation4 + $0x38] sm:$0xff]  ;;  %v5758_v8 = vld [vmem:[#allocation4 + $0x30] sm:$0xff] }
  0x29   :  { %72 = vst [vmem:[#allocation2 + $0x30] sm:$0xff] %v5600_v0  ;;  %73 = vst [vmem:[#allocation2 + $0x38] sm:$0xff] %v5600_v0  ;;  %v435_v9 = vld [vmem:[#allocation7 + $0xf8] sm:$0xff]  ;;  %v434_v11 = vld [vmem:[#allocation7 + $0xf0] sm:$0xff] }
  0x2a   :  { %74 = vst [vmem:[#allocation2 + $0x40] sm:$0xff] %v5600_v0  ;;  %75 = vst [vmem:[#allocation2 + $0x48] sm:$0xff] %v5600_v0  ;;  %276 = vrot.lane.b32.xlu1 %v5740_v3, %s5601_s0  ;;  %4491 = vmatprep.subr.mxu0 %v435_v9  ;;  %v403_v10 = vld [vmem:[#allocation7 + $0x78] sm:$0xff]  ;;  %v402_v12 = vld [vmem:[#allocation7 + $0x70] sm:$0xff] }
  0x2b   :  { %76 = vst [vmem:[#allocation2 + $0x50] sm:$0xff] %v5600_v0  ;;  %77 = vst [vmem:[#allocation2 + $0x58] sm:$0xff] %v5600_v0  ;;  %274 = vrot.lane.b32.xlu0 %v5742_v4, %s5601_s0  ;;  %4547 = vmatprep.subr.mxu1 %v403_v10  ;;  %v433_v13 = vld [vmem:[#allocation7 + $0xe8] sm:$0xff]  ;;  %v5766_v15 = vld [vmem:[#allocation4 + $0x40] sm:$0xff] }
  0x2c   :  { %78 = vst [vmem:[#allocation2 + $0x60] sm:$0xff] %v5600_v0  ;;  %79 = vst [vmem:[#allocation2 + $0x68] sm:$0xff] %v5600_v0  ;;  %4492 = vmatpush3.msra.mxu0 %v435_v9  ;;  %v5764_v14 = vld [vmem:[#allocation4 + $0x48] sm:$0xff]  ;;  %4548 = vmatpush3.msra.mxu1 %v403_v10  ;;  %v432_v17 = vld [vmem:[#allocation7 + $0xe0] sm:$0xff] }
  0x2d   :  { %80 = vst [vmem:[#allocation2 + $0x70] sm:$0xff] %v5600_v0  ;;  %81 = vst [vmem:[#allocation2 + $0x78] sm:$0xff] %v5600_v0  ;;  %4493 = vmatprep.subr.mxu0 %v434_v11  ;;  %4549 = vmatprep.subr.mxu1 %v402_v12  ;;  %v401_v16 = vld [vmem:[#allocation7 + $0x68] sm:$0xff]  ;;  %v400_v18 = vld [vmem:[#allocation7 + $0x60] sm:$0xff] }
  0x2e   :  { %82 = vst [vmem:[#allocation2 + $0x80] sm:$0xff] %v5600_v0  ;;  %83 = vst [vmem:[#allocation2 + $0x88] sm:$0xff] %v5600_v0  ;;  %278 = vrot.lane.b32.xlu1 %v5748_v5, %s5601_s0  ;;  %4494 = vmatpush3.msra.mxu0 %v434_v11  ;;  %v5772_v19 = vld [vmem:[#allocation4 + $0x58] sm:$0xff]  ;;  %v5774_v20 = vld [vmem:[#allocation4 + $0x50] sm:$0xff] }
  0x2f   :  { %84 = vst [vmem:[#allocation2 + $0x90] sm:$0xff] %v5600_v0  ;;  %85 = vst [vmem:[#allocation2 + $0x98] sm:$0xff] %v5600_v0  ;;  %198 = vrot.lane.b32.xlu0 %v5750_v6, %s5601_s0  ;;  %4550 = vmatpush3.msra.mxu1 %v402_v12  ;;  %v431_v21 = vld [vmem:[#allocation7 + $0xd8] sm:$0xff]  ;;  %v430_v23 = vld [vmem:[#allocation7 + $0xd0] sm:$0xff] }
  0x30   :  { %86 = vst [vmem:[#allocation2 + $0xa0] sm:$0xff] %v5600_v0  ;;  %87 = vst [vmem:[#allocation2 + $0xa8] sm:$0xff] %v5600_v0  ;;  %4495 = vmatprep.subr.mxu0 %v433_v13  ;;  %4551 = vmatprep.subr.mxu1 %v401_v16  ;;  %v399_v22 = vld [vmem:[#allocation7 + $0x58] sm:$0xff]  ;;  %v5780_v24 = vld [vmem:[#allocation4 + $0x68] sm:$0xff] }
  0x31   :  { %88 = vst [vmem:[#allocation2 + $0xb0] sm:$0xff] %v5600_v0  ;;  %89 = vst [vmem:[#allocation2 + $0xb8] sm:$0xff] %v5600_v0  ;;  %4496 = vmatpush3.msra.mxu0 %v433_v13  ;;  %4552 = vmatpush3.msra.mxu1 %v401_v16  ;;  %v5782_v25 = vld [vmem:[#allocation4 + $0x60] sm:$0xff]  ;;  %v398_v26 = vld [vmem:[#allocation7 + $0x50] sm:$0xff] }
  0x32   :  { %90 = vst [vmem:[#allocation2 + $0xc0] sm:$0xff] %v5600_v0  ;;  %91 = vst [vmem:[#allocation2 + $0xc8] sm:$0xff] %v5600_v0  ;;  %280 = vrot.lane.b32.xlu1 %v5756_v7, %s5601_s0  ;;  %4497 = vmatprep.subr.mxu0 %v432_v17  ;;  %v429_v27 = vld [vmem:[#allocation7 + $0xc8] sm:$0xff]  ;;  %v5790_v30 = vld [vmem:[#allocation4 + $0x80] sm:$0xff] }
  0x33   :  { %92 = vst [vmem:[#allocation2 + $0xd0] sm:$0xff] %v5600_v0  ;;  %93 = vst [vmem:[#allocation2 + $0xd8] sm:$0xff] %v5600_v0  ;;  %200 = vrot.lane.b32.xlu0 %v5758_v8, %s5601_s0  ;;  %4553 = vmatprep.subr.mxu1 %v400_v18  ;;  %v397_v28 = vld [vmem:[#allocation7 + $0x48] sm:$0xff]  ;;  %v428_v31 = vld [vmem:[#allocation7 + $0xc0] sm:$0xff] }
  0x34   :  { %94 = vst [vmem:[#allocation2 + $0xe0] sm:$0xff] %v5600_v0  ;;  %95 = vst [vmem:[#allocation2 + $0xe8] sm:$0xff] %v5600_v0  ;;  %4498 = vmatpush3.msra.mxu0 %v432_v17  ;;  %4554 = vmatpush3.msra.mxu1 %v400_v18  ;;  %v5788_v29 = vld [vmem:[#allocation4 + $0x88] sm:$0xff]  ;;  %v396_v32 = vld [vmem:[#allocation7 + $0x40] sm:$0xff] }
  0x35   :  { %96 = vst [vmem:[#allocation2 + $0xf0] sm:$0xff] %v5600_v0  ;;  %97 = vst [vmem:[#allocation2 + $0xf8] sm:$0xff] %v5600_v0  ;;  %4499 = vmatprep.subr.mxu0 %v431_v21  ;;  %4555 = vmatprep.subr.mxu1 %v399_v22  ;;  %v427_v33 = vld [vmem:[#allocation7 + $0xb8] sm:$0xff]  ;;  %v5798_v35 = vld [vmem:[#allocation4 + $0x90] sm:$0xff] }
  0x36   :  { %98 = vst [vmem:[#allocation2 + $0x100] sm:$0xff] %v5600_v0  ;;  %99 = vst [vmem:[#allocation2 + $0x108] sm:$0xff] %v5600_v0  ;;  %282 = vrot.lane.b32.xlu1 %v5764_v14, %s5601_s0  ;;  %4500 = vmatpush3.msra.mxu0 %v431_v21  ;;  %v5796_v34 = vld [vmem:[#allocation4 + $0x98] sm:$0xff]  ;;  %v426_v37 = vld [vmem:[#allocation7 + $0xb0] sm:$0xff] }
  0x37   :  { %100 = vst [vmem:[#allocation2 + $0x110] sm:$0xff] %v5600_v0  ;;  %101 = vst [vmem:[#allocation2 + $0x118] sm:$0xff] %v5600_v0  ;;  %202 = vrot.lane.b32.xlu0 %v5766_v15, %s5601_s0  ;;  %4556 = vmatpush3.msra.mxu1 %v399_v22  ;;  %v395_v36 = vld [vmem:[#allocation7 + $0x38] sm:$0xff]  ;;  %v394_v38 = vld [vmem:[#allocation7 + $0x30] sm:$0xff] }
  0x38   :  { %102 = vst [vmem:[#allocation2 + $0x120] sm:$0xff] %v5600_v0  ;;  %103 = vst [vmem:[#allocation2 + $0x128] sm:$0xff] %v5600_v0  ;;  %4501 = vmatprep.subr.mxu0 %v430_v23  ;;  %4557 = vmatprep.subr.mxu1 %v398_v26  ;;  %v5804_v39 = vld [vmem:[#allocation4 + $0xa8] sm:$0xff]  ;;  %v5806_v40 = vld [vmem:[#allocation4 + $0xa0] sm:$0xff] }
  0x39   :  { %104 = vst [vmem:[#allocation2 + $0x130] sm:$0xff] %v5600_v0  ;;  %105 = vst [vmem:[#allocation2 + $0x138] sm:$0xff] %v5600_v0  ;;  %4502 = vmatpush3.msra.mxu0 %v430_v23  ;;  %4558 = vmatpush3.msra.mxu1 %v398_v26  ;;  %v425_v41 = vld [vmem:[#allocation7 + $0xa8] sm:$0xff]  ;;  %v424_v43 = vld [vmem:[#allocation7 + $0xa0] sm:$0xff] }
  0x3a   :  { %106 = vst [vmem:[#allocation3] sm:$0xff] %v5600_v0  ;;  %107 = vst [vmem:[#allocation3 + $0x8] sm:$0xff] %v5600_v0  ;;  %284 = vrot.lane.b32.xlu1 %v5772_v19, %s5601_s0  ;;  %4503 = vmatprep.subr.mxu0 %v429_v27  ;;  %v393_v42 = vld [vmem:[#allocation7 + $0x28] sm:$0xff]  ;;  %v5812_v44 = vld [vmem:[#allocation4 + $0xb8] sm:$0xff] }
  0x3b   :  { %108 = vst [vmem:[#allocation3 + $0x10] sm:$0xff] %v5600_v0  ;;  %109 = vst [vmem:[#allocation3 + $0x18] sm:$0xff] %v5600_v0  ;;  %204 = vrot.lane.b32.xlu0 %v5774_v20, %s5601_s0  ;;  %4559 = vmatprep.subr.mxu1 %v397_v28  ;;  %v5814_v45 = vld [vmem:[#allocation4 + $0xb0] sm:$0xff]  ;;  %v392_v46 = vld [vmem:[#allocation7 + $0x20] sm:$0xff] }
  0x3c   :  { %110 = vst [vmem:[#allocation3 + $0x20] sm:$0xff] %v5600_v0  ;;  %111 = vst [vmem:[#allocation3 + $0x28] sm:$0xff] %v5600_v0  ;;  %4504 = vmatpush3.msra.mxu0 %v429_v27  ;;  %4560 = vmatpush3.msra.mxu1 %v397_v28  ;;  %v423_v47 = vld [vmem:[#allocation7 + $0x98] sm:$0xff]  ;;  %v5820_v49 = vld [vmem:[#allocation4 + $0xc8] sm:$0xff] }
  0x3d   :  { %112 = vst [vmem:[#allocation3 + $0x30] sm:$0xff] %v5600_v0  ;;  %113 = vst [vmem:[#allocation3 + $0x38] sm:$0xff] %v5600_v0  ;;  %4505 = vmatprep.subr.mxu0 %v428_v31  ;;  %4561 = vmatprep.subr.mxu1 %v396_v32  ;;  %v391_v48 = vld [vmem:[#allocation7 + $0x18] sm:$0xff]  ;;  %v5822_v50 = vld [vmem:[#allocation4 + $0xc0] sm:$0xff] }
  0x3e   :  { %114 = vst [vmem:[#allocation3 + $0x40] sm:$0xff] %v5600_v0  ;;  %115 = vst [vmem:[#allocation3 + $0x48] sm:$0xff] %v5600_v0  ;;  %286 = vrot.lane.b32.xlu1 %v5780_v24, %s5601_s0  ;;  %4506 = vmatpush3.msra.mxu0 %v428_v31  ;;  %v422_v51 = vld [vmem:[#allocation7 + $0x90] sm:$0xff]  ;;  %v421_v53 = vld [vmem:[#allocation7 + $0x88] sm:$0xff] }
  0x3f   :  { %116 = vst [vmem:[#allocation3 + $0x50] sm:$0xff] %v5600_v0  ;;  %117 = vst [vmem:[#allocation3 + $0x58] sm:$0xff] %v5600_v0  ;;  %206 = vrot.lane.b32.xlu0 %v5782_v25, %s5601_s0  ;;  %4562 = vmatpush3.msra.mxu1 %v396_v32  ;;  %v390_v52 = vld [vmem:[#allocation7 + $0x10] sm:$0xff]  ;;  %v5828_v54 = vld [vmem:[#allocation4 + $0xd8] sm:$0xff] }
  0x40   :  { %118 = vst [vmem:[#allocation3 + $0x60] sm:$0xff] %v5600_v0  ;;  %119 = vst [vmem:[#allocation3 + $0x68] sm:$0xff] %v5600_v0  ;;  %4507 = vmatprep.subr.mxu0 %v427_v33  ;;  %4563 = vmatprep.subr.mxu1 %v395_v36  ;;  %v5830_v55 = vld [vmem:[#allocation4 + $0xd0] sm:$0xff]  ;;  %v389_v56 = vld [vmem:[#allocation7 + $0x8] sm:$0xff] }
  0x41   :  { %120 = vst [vmem:[#allocation3 + $0x70] sm:$0xff] %v5600_v0  ;;  %121 = vst [vmem:[#allocation3 + $0x78] sm:$0xff] %v5600_v0  ;;  %4508 = vmatpush3.msra.mxu0 %v427_v33  ;;  %4564 = vmatpush3.msra.mxu1 %v395_v36  ;;  %v420_v57 = vld [vmem:[#allocation7 + $0x80] sm:$0xff]  ;;  %v5836_v59 = vld [vmem:[#allocation4 + $0xe8] sm:$0xff] }
  0x42   :  { %122 = vst [vmem:[#allocation3 + $0x80] sm:$0xff] %v5600_v0  ;;  %123 = vst [vmem:[#allocation3 + $0x88] sm:$0xff] %v5600_v0  ;;  %290 = vrot.lane.b32.xlu1 %v5788_v29, %s5601_s0  ;;  %4509 = vmatprep.subr.mxu0 %v426_v37  ;;  %v388_v58 = vld [vmem:[#allocation7] sm:$0xff]  ;;  %v757_v62 = vld [vmem:[#allocation7 + $0x178] sm:$0xff] }
  0x43   :  { %124 = vst [vmem:[#allocation3 + $0x90] sm:$0xff] %v5600_v0  ;;  %125 = vst [vmem:[#allocation3 + $0x98] sm:$0xff] %v5600_v0  ;;  %210 = vrot.lane.b32.xlu0 %v5790_v30, %s5601_s0  ;;  %4565 = vmatprep.subr.mxu1 %v394_v38  ;;  %v5838_v60 = vld [vmem:[#allocation4 + $0xe0] sm:$0xff]  ;;  %v950_v63 = vld [vmem:[#allocation7 + $0x1f8] sm:$0xff] }
  0x44   :  { %126 = vst [vmem:[#allocation3 + $0xa0] sm:$0xff] %v5600_v0  ;;  %127 = vst [vmem:[#allocation3 + $0xa8] sm:$0xff] %v5600_v0  ;;  %4510 = vmatpush3.msra.mxu0 %v426_v37  ;;  %4566 = vmatpush3.msra.mxu1 %v394_v38  ;;  %v404_v61 = vld [vmem:[#allocation2 + $0x1] sm:$0xff]  ;;  %v5844_v9 = vld [vmem:[#allocation4 + $0x78] sm:$0xff] }
  0x45   :  { %128 = vst [vmem:[#allocation3 + $0xb0] sm:$0xff] %v5600_v0  ;;  %129 = vst [vmem:[#allocation3 + $0xb8] sm:$0xff] %v5600_v0  ;;  %4511 = vmatprep.subr.mxu0 %v425_v41  ;;  %4567 = vmatprep.subr.mxu1 %v393_v42  ;;  %v5846_v10 = vld [vmem:[#allocation4 + $0x70] sm:$0xff]  ;;  %v5852_v11 = vld [vmem:[#allocation4 + $0xf8] sm:$0xff] }
  0x46   :  { %130 = vst [vmem:[#allocation3 + $0xc0] sm:$0xff] %v5600_v0  ;;  %131 = vst [vmem:[#allocation3 + $0xc8] sm:$0xff] %v5600_v0  ;;  %292 = vrot.lane.b32.xlu1 %v5796_v34, %s5601_s0  ;;  %4512 = vmatpush3.msra.mxu0 %v425_v41  ;;  %v5854_v12 = vld [vmem:[#allocation4 + $0xf0] sm:$0xff] }
  0x47   :  { %132 = vst [vmem:[#allocation3 + $0xd0] sm:$0xff] %v5600_v0  ;;  %133 = vst [vmem:[#allocation3 + $0xd8] sm:$0xff] %v5600_v0  ;;  %212 = vrot.lane.b32.xlu0 %v5798_v35, %s5601_s0  ;;  %4568 = vmatpush3.msra.mxu1 %v393_v42 }
  0x48   :  { %134 = vst [vmem:[#allocation3 + $0xe0] sm:$0xff] %v5600_v0  ;;  %135 = vst [vmem:[#allocation3 + $0xe8] sm:$0xff] %v5600_v0  ;;  %4513 = vmatprep.subr.mxu0 %v424_v43  ;;  %4569 = vmatprep.subr.mxu1 %v392_v46 }
  0x49   :  { %136 = vst [vmem:[#allocation3 + $0xf0] sm:$0xff] %v5600_v0  ;;  %137 = vst [vmem:[#allocation3 + $0xf8] sm:$0xff] %v5600_v0  ;;  %4514 = vmatpush3.msra.mxu0 %v424_v43  ;;  %4570 = vmatpush3.msra.mxu1 %v392_v46 }
  0x4a   :  { %138 = vst [vmem:[#allocation3 + $0x100] sm:$0xff] %v5600_v0  ;;  %139 = vst [vmem:[#allocation3 + $0x108] sm:$0xff] %v5600_v0  ;;  %294 = vrot.lane.b32.xlu1 %v5804_v39, %s5601_s0  ;;  %4515 = vmatprep.subr.mxu0 %v423_v47 }
  0x4b   :  { %140 = vst [vmem:[#allocation3 + $0x110] sm:$0xff] %v5600_v0  ;;  %141 = vst [vmem:[#allocation3 + $0x118] sm:$0xff] %v5600_v0  ;;  %214 = vrot.lane.b32.xlu0 %v5806_v40, %s5601_s0  ;;  %4571 = vmatprep.subr.mxu1 %v391_v48 }
  0x4c   :  { %142 = vst [vmem:[#allocation3 + $0x120] sm:$0xff] %v5600_v0  ;;  %143 = vst [vmem:[#allocation3 + $0x128] sm:$0xff] %v5600_v0  ;;  %4516 = vmatpush3.msra.mxu0 %v423_v47  ;;  %4572 = vmatpush3.msra.mxu1 %v391_v48  ;;  %v949_v48 = vld [vmem:[#allocation7 + $0x1f0] sm:$0xff] }
  0x4d   :  { %144 = vst [vmem:[#allocation3 + $0x130] sm:$0xff] %v5600_v0  ;;  %145 = vst [vmem:[#allocation3 + $0x138] sm:$0xff] %v5600_v0  ;;  %4517 = vmatprep.subr.mxu0 %v422_v51  ;;  %4573 = vmatprep.subr.mxu1 %v390_v52 }
  0x4e   :  { %296 = vrot.lane.b32.xlu1 %v5812_v44, %s5601_s0  ;;  %4518 = vmatpush3.msra.mxu0 %v422_v51 }
  0x4f   :  { %216 = vrot.lane.b32.xlu0 %v5814_v45, %s5601_s0  ;;  %4574 = vmatpush3.msra.mxu1 %v390_v52  ;;  %v755_v52 = vld [vmem:[#allocation7 + $0x168] sm:$0xff] }
  0x50   :  { %4519 = vmatprep.subr.mxu0 %v421_v53  ;;  %4575 = vmatprep.subr.mxu1 %v389_v56 }
  0x51   :  { %4520 = vmatpush3.msra.mxu0 %v421_v53  ;;  %4576 = vmatpush3.msra.mxu1 %v389_v56 }
  0x52   :  { %298 = vrot.lane.b32.xlu1 %v5820_v49, %s5601_s0  ;;  %4521 = vmatprep.subr.mxu0 %v420_v57 }
  0x53   :  { %218 = vrot.lane.b32.xlu0 %v5822_v50, %s5601_s0  ;;  %4577 = vmatprep.subr.mxu1 %v388_v58 }
  0x54   :  { %4522 = vmatpush3.msra.mxu0 %v420_v57  ;;  %4578 = vmatpush3.msra.mxu1 %v388_v58  ;;  %v948_v57 = vld [vmem:[#allocation7 + $0x1e8] sm:$0xff] }
  0x55   :  { %4523 = vmatprep.mubr.f32.mxu0 %v404_v61  ;;  %4603 = vmatprep.subr.mxu0 %v757_v62 }
  0x56   :  { %300 = vrot.lane.b32.xlu1 %v5828_v54, %s5601_s0  ;;  %4659 = vmatprep.subr.mxu1 %v950_v63 }
  0x57   :  { %220 = vrot.lane.b32.xlu0 %v5830_v55, %s5601_s0 }
  0x5a   :  { %302 = vrot.lane.b32.xlu1 %v5836_v59, %s5601_s0 }
  0x5b   :  { %222 = vrot.lane.b32.xlu0 %v5838_v60, %s5601_s0 }
  0x5e   :  { %288 = vrot.lane.b32.xlu1 %v5844_v9, %s5601_s0 }
  0x5f   :  { %208 = vrot.lane.b32.xlu0 %v5846_v10, %s5601_s0 }
  0x62   :  { %304 = vrot.lane.b32.xlu1 %v5852_v11, %s5601_s0 }
  0x63   :  { %224 = vrot.lane.b32.xlu0 %v5854_v12, %s5601_s0 }
  0x98   :  { %v197_v13 = vpop.permute.xlu1 %196 }
  0x99   :  { %v195_v16 = vpop.permute.xlu0 %194  ;;  %v243_v21 = vmax.f32 %v5732_v1, %v197_v13  ;;  %v947_v13 = vld [vmem:[#allocation7 + $0x1e0] sm:$0xff] }
  0x9a   :  { %v242_v22 = vmax.f32 %v5734_v2, %v195_v16 }
  0x9c   :  { %v277_v17 = vpop.permute.xlu1 %276 }
  0x9d   :  { %v275_v18 = vpop.permute.xlu0 %274  ;;  %v323_v23 = vmax.f32 %v5740_v3, %v277_v17 }
  0x9e   :  { %v322_v26 = vmax.f32 %v5742_v4, %v275_v18 }
  0x9f   :  { %v339_v27 = vmax.f32 %v243_v21, %v323_v23  ;;  %v946_v23 = vld [vmem:[#allocation7 + $0x1d8] sm:$0xff] }
  0xa0   :  { %v338_v28 = vmax.f32 %v242_v22, %v322_v26  ;;  %v279_v31 = vpop.permute.xlu1 %278  ;;  %v753_v22 = vld [vmem:[#allocation7 + $0x158] sm:$0xff] }
  0xa1   :  { %v199_v32 = vpop.permute.xlu0 %198  ;;  %357 = vst.msk [vmem:[#allocation2 + $0x21] sm:$0xff] %vm355_vm0, %v339_v27  ;;  %v324_v33 = vmax.f32 %v5748_v5, %v279_v31  ;;  %v752_v27 = vld [vmem:[#allocation7 + $0x150] sm:$0xff] }
  0xa2   :  { %356 = vst.msk [vmem:[#allocation2 + $0x11] sm:$0xff] %vm355_vm0, %v338_v28  ;;  %v244_v36 = vmax.f32 %v5750_v6, %v199_v32 }
  0xa4   :  { %v340_v1 = vmax.f32 %v244_v36, %v324_v33  ;;  %v281_v37 = vpop.permute.xlu1 %280 }
  0xa5   :  { %v201_v2 = vpop.permute.xlu0 %200  ;;  %v325_v3 = vmax.f32 %v5756_v7, %v281_v37  ;;  %v751_v37 = vld [vmem:[#allocation7 + $0x148] sm:$0xff] }
  0xa6   :  { %358 = vst.msk [vmem:[#allocation2 + $0x31] sm:$0xff] %vm355_vm0, %v340_v1  ;;  %v245_v4 = vmax.f32 %v5758_v8, %v201_v2  ;;  %v756_v8 = vld [vmem:[#allocation7 + $0x170] sm:$0xff]  ;;  %v944_v2 = vld [vmem:[#allocation7 + $0x1c8] sm:$0xff] }
  0xa8   :  { %v341_v38 = vmax.f32 %v245_v4, %v325_v3  ;;  %v283_v41 = vpop.permute.xlu1 %282  ;;  %v5875_v47 = vld [vmem:[#allocation2 + $0x21] sm:$0xff] }
  0xa9   :  { %v203_v42 = vpop.permute.xlu0 %202  ;;  %v5871_v43 = vld [vmem:[#allocation2 + $0x11] sm:$0xff]  ;;  %v326_v5 = vmax.f32 %v5764_v14, %v283_v41  ;;  %v5882_v7 = vld [vmem:[#allocation2 + $0x20] sm:$0xff] }
  0xaa   :  { %v5873_v46 = vld [vmem:[#allocation2 + $0x10] sm:$0xff]  ;;  %359 = vst.msk [vmem:[#allocation2 + $0x41] sm:$0xff] %vm355_vm0, %v341_v38  ;;  %v246_v6 = vmax.f32 %v5766_v15, %v203_v42  ;;  %4524 = vmatmul.mubr.f32.vlgmr.msra.gmra.mxu0 %v5871_v43  ;;  %v750_v42 = vld [vmem:[#allocation7 + $0x140] sm:$0xff] }
  0xab   :  { %4580 = vmatmul.mubr.f32.vlgmr.msra.gmra.mxu1 %v5873_v46  ;;  %4526 = vmatprep.mubr.f32.mxu0 %v5875_v47 }
  0xac   :  { %4582 = vmatprep.mubr.f32.mxu1 %v5882_v7  ;;  %v342_v51 = vmax.f32 %v246_v6, %v326_v5  ;;  %4604 = vmatpush3.msra.mxu0 %v757_v62  ;;  %v285_v53 = vpop.permute.xlu1 %284  ;;  %v943_v5 = vld [vmem:[#allocation7 + $0x1c0] sm:$0xff] }
  0xad   :  { %4660 = vmatpush3.msra.mxu1 %v950_v63  ;;  %v205_v14 = vpop.permute.xlu0 %204  ;;  %v5886_v56 = vld [vmem:[#allocation2 + $0x31] sm:$0xff]  ;;  %4605 = vmatprep.subr.mxu0 %v756_v8  ;;  %v327_v58 = vmax.f32 %v5772_v19, %v285_v53  ;;  %v754_v63 = vld [vmem:[#allocation7 + $0x160] sm:$0xff] }
  0xae   :  { %v5888_v15 = vld [vmem:[#allocation2 + $0x30] sm:$0xff]  ;;  %4661 = vmatprep.subr.mxu1 %v949_v48  ;;  %360 = vst.msk [vmem:[#allocation2 + $0x51] sm:$0xff] %vm355_vm0, %v342_v51  ;;  %v247_v61 = vmax.f32 %v5774_v20, %v205_v14  ;;  %4527 = vmatmul.mubr.f32.gmra.mxu0 %v5886_v56  ;;  %v749_v14 = vld [vmem:[#allocation7 + $0x138] sm:$0xff] }
  0xaf   :  { %4583 = vmatmul.mubr.f32.gmra.mxu1 %v5888_v15  ;;  %4606 = vmatpush3.msra.mxu0 %v756_v8  ;;  %v412_v8 = vld [vmem:[#allocation2 + $0xa1] sm:$0xff] }
  0xb0   :  { %4662 = vmatpush3.msra.mxu1 %v949_v48  ;;  %v343_v62 = vmax.f32 %v247_v61, %v327_v58  ;;  %4607 = vmatprep.subr.mxu0 %v755_v52  ;;  %v287_v16 = vpop.permute.xlu1 %286  ;;  %v748_v61 = vld [vmem:[#allocation7 + $0x130] sm:$0xff] }
  0xb1   :  { %4663 = vmatprep.subr.mxu1 %v948_v57  ;;  %v207_v17 = vpop.permute.xlu0 %206  ;;  %v5895_v18 = vld [vmem:[#allocation2 + $0x41] sm:$0xff]  ;;  %4608 = vmatpush3.msra.mxu0 %v755_v52  ;;  %v328_v19 = vmax.f32 %v5780_v24, %v287_v16  ;;  %v945_v24 = vld [vmem:[#allocation7 + $0x1d0] sm:$0xff] }
  0xb2   :  { %v5897_v21 = vld [vmem:[#allocation2 + $0x40] sm:$0xff]  ;;  %4664 = vmatpush3.msra.mxu1 %v948_v57  ;;  %361 = vst.msk [vmem:[#allocation2 + $0x61] sm:$0xff] %vm355_vm0, %v343_v62  ;;  %v248_v20 = vmax.f32 %v5782_v25, %v207_v17  ;;  %4529 = vmatprep.mubr.f32.mxu0 %v5895_v18  ;;  %v942_v57 = vld [vmem:[#allocation7 + $0x1b8] sm:$0xff] }
  0xb3   :  { %4585 = vmatprep.mubr.f32.mxu1 %v5897_v21  ;;  %4609 = vmatprep.subr.mxu0 %v754_v63 }
  0xb4   :  { %4665 = vmatprep.subr.mxu1 %v947_v13  ;;  %v344_v26 = vmax.f32 %v248_v20, %v328_v19  ;;  %4610 = vmatpush3.msra.mxu0 %v754_v63  ;;  %v291_v28 = vpop.permute.xlu1 %290  ;;  %v747_v19 = vld [vmem:[#allocation7 + $0x128] sm:$0xff] }
  0xb5   :  { %4666 = vmatpush3.msra.mxu1 %v947_v13  ;;  %v211_v31 = vpop.permute.xlu0 %210  ;;  %v5904_v32 = vld [vmem:[#allocation2 + $0x51] sm:$0xff]  ;;  %4611 = vmatprep.subr.mxu0 %v753_v22  ;;  %v330_v25 = vmax.f32 %v5788_v29, %v291_v28  ;;  %v940_v20 = vld [vmem:[#allocation7 + $0x1a8] sm:$0xff]  ;;  %v746_v28 = vld [vmem:[#allocation7 + $0x120] sm:$0xff] }
  0xb6   :  { %v5906_v33 = vld [vmem:[#allocation2 + $0x50] sm:$0xff]  ;;  %4667 = vmatprep.subr.mxu1 %v946_v23  ;;  %362 = vst.msk [vmem:[#allocation2 + $0x71] sm:$0xff] %vm355_vm0, %v344_v26  ;;  %v250_v36 = vmax.f32 %v5790_v30, %v211_v31  ;;  %4530 = vmatmul.mubr.f32.gmra.mxu0 %v5904_v32  ;;  %v939_v31 = vld [vmem:[#allocation7 + $0x1a0] sm:$0xff] }
  0xb7   :  { %4586 = vmatmul.mubr.f32.gmra.mxu1 %v5906_v33  ;;  %4612 = vmatpush3.msra.mxu0 %v753_v22 }
  0xb8   :  { %4668 = vmatpush3.msra.mxu1 %v946_v23  ;;  %v346_v1 = vmax.f32 %v250_v36, %v330_v25  ;;  %4613 = vmatprep.subr.mxu0 %v752_v27  ;;  %v293_v3 = vpop.permute.xlu1 %292  ;;  %v745_v25 = vld [vmem:[#allocation7 + $0x118] sm:$0xff] }
  0xb9   :  { %4669 = vmatprep.subr.mxu1 %v945_v24  ;;  %v213_v4 = vpop.permute.xlu0 %212  ;;  %v5913_v38 = vld [vmem:[#allocation2 + $0x61] sm:$0xff]  ;;  %4614 = vmatpush3.msra.mxu0 %v752_v27  ;;  %v331_v29 = vmax.f32 %v5796_v34, %v293_v3 }
  0xba   :  { %v5915_v41 = vld [vmem:[#allocation2 + $0x60] sm:$0xff]  ;;  %4670 = vmatpush3.msra.mxu1 %v945_v24  ;;  %364 = vst.msk [vmem:[#allocation2 + $0xb1] sm:$0xff] %vm355_vm0, %v346_v1  ;;  %v251_v30 = vmax.f32 %v5798_v35, %v213_v4  ;;  %4532 = vmatprep.mubr.f32.mxu0 %v5913_v38 }
  0xbb   :  { %4588 = vmatprep.mubr.f32.mxu1 %v5915_v41  ;;  %4615 = vmatprep.subr.mxu0 %v751_v37 }
  0xbc   :  { %4671 = vmatprep.subr.mxu1 %v944_v2  ;;  %v347_v6 = vmax.f32 %v251_v30, %v331_v29  ;;  %4616 = vmatpush3.msra.mxu0 %v751_v37  ;;  %v295_v48 = vpop.permute.xlu1 %294  ;;  %v744_v29 = vld [vmem:[#allocation7 + $0x110] sm:$0xff] }
  0xbd   :  { %4672 = vmatpush3.msra.mxu1 %v944_v2  ;;  %v215_v51 = vpop.permute.xlu0 %214  ;;  %v5922_v52 = vld [vmem:[#allocation2 + $0x71] sm:$0xff]  ;;  %4617 = vmatprep.subr.mxu0 %v750_v42  ;;  %v332_v34 = vmax.f32 %v5804_v39, %v295_v48  ;;  %v743_v48 = vld [vmem:[#allocation7 + $0x108] sm:$0xff] }
  0xbe   :  { %v5924_v53 = vld [vmem:[#allocation2 + $0x70] sm:$0xff]  ;;  %4673 = vmatprep.subr.mxu1 %v943_v5  ;;  %365 = vst.msk [vmem:[#allocation2 + $0xc1] sm:$0xff] %vm355_vm0, %v347_v6  ;;  %v252_v35 = vmax.f32 %v5806_v40, %v215_v51  ;;  %4533 = vmatmul.mubr.f32.gmra.mxu0 %v5922_v52  ;;  %v936_v51 = vld [vmem:[#allocation7 + $0x188] sm:$0xff] }
  0xbf   :  { %4589 = vmatmul.mubr.f32.gmra.mxu1 %v5924_v53  ;;  %4535 = vmatprep.mubr.f32.mxu0 %v412_v8  ;;  %v941_v40 = vld [vmem:[#allocation7 + $0x1b0] sm:$0xff] }
  0xc0   :  { %4591 = vmatprep.mubr.f32.mxu1 %v5600_v0  ;;  %v348_v58 = vmax.f32 %v252_v35, %v332_v34  ;;  %4618 = vmatpush3.msra.mxu0 %v750_v42  ;;  %v297_v62 = vpop.permute.xlu1 %296  ;;  %v937_v30 = vld [vmem:[#allocation7 + $0x190] sm:$0xff]  ;;  %v742_v35 = vld [vmem:[#allocation7 + $0x100] sm:$0xff] }
  0xc1   :  { %4674 = vmatpush3.msra.mxu1 %v943_v5  ;;  %v217_v63 = vpop.permute.xlu0 %216  ;;  %v5932_v13 = vld [vmem:[#allocation2 + $0xb1] sm:$0xff]  ;;  %4619 = vmatprep.subr.mxu0 %v749_v14  ;;  %v333_v16 = vmax.f32 %v5812_v44, %v297_v62 }
  0xc2   :  { %v5934_v39 = vld [vmem:[#allocation2 + $0xb0] sm:$0xff]  ;;  %4675 = vmatprep.subr.mxu1 %v942_v57  ;;  %366 = vst.msk [vmem:[#allocation2 + $0xd1] sm:$0xff] %vm355_vm0, %v348_v58  ;;  %v253_v17 = vmax.f32 %v5814_v45, %v217_v63  ;;  %4536 = vmatmul.mubr.f32.gmra.mxu0 %v5932_v13 }
  0xc3   :  { %4592 = vmatmul.mubr.f32.gmra.mxu1 %v5934_v39  ;;  %4620 = vmatpush3.msra.mxu0 %v749_v14 }
  0xc4   :  { %4676 = vmatpush3.msra.mxu1 %v942_v57  ;;  %v349_v0 = vmax.f32 %v253_v17, %v333_v16  ;;  %4621 = vmatprep.subr.mxu0 %v748_v61  ;;  %v299_v22 = vpop.permute.xlu1 %298  ;;  %v1336_v16 = vld [vmem:[#allocation7 + $0x2f8] sm:$0xff] }
  0xc5   :  { %4677 = vmatprep.subr.mxu1 %v941_v40  ;;  %v219_v23 = vpop.permute.xlu0 %218  ;;  %v5941_v26 = vld [vmem:[#allocation2 + $0xc1] sm:$0xff]  ;;  %4622 = vmatpush3.msra.mxu0 %v748_v61  ;;  %v334_v44 = vmax.f32 %v5820_v49, %v299_v22  ;;  %v938_v49 = vld [vmem:[#allocation7 + $0x198] sm:$0xff] }
  0xc6   :  { %v5943_v27 = vld [vmem:[#allocation2 + $0xc0] sm:$0xff]  ;;  %4678 = vmatpush3.msra.mxu1 %v941_v40  ;;  %367 = vst.msk [vmem:[#allocation2 + $0xe1] sm:$0xff] %vm355_vm0, %v349_v0  ;;  %v254_v45 = vmax.f32 %v5822_v50, %v219_v23  ;;  %4538 = vmatprep.mubr.f32.mxu0 %v5941_v26  ;;  %v1143_v40 = vld [vmem:[#allocation7 + $0x278] sm:$0xff] }
  0xc7   :  { %4594 = vmatprep.mubr.f32.mxu1 %v5943_v27  ;;  %4623 = vmatprep.subr.mxu0 %v747_v19  ;;  %v726_v22 = vld [vmem:[#allocation2 + $0x2] sm:$0xff] }
  0xc8   :  { %4679 = vmatprep.subr.mxu1 %v940_v20  ;;  %v350_v24 = vmax.f32 %v254_v45, %v334_v44  ;;  %4624 = vmatpush3.msra.mxu0 %v747_v19  ;;  %v301_v36 = vpop.permute.xlu1 %300 }
  0xc9   :  { %4680 = vmatpush3.msra.mxu1 %v940_v20  ;;  %v221_v1 = vpop.permute.xlu0 %220  ;;  %v5950_v37 = vld [vmem:[#allocation2 + $0xd1] sm:$0xff]  ;;  %4625 = vmatprep.subr.mxu0 %v746_v28  ;;  %v335_v50 = vmax.f32 %v5828_v54, %v301_v36  ;;  %v6006_v36 = vld [vmem:[#allocation2 + $0x42] sm:$0xff] }
  0xca   :  { %v5952_v2 = vld [vmem:[#allocation2 + $0xd0] sm:$0xff]  ;;  %4681 = vmatprep.subr.mxu1 %v939_v31  ;;  %368 = vst.msk [vmem:[#allocation2 + $0xf1] sm:$0xff] %vm355_vm0, %v350_v24  ;;  %v255_v3 = vmax.f32 %v5830_v55, %v221_v1  ;;  %4539 = vmatmul.mubr.f32.gmra.mxu0 %v5950_v37  ;;  %v1141_v24 = vld [vmem:[#allocation7 + $0x268] sm:$0xff]  ;;  %v1139_v1 = vld [vmem:[#allocation7 + $0x258] sm:$0xff] }
  0xcb   :  { %4595 = vmatmul.mubr.f32.gmra.mxu1 %v5952_v2  ;;  %4626 = vmatpush3.msra.mxu0 %v746_v28  ;;  %v5998_v28 = vld [vmem:[#allocation2 + $0x22] sm:$0xff] }
  0xcc   :  { %4682 = vmatpush3.msra.mxu1 %v939_v31  ;;  %v351_v4 = vmax.f32 %v255_v3, %v335_v50  ;;  %4627 = vmatprep.subr.mxu0 %v745_v25  ;;  %v303_v42 = vpop.permute.xlu1 %302  ;;  %v1335_v31 = vld [vmem:[#allocation7 + $0x2f0] sm:$0xff]  ;;  %v1332_v50 = vld [vmem:[#allocation7 + $0x2d8] sm:$0xff]  ;;  %v6014_v3 = vld [vmem:[#allocation2 + $0x62] sm:$0xff] }
  0xcd   :  { %4683 = vmatprep.subr.mxu1 %v938_v49  ;;  %v223_v5 = vpop.permute.xlu0 %222  ;;  %v5959_v6 = vld [vmem:[#allocation2 + $0xe1] sm:$0xff]  ;;  %4628 = vmatpush3.msra.mxu0 %v745_v25  ;;  %v336_v54 = vmax.f32 %v5836_v59, %v303_v42 }
  0xce   :  { %v5961_v8 = vld [vmem:[#allocation2 + $0xe0] sm:$0xff]  ;;  %4684 = vmatpush3.msra.mxu1 %v938_v49  ;;  %369 = vst.msk [vmem:[#allocation2 + $0x101] sm:$0xff] %vm355_vm0, %v351_v4  ;;  %v256_v55 = vmax.f32 %v5838_v60, %v223_v5  ;;  %4541 = vmatprep.mubr.f32.mxu0 %v5959_v6  ;;  %v1334_v25 = vld [vmem:[#allocation7 + $0x2e8] sm:$0xff]  ;;  %v6010_v49 = vld [vmem:[#allocation2 + $0x52] sm:$0xff] }
  0xcf   :  { %4597 = vmatprep.mubr.f32.mxu1 %v5961_v8  ;;  %4629 = vmatprep.subr.mxu0 %v744_v29  ;;  %v935_v59 = vld [vmem:[#allocation7 + $0x180] sm:$0xff]  ;;  %v1137_v4 = vld [vmem:[#allocation7 + $0x248] sm:$0xff] }
  0xd0   :  { %4685 = vmatprep.subr.mxu1 %v937_v30  ;;  %v352_v34 = vmax.f32 %v256_v55, %v336_v54  ;;  %4630 = vmatpush3.msra.mxu0 %v744_v29  ;;  %v289_v60 = vpop.permute.xlu1 %288  ;;  %v1136_v42 = vld [vmem:[#allocation7 + $0x240] sm:$0xff]  ;;  %v1135_v54 = vld [vmem:[#allocation7 + $0x238] sm:$0xff] }
  0xd1   :  { %4686 = vmatpush3.msra.mxu1 %v937_v30  ;;  %v5968_v14 = vld [vmem:[#allocation2 + $0xf1] sm:$0xff]  ;;  %4631 = vmatprep.subr.mxu0 %v743_v48  ;;  %v209_v58 = vpop.permute.xlu0 %208  ;;  %v329_v61 = vmax.f32 %v5844_v9, %v289_v60  ;;  %v1329_v5 = vld [vmem:[#allocation7 + $0x2c0] sm:$0xff]  ;;  %v1326_v60 = vld [vmem:[#allocation7 + $0x2a8] sm:$0xff] }
  0xd2   :  { %v5970_v57 = vld [vmem:[#allocation2 + $0xf0] sm:$0xff]  ;;  %4687 = vmatprep.subr.mxu1 %v936_v51  ;;  %370 = vst.msk [vmem:[#allocation2 + $0x111] sm:$0xff] %vm355_vm0, %v352_v34  ;;  %4542 = vmatmul.mubr.f32.gmra.mxu0 %v5968_v14  ;;  %v249_v62 = vmax.f32 %v5846_v10, %v209_v58  ;;  %v6029_v34 = vld [vmem:[#allocation2 + $0xc2] sm:$0xff] }
  0xd3   :  { %4598 = vmatmul.mubr.f32.gmra.mxu1 %v5970_v57  ;;  %4632 = vmatpush3.msra.mxu0 %v743_v48  ;;  %v6020_v30 = vld [vmem:[#allocation2 + $0x72] sm:$0xff]  ;;  %v1132_v58 = vld [vmem:[#allocation7 + $0x220] sm:$0xff] }
  0xd4   :  { %4688 = vmatpush3.msra.mxu1 %v936_v51  ;;  %4633 = vmatprep.subr.mxu0 %v742_v35  ;;  %v345_v63 = vmax.f32 %v249_v62, %v329_v61  ;;  %v305_v19 = vpop.permute.xlu1 %304  ;;  %v6025_v55 = vld [vmem:[#allocation2 + $0xb2] sm:$0xff]  ;;  %v6037_v61 = vld [vmem:[#allocation2 + $0xe2] sm:$0xff] }
  0xd5   :  { %4689 = vmatprep.subr.mxu1 %v935_v59  ;;  %v5977_v17 = vld [vmem:[#allocation2 + $0x101] sm:$0xff]  ;;  %4634 = vmatpush3.msra.mxu0 %v742_v35  ;;  %v225_v20 = vpop.permute.xlu0 %224  ;;  %v337_v9 = vmax.f32 %v5852_v11, %v305_v19  ;;  %v5994_v11 = vld [vmem:[#allocation2 + $0x12] sm:$0xff] }
  0xd6   :  { %v5979_v0 = vld [vmem:[#allocation2 + $0x100] sm:$0xff]  ;;  %4690 = vmatpush3.msra.mxu1 %v935_v59  ;;  %4544 = vmatprep.mubr.f32.mxu0 %v5977_v17  ;;  %363 = vst.msk [vmem:[#allocation2 + $0x81] sm:$0xff] %vm355_vm0, %v345_v63  ;;  %v257_v10 = vmax.f32 %v5854_v12, %v225_v20  ;;  %v1142_v12 = vld [vmem:[#allocation7 + $0x270] sm:$0xff]  ;;  %v1328_v48 = vld [vmem:[#allocation7 + $0x2b8] sm:$0xff] }
  0xd7   :  { %4600 = vmatprep.mubr.f32.mxu1 %v5979_v0  ;;  %4715 = vmatprep.subr.mxu0 %v1143_v40  ;;  %v1134_v51 = vld [vmem:[#allocation7 + $0x230] sm:$0xff]  ;;  %v1133_v35 = vld [vmem:[#allocation7 + $0x228] sm:$0xff]  ;;  %v1325_v62 = vld [vmem:[#allocation7 + $0x2a0] sm:$0xff] }
  0xd8   :  { %4771 = vmatprep.subr.mxu1 %v1336_v16  ;;  %v353_v23 = vmax.f32 %v257_v10, %v337_v9  ;;  %v6033_v59 = vld [vmem:[#allocation2 + $0xd2] sm:$0xff]  ;;  %v6045_v20 = vld [vmem:[#allocation2 + $0x102] sm:$0xff] }
  0xd9   :  { %v5986_v44 = vld [vmem:[#allocation2 + $0x111] sm:$0xff]  ;;  %v1129_v10 = vld [vmem:[#allocation7 + $0x208] sm:$0xff] }
  0xda   :  { %v5988_v45 = vld [vmem:[#allocation2 + $0x110] sm:$0xff]  ;;  %4545 = vmatmul.mubr.f32.gmra.mxu0 %v5986_v44  ;;  %371 = vst.msk [vmem:[#allocation2 + $0x121] sm:$0xff] %vm355_vm0, %v353_v23  ;;  %v1131_v63 = vld [vmem:[#allocation7 + $0x218] sm:$0xff] }
  0xdb   :  { %4601 = vmatmul.mubr.f32.gmra.mxu1 %v5988_v45  ;;  %4635 = vmatprep.mubr.f32.mxu0 %v726_v22  ;;  %v1130_v19 = vld [vmem:[#allocation7 + $0x210] sm:$0xff] }
  0xdc   :  { %4691 = vmatprep.mubr.f32.mxu1 %v5873_v46  ;;  %v6002_v46 = vld [vmem:[#allocation2 + $0x32] sm:$0xff] }
  0xdd   :  { %v6018_v29 = vld [vmem:[#allocation2 + $0x80] sm:$0xff]  ;;  %v1323_v9 = vld [vmem:[#allocation7 + $0x290] sm:$0xff] }
  0xde   :  { %4636 = vmatmul.mubr.f32.vlgmr.msra.gmra.mxu0 %v5994_v11  ;;  %v6051_v23 = vld [vmem:[#allocation2 + $0x112] sm:$0xff] }
  0xdf   :  { %4692 = vmatmul.mubr.f32.vlgmr.msra.gmra.mxu1 %v5882_v7  ;;  %4716 = vmatpush3.msra.mxu0 %v1143_v40  ;;  %v1140_v7 = vld [vmem:[#allocation7 + $0x260] sm:$0xff]  ;;  %v6041_v40 = vld [vmem:[#allocation2 + $0xf2] sm:$0xff] }
  0xe0   :  { %4638 = vmatprep.mubr.f32.mxu0 %v5998_v28  ;;  %4694 = vmatprep.mubr.f32.mxu1 %v5888_v15  ;;  %v1333_v15 = vld [vmem:[#allocation7 + $0x2e0] sm:$0xff] }
  0xe1   :  { %4717 = vmatprep.subr.mxu0 %v1142_v12  ;;  %4772 = vmatpush3.msra.mxu1 %v1336_v16  ;;  %v1324_v16 = vld [vmem:[#allocation7 + $0x298] sm:$0xff]  ;;  %v6049_v22 = vld [vmem:[#allocation2 + $0x120] sm:$0xff] }
  0xe2   :  { %4718 = vmatpush3.msra.mxu0 %v1142_v12  ;;  %4773 = vmatprep.subr.mxu1 %v1335_v31  ;;  %v1322_v12 = vld [vmem:[#allocation7 + $0x288] sm:$0xff] }
  0xe3   :  { %4719 = vmatprep.subr.mxu0 %v1141_v24  ;;  %4774 = vmatpush3.msra.mxu1 %v1335_v31  ;;  %v1128_v31 = vld [vmem:[#allocation7 + $0x200] sm:$0xff] }
  0xe4   :  { %4639 = vmatmul.mubr.f32.gmra.mxu0 %v6002_v46  ;;  %4695 = vmatmul.mubr.f32.gmra.mxu1 %v5897_v21  ;;  %v1138_v21 = vld [vmem:[#allocation7 + $0x250] sm:$0xff] }
  0xe5   :  { %4720 = vmatpush3.msra.mxu0 %v1141_v24  ;;  %4775 = vmatprep.subr.mxu1 %v1334_v25  ;;  %v1321_v24 = vld [vmem:[#allocation7 + $0x280] sm:$0xff] }
  0xe6   :  { %4641 = vmatprep.mubr.f32.mxu0 %v6006_v36  ;;  %4697 = vmatprep.mubr.f32.mxu1 %v5906_v33  ;;  %v1331_v33 = vld [vmem:[#allocation7 + $0x2d0] sm:$0xff] }
  0xe7   :  { %4721 = vmatprep.subr.mxu0 %v1140_v7  ;;  %4776 = vmatpush3.msra.mxu1 %v1334_v25  ;;  %v1530_v25 = vld [vmem:[#allocation7 + $0x378] sm:$0xff] }
  0xe8   :  { %4722 = vmatpush3.msra.mxu0 %v1140_v7  ;;  %4777 = vmatprep.subr.mxu1 %v1333_v15  ;;  %v1723_v7 = vld [vmem:[#allocation7 + $0x3f8] sm:$0xff] }
  0xe9   :  { %4723 = vmatprep.subr.mxu0 %v1139_v1  ;;  %4778 = vmatpush3.msra.mxu1 %v1333_v15  ;;  %v1529_v15 = vld [vmem:[#allocation7 + $0x370] sm:$0xff] }
  0xea   :  { %4642 = vmatmul.mubr.f32.gmra.mxu0 %v6010_v49  ;;  %4698 = vmatmul.mubr.f32.gmra.mxu1 %v5915_v41  ;;  %v1330_v41 = vld [vmem:[#allocation7 + $0x2c8] sm:$0xff] }
  0xeb   :  { %4724 = vmatpush3.msra.mxu0 %v1139_v1  ;;  %4779 = vmatprep.subr.mxu1 %v1332_v50  ;;  %v1722_v1 = vld [vmem:[#allocation7 + $0x3f0] sm:$0xff] }
  0xec   :  { %4644 = vmatprep.mubr.f32.mxu0 %v6014_v3  ;;  %4700 = vmatprep.mubr.f32.mxu1 %v5924_v53  ;;  %v734_v53 = vld [vmem:[#allocation2 + $0xa2] sm:$0xff] }
  0xed   :  { %4725 = vmatprep.subr.mxu0 %v1138_v21  ;;  %4780 = vmatpush3.msra.mxu1 %v1332_v50  ;;  %v1528_v50 = vld [vmem:[#allocation7 + $0x368] sm:$0xff] }
  0xee   :  { %4726 = vmatpush3.msra.mxu0 %v1138_v21  ;;  %4781 = vmatprep.subr.mxu1 %v1331_v33  ;;  %v1719_v21 = vld [vmem:[#allocation7 + $0x3d8] sm:$0xff] }
  0xef   :  { %4727 = vmatprep.subr.mxu0 %v1137_v4  ;;  %4782 = vmatpush3.msra.mxu1 %v1331_v33  ;;  %v1524_v33 = vld [vmem:[#allocation7 + $0x348] sm:$0xff] }
  0xf0   :  { %4645 = vmatmul.mubr.f32.gmra.mxu0 %v6020_v30  ;;  %4701 = vmatmul.mubr.f32.gmra.mxu1 %v6018_v29 }
  0xf1   :  { %4728 = vmatpush3.msra.mxu0 %v1137_v4  ;;  %4783 = vmatprep.subr.mxu1 %v1330_v41  ;;  %v6069_v4 = vld [vmem:[#allocation2 + $0x81] sm:$0xff] }
  0xf2   :  { %4703 = vmatprep.mubr.f32.mxu1 %v5934_v39  ;;  %4729 = vmatprep.subr.mxu0 %v1136_v42  ;;  %v1327_v39 = vld [vmem:[#allocation7 + $0x2b0] sm:$0xff] }
  0xf3   :  { %4784 = vmatpush3.msra.mxu1 %v1330_v41  ;;  %4730 = vmatpush3.msra.mxu0 %v1136_v42  ;;  %v1717_v41 = vld [vmem:[#allocation7 + $0x3c8] sm:$0xff]  ;;  %v1523_v42 = vld [vmem:[#allocation7 + $0x340] sm:$0xff] }
  0xf4   :  { %4785 = vmatprep.subr.mxu1 %v1329_v5  ;;  %4647 = vmatprep.mubr.f32.mxu0 %v734_v53  ;;  %v1715_v53 = vld [vmem:[#allocation7 + $0x3b8] sm:$0xff] }
  0xf5   :  { %4731 = vmatprep.subr.mxu0 %v1135_v54  ;;  %4786 = vmatpush3.msra.mxu1 %v1329_v5  ;;  %v1522_v5 = vld [vmem:[#allocation7 + $0x338] sm:$0xff] }
  0xf6   :  { %4648 = vmatmul.mubr.f32.gmra.mxu0 %v6025_v55  ;;  %4704 = vmatmul.mubr.f32.gmra.mxu1 %v5943_v27 }
  0xf7   :  { %4732 = vmatpush3.msra.mxu0 %v1135_v54  ;;  %4787 = vmatprep.subr.mxu1 %v1328_v48  ;;  %v1521_v54 = vld [vmem:[#allocation7 + $0x330] sm:$0xff] }
  0xf8   :  { %4650 = vmatprep.mubr.f32.mxu0 %v6029_v34  ;;  %4706 = vmatprep.mubr.f32.mxu1 %v5952_v2 }
  0xf9   :  { %4733 = vmatprep.subr.mxu0 %v1134_v51  ;;  %4788 = vmatpush3.msra.mxu1 %v1328_v48  ;;  %v1520_v48 = vld [vmem:[#allocation7 + $0x328] sm:$0xff] }
  0xfa   :  { %4734 = vmatpush3.msra.mxu0 %v1134_v51  ;;  %4789 = vmatprep.subr.mxu1 %v1327_v39  ;;  %v1519_v51 = vld [vmem:[#allocation7 + $0x320] sm:$0xff] }
  0xfb   :  { %4735 = vmatprep.subr.mxu0 %v1133_v35  ;;  %4790 = vmatpush3.msra.mxu1 %v1327_v39  ;;  %v1712_v39 = vld [vmem:[#allocation7 + $0x3a0] sm:$0xff] }
  0xfc   :  { %4651 = vmatmul.mubr.f32.gmra.mxu0 %v6033_v59  ;;  %4707 = vmatmul.mubr.f32.gmra.mxu1 %v5961_v8 }
  0xfd   :  { %4736 = vmatpush3.msra.mxu0 %v1133_v35  ;;  %4791 = vmatprep.subr.mxu1 %v1326_v60  ;;  %v1518_v35 = vld [vmem:[#allocation7 + $0x318] sm:$0xff] }
  0xfe   :  { %4653 = vmatprep.mubr.f32.mxu0 %v6037_v61  ;;  %4709 = vmatprep.mubr.f32.mxu1 %v5970_v57 }
  0xff   :  { %4737 = vmatprep.subr.mxu0 %v1132_v58  ;;  %4792 = vmatpush3.msra.mxu1 %v1326_v60  ;;  %v1711_v60 = vld [vmem:[#allocation7 + $0x398] sm:$0xff] }
 0x100   :  { %4738 = vmatpush3.msra.mxu0 %v1132_v58  ;;  %4793 = vmatprep.subr.mxu1 %v1325_v62  ;;  %v1517_v58 = vld [vmem:[#allocation7 + $0x310] sm:$0xff] }
 0x101   :  { %4739 = vmatprep.subr.mxu0 %v1131_v63  ;;  %4794 = vmatpush3.msra.mxu1 %v1325_v62  ;;  %v1710_v62 = vld [vmem:[#allocation7 + $0x390] sm:$0xff] }
 0x102   :  { %4654 = vmatmul.mubr.f32.gmra.mxu0 %v6041_v40  ;;  %4710 = vmatmul.mubr.f32.gmra.mxu1 %v5979_v0 }
 0x103   :  { %4740 = vmatpush3.msra.mxu0 %v1131_v63  ;;  %4795 = vmatprep.subr.mxu1 %v1324_v16  ;;  %v1516_v63 = vld [vmem:[#allocation7 + $0x308] sm:$0xff] }
 0x104   :  { %4656 = vmatprep.mubr.f32.mxu0 %v6045_v20  ;;  %4712 = vmatprep.mubr.f32.mxu1 %v5988_v45 }
 0x105   :  { %4741 = vmatprep.subr.mxu0 %v1130_v19  ;;  %4796 = vmatpush3.msra.mxu1 %v1324_v16  ;;  %v6089_v16 = vld [vmem:[#allocation2 + $0x121] sm:$0xff] }
 0x106   :  { %4742 = vmatpush3.msra.mxu0 %v1130_v19  ;;  %4797 = vmatprep.subr.mxu1 %v1323_v9  ;;  %v1709_v19 = vld [vmem:[#allocation7 + $0x388] sm:$0xff] }
 0x107   :  { %4743 = vmatprep.subr.mxu0 %v1129_v10  ;;  %4798 = vmatpush3.msra.mxu1 %v1323_v9  ;;  %v1515_v9 = vld [vmem:[#allocation7 + $0x300] sm:$0xff] }
 0x108   :  { %4657 = vmatmul.mubr.f32.gmra.mxu0 %v6051_v23  ;;  %4713 = vmatmul.mubr.f32.gmra.mxu1 %v6049_v22 }
 0x109   :  { %4744 = vmatpush3.msra.mxu0 %v1129_v10  ;;  %4799 = vmatprep.subr.mxu1 %v1322_v12  ;;  %v6092_v10 = vld [vmem:[#allocation2 + $0x122] sm:$0xff] }
 0x10a   :  { %4745 = vmatprep.subr.mxu0 %v1128_v31  ;;  %4747 = vmatprep.mubr.f32.mxu0 %v5871_v43  ;;  %v1721_v43 = vld [vmem:[#allocation7 + $0x3e8] sm:$0xff] }
 0x10b   :  { %4800 = vmatpush3.msra.mxu1 %v1322_v12  ;;  %4803 = vmatprep.mubr.f32.mxu1 %v5994_v11  ;;  %v1526_v11 = vld [vmem:[#allocation7 + $0x358] sm:$0xff]  ;;  %v1499_v12 = vld [vmem:[#allocation2 + $0x20] sm:$0xff] }
 0x10c   :  { %4746 = vmatpush3.msra.mxu0 %v1128_v31  ;;  %4801 = vmatprep.subr.mxu1 %v1321_v24  ;;  %v1708_v31 = vld [vmem:[#allocation7 + $0x380] sm:$0xff] }
 0x10d   :  { %4827 = vmatprep.subr.mxu0 %v1530_v25  ;;  %4802 = vmatpush3.msra.mxu1 %v1321_v24  ;;  %v1916_v24 = vld [vmem:[#allocation7 + $0x478] sm:$0xff] }
 0x10e   :  { %4748 = vmatmul.mubr.f32.vlgmr.msra.gmra.mxu0 %v5875_v47  ;;  %4804 = vmatmul.mubr.f32.vlgmr.msra.gmra.mxu1 %v5998_v28  ;;  %v1527_v47 = vld [vmem:[#allocation7 + $0x360] sm:$0xff] }
 0x10f   :  { %4828 = vmatpush3.msra.mxu0 %v1530_v25  ;;  %4883 = vmatprep.subr.mxu1 %v1723_v7  ;;  %v1692_v25 = vld [vmem:[#allocation2 + $0x21] sm:$0xff] }
 0x110   :  { %4750 = vmatprep.mubr.f32.mxu0 %v5886_v56  ;;  %4806 = vmatprep.mubr.f32.mxu1 %v6002_v46  ;;  %v1720_v56 = vld [vmem:[#allocation7 + $0x3e0] sm:$0xff] }
 0x111   :  { %4829 = vmatprep.subr.mxu0 %v1529_v15  ;;  %4884 = vmatpush3.msra.mxu1 %v1723_v7  ;;  %v1500_v7 = vld [vmem:[#allocation2 + $0x30] sm:$0xff] }
 0x112   :  { %4830 = vmatpush3.msra.mxu0 %v1529_v15  ;;  %4885 = vmatprep.subr.mxu1 %v1722_v1  ;;  %v1693_v15 = vld [vmem:[#allocation2 + $0x31] sm:$0xff] }
 0x113   :  { %4831 = vmatprep.subr.mxu0 %v1528_v50  ;;  %4886 = vmatpush3.msra.mxu1 %v1722_v1  ;;  %v1915_v1 = vld [vmem:[#allocation7 + $0x470] sm:$0xff] }
 0x114   :  { %4751 = vmatmul.mubr.f32.gmra.mxu0 %v5895_v18  ;;  %4807 = vmatmul.mubr.f32.gmra.mxu1 %v6006_v36  ;;  %v1525_v18 = vld [vmem:[#allocation7 + $0x350] sm:$0xff] }
 0x115   :  { %4832 = vmatpush3.msra.mxu0 %v1528_v50  ;;  %4887 = vmatprep.subr.mxu1 %v1721_v43  ;;  %v1501_v50 = vld [vmem:[#allocation2 + $0x40] sm:$0xff] }
 0x116   :  { %4753 = vmatprep.mubr.f32.mxu0 %v5904_v32  ;;  %4809 = vmatprep.mubr.f32.mxu1 %v6010_v49  ;;  %v1718_v32 = vld [vmem:[#allocation7 + $0x3d0] sm:$0xff] }
 0x117   :  { %4833 = vmatprep.subr.mxu0 %v1527_v47  ;;  %4888 = vmatpush3.msra.mxu1 %v1721_v43  ;;  %v1694_v43 = vld [vmem:[#allocation2 + $0x41] sm:$0xff] }
 0x118   :  { %4834 = vmatpush3.msra.mxu0 %v1527_v47  ;;  %4889 = vmatprep.subr.mxu1 %v1720_v56  ;;  %v1914_v47 = vld [vmem:[#allocation7 + $0x468] sm:$0xff] }
 0x119   :  { %4835 = vmatprep.subr.mxu0 %v1526_v11  ;;  %4890 = vmatpush3.msra.mxu1 %v1720_v56  ;;  %v1502_v56 = vld [vmem:[#allocation2 + $0x50] sm:$0xff] }
 0x11a   :  { %4754 = vmatmul.mubr.f32.gmra.mxu0 %v5913_v38  ;;  %4810 = vmatmul.mubr.f32.gmra.mxu1 %v6014_v3  ;;  %v6072_v38 = vld [vmem:[#allocation2 + $0x82] sm:$0xff] }
 0x11b   :  { %4836 = vmatpush3.msra.mxu0 %v1526_v11  ;;  %4891 = vmatprep.subr.mxu1 %v1719_v21  ;;  %v1695_v11 = vld [vmem:[#allocation2 + $0x51] sm:$0xff] }
 0x11c   :  { %4756 = vmatprep.mubr.f32.mxu0 %v5922_v52  ;;  %4812 = vmatprep.mubr.f32.mxu1 %v6020_v30  ;;  %v1716_v52 = vld [vmem:[#allocation7 + $0x3c0] sm:$0xff] }
 0x11d   :  { %4837 = vmatprep.subr.mxu0 %v1525_v18  ;;  %4892 = vmatpush3.msra.mxu1 %v1719_v21  ;;  %v1913_v21 = vld [vmem:[#allocation7 + $0x460] sm:$0xff] }
 0x11e   :  { %4838 = vmatpush3.msra.mxu0 %v1525_v18  ;;  %4893 = vmatprep.subr.mxu1 %v1718_v32  ;;  %v1503_v18 = vld [vmem:[#allocation2 + $0x60] sm:$0xff] }
 0x11f   :  { %4839 = vmatprep.subr.mxu0 %v1524_v33  ;;  %4894 = vmatpush3.msra.mxu1 %v1718_v32  ;;  %v1696_v32 = vld [vmem:[#allocation2 + $0x61] sm:$0xff] }
 0x120   :  { %4757 = vmatmul.mubr.f32.gmra.mxu0 %v6069_v4  ;;  %4813 = vmatmul.mubr.f32.gmra.mxu1 %v6072_v38 }
 0x121   :  { %4840 = vmatpush3.msra.mxu0 %v1524_v33  ;;  %4895 = vmatprep.subr.mxu1 %v1717_v41  ;;  %v1912_v33 = vld [vmem:[#allocation7 + $0x458] sm:$0xff] }
 0x122   :  { %4759 = vmatprep.mubr.f32.mxu0 %v5932_v13  ;;  %4815 = vmatprep.mubr.f32.mxu1 %v6025_v55  ;;  %v1714_v13 = vld [vmem:[#allocation7 + $0x3b0] sm:$0xff]  ;;  %v1713_v55 = vld [vmem:[#allocation7 + $0x3a8] sm:$0xff] }
 0x123   :  { %4841 = vmatprep.subr.mxu0 %v1523_v42  ;;  %4896 = vmatpush3.msra.mxu1 %v1717_v41  ;;  %v1504_v41 = vld [vmem:[#allocation2 + $0x70] sm:$0xff] }
 0x124   :  { %4842 = vmatpush3.msra.mxu0 %v1523_v42  ;;  %4897 = vmatprep.subr.mxu1 %v1716_v52  ;;  %v1697_v42 = vld [vmem:[#allocation2 + $0x71] sm:$0xff] }
 0x125   :  { %4843 = vmatprep.subr.mxu0 %v1522_v5  ;;  %4898 = vmatpush3.msra.mxu1 %v1716_v52  ;;  %v1911_v52 = vld [vmem:[#allocation7 + $0x450] sm:$0xff] }
 0x126   :  { %4760 = vmatmul.mubr.f32.gmra.mxu0 %v5941_v26  ;;  %4816 = vmatmul.mubr.f32.gmra.mxu1 %v6029_v34 }
 0x127   :  { %4844 = vmatpush3.msra.mxu0 %v1522_v5  ;;  %4899 = vmatprep.subr.mxu1 %v1715_v53  ;;  %v1910_v5 = vld [vmem:[#allocation7 + $0x448] sm:$0xff] }
 0x128   :  { %4762 = vmatprep.mubr.f32.mxu0 %v5950_v37  ;;  %4818 = vmatprep.mubr.f32.mxu1 %v6033_v59 }
 0x129   :  { %4845 = vmatprep.subr.mxu0 %v1521_v54  ;;  %4900 = vmatpush3.msra.mxu1 %v1715_v53  ;;  %v1699_v53 = vld [vmem:[#allocation2 + $0x91] sm:$0xff] }
 0x12a   :  { %4846 = vmatpush3.msra.mxu0 %v1521_v54  ;;  %4901 = vmatprep.subr.mxu1 %v1714_v13  ;;  %v6097_v54 = vld [vmem:[#allocation2] sm:$0xff] }
 0x12b   :  { %4847 = vmatprep.subr.mxu0 %v1520_v48  ;;  %4902 = vmatpush3.msra.mxu1 %v1714_v13  ;;  %v1909_v13 = vld [vmem:[#allocation7 + $0x440] sm:$0xff] }
 0x12c   :  { %4763 = vmatmul.mubr.f32.gmra.mxu0 %v5959_v6  ;;  %4819 = vmatmul.mubr.f32.gmra.mxu1 %v6037_v61 }
 0x12d   :  { %4848 = vmatpush3.msra.mxu0 %v1520_v48  ;;  %4903 = vmatprep.subr.mxu1 %v1713_v55  ;;  %v1908_v48 = vld [vmem:[#allocation7 + $0x438] sm:$0xff] }
 0x12e   :  { %4765 = vmatprep.mubr.f32.mxu0 %v5968_v14  ;;  %4821 = vmatprep.mubr.f32.mxu1 %v6041_v40 }
 0x12f   :  { %4849 = vmatprep.subr.mxu0 %v1519_v51  ;;  %4904 = vmatpush3.msra.mxu1 %v1713_v55 }
 0x130   :  { %4850 = vmatpush3.msra.mxu0 %v1519_v51  ;;  %4905 = vmatprep.subr.mxu1 %v1712_v39 }
 0x131   :  { %4851 = vmatprep.subr.mxu0 %v1518_v35  ;;  %4906 = vmatpush3.msra.mxu1 %v1712_v39 }
 0x132   :  { %4766 = vmatmul.mubr.f32.gmra.mxu0 %v5977_v17  ;;  %4822 = vmatmul.mubr.f32.gmra.mxu1 %v6045_v20 }
 0x133   :  { %4852 = vmatpush3.msra.mxu0 %v1518_v35  ;;  %4907 = vmatprep.subr.mxu1 %v1711_v60 }
 0x134   :  { %4768 = vmatprep.mubr.f32.mxu0 %v5986_v44  ;;  %4824 = vmatprep.mubr.f32.mxu1 %v6051_v23 }
 0x135   :  { %4853 = vmatprep.subr.mxu0 %v1517_v58  ;;  %4908 = vmatpush3.msra.mxu1 %v1711_v60 }
 0x136   :  { %4854 = vmatpush3.msra.mxu0 %v1517_v58  ;;  %4909 = vmatprep.subr.mxu1 %v1710_v62 }
 0x137   :  { %4855 = vmatprep.subr.mxu0 %v1516_v63  ;;  %4910 = vmatpush3.msra.mxu1 %v1710_v62 }
 0x138   :  { %4769 = vmatmul.mubr.f32.gmra.mxu0 %v6089_v16  ;;  %4825 = vmatmul.mubr.f32.gmra.mxu1 %v6092_v10 }
 0x139   :  { %4856 = vmatpush3.msra.mxu0 %v1516_v63  ;;  %4911 = vmatprep.subr.mxu1 %v1709_v19 }
 0x13a   :  { %4857 = vmatprep.subr.mxu0 %v1515_v9  ;;  %4859 = vmatprep.mubr.f32.mxu0 %v1499_v12 }
 0x13b   :  { %4912 = vmatpush3.msra.mxu1 %v1709_v19  ;;  %4915 = vmatprep.mubr.f32.mxu1 %v1692_v25 }
 0x13c   :  { %4858 = vmatpush3.msra.mxu0 %v1515_v9  ;;  %4913 = vmatprep.subr.mxu1 %v1708_v31  ;;  %v2197_v9 = vld [vmem:[#allocation9 + $0xf8] sm:$0xff] }
 0x13d   :  { %4939 = vmatprep.subr.mxu0 %v1916_v24  ;;  %4914 = vmatpush3.msra.mxu1 %v1708_v31 }
 0x13e   :  { %4860 = vmatmul.mubr.f32.vlgmr.msra.gmra.mxu0 %v1500_v7  ;;  %4916 = vmatmul.mubr.f32.vlgmr.msra.gmra.mxu1 %v1693_v15  ;;  %v2194_v15 = vld [vmem:[#allocation9 + $0xe0] sm:$0xff] }
 0x13f   :  { %4940 = vmatpush3.msra.mxu0 %v1916_v24  ;;  %4862 = vmatprep.mubr.f32.mxu0 %v1501_v50  ;;  %v2195_v24 = vld [vmem:[#allocation9 + $0xe8] sm:$0xff]  ;;  %v2165_v50 = vld [vmem:[#allocation9 + $0x78] sm:$0xff] }
 0x140   :  { %4918 = vmatprep.mubr.f32.mxu1 %v1694_v43  ;;  %4941 = vmatprep.subr.mxu0 %v1915_v1  ;;  %v2193_v43 = vld [vmem:[#allocation9 + $0xd8] sm:$0xff] }
 0x141   :  { %4942 = vmatpush3.msra.mxu0 %v1915_v1  ;;  %4995 = vmatprep.subr.mxu1 %v2197_v9 }
 0x142   :  { %4943 = vmatprep.subr.mxu0 %v1914_v47  ;;  %4863 = vmatmul.mubr.f32.gmra.mxu0 %v1502_v56  ;;  %v2192_v56 = vld [vmem:[#allocation9 + $0xd0] sm:$0xff] }
 0x143   :  { %4919 = vmatmul.mubr.f32.gmra.mxu1 %v1695_v11  ;;  %4944 = vmatpush3.msra.mxu0 %v1914_v47  ;;  %v2164_v47 = vld [vmem:[#allocation9 + $0x70] sm:$0xff] }
 0x144   :  { %4865 = vmatprep.mubr.f32.mxu0 %v1503_v18  ;;  %4921 = vmatprep.mubr.f32.mxu1 %v1696_v32  ;;  %v2163_v18 = vld [vmem:[#allocation9 + $0x68] sm:$0xff] }
 0x145   :  { %4945 = vmatprep.subr.mxu0 %v1913_v21  ;;  %4996 = vmatpush3.msra.mxu1 %v2197_v9  ;;  %v2191_v32 = vld [vmem:[#allocation9 + $0xc8] sm:$0xff] }
 0x146   :  { %4946 = vmatpush3.msra.mxu0 %v1913_v21 }
 0x147   :  { %4947 = vmatprep.subr.mxu0 %v1912_v33  ;;  %4866 = vmatmul.mubr.f32.gmra.mxu0 %v1504_v41 }
 0x148   :  { %4922 = vmatmul.mubr.f32.gmra.mxu1 %v1697_v42  ;;  %4948 = vmatpush3.msra.mxu0 %v1912_v33  ;;  %v2162_v42 = vld [vmem:[#allocation9 + $0x60] sm:$0xff] }
 0x149   :  { %4868 = vmatprep.mubr.f32.mxu0 %v6018_v29  ;;  %4924 = vmatprep.mubr.f32.mxu1 %v6069_v4  ;;  %v1907_v29 = vld [vmem:[#allocation7 + $0x430] sm:$0xff]  ;;  %v1906_v4 = vld [vmem:[#allocation7 + $0x428] sm:$0xff] }
 0x14a   :  { %4949 = vmatprep.subr.mxu0 %v1911_v52 }
 0x14b   :  { %4950 = vmatpush3.msra.mxu0 %v1911_v52  ;;  %v2190_v52 = vld [vmem:[#allocation9 + $0xc0] sm:$0xff] }
 0x14c   :  { %4951 = vmatprep.subr.mxu0 %v1910_v5  ;;  %4869 = vmatmul.mubr.f32.gmra.mxu0 %v6097_v54 }
 0x14d   :  { %4925 = vmatmul.mubr.f32.gmra.mxu1 %v1699_v53  ;;  %4952 = vmatpush3.msra.mxu0 %v1910_v5 }
 0x14e   :  { %4871 = vmatprep.mubr.f32.mxu0 %v5943_v27  ;;  %4927 = vmatprep.mubr.f32.mxu1 %v5941_v26  ;;  %v1905_v26 = vld [vmem:[#allocation7 + $0x420] sm:$0xff]  ;;  %v1904_v27 = vld [vmem:[#allocation7 + $0x418] sm:$0xff] }
 0x14f   :  { %4953 = vmatprep.subr.mxu0 %v1909_v13 }
 0x150   :  { %4954 = vmatpush3.msra.mxu0 %v1909_v13  ;;  %v2161_v13 = vld [vmem:[#allocation9 + $0x58] sm:$0xff] }
 0x151   :  { %4955 = vmatprep.subr.mxu0 %v1908_v48  ;;  %4872 = vmatmul.mubr.f32.gmra.mxu0 %v5952_v2  ;;  %v1902_v2 = vld [vmem:[#allocation7 + $0x408] sm:$0xff] }
 0x152   :  { %4928 = vmatmul.mubr.f32.gmra.mxu1 %v5950_v37  ;;  %4956 = vmatpush3.msra.mxu0 %v1908_v48  ;;  %v1903_v37 = vld [vmem:[#allocation7 + $0x410] sm:$0xff]  ;;  %v2189_v48 = vld [vmem:[#allocation9 + $0xb8] sm:$0xff] }
 0x153   :  { %4874 = vmatprep.mubr.f32.mxu0 %v5961_v8  ;;  %4930 = vmatprep.mubr.f32.mxu1 %v5959_v6  ;;  %v1901_v6 = vld [vmem:[#allocation7 + $0x400] sm:$0xff]  ;;  %v1707_v8 = vld [vmem:[#allocation2 + $0x131] sm:$0xff] }
 0x154   :  { %4957 = vmatprep.subr.mxu0 %v1907_v29 }
 0x155   :  { %4958 = vmatpush3.msra.mxu0 %v1907_v29 }
 0x156   :  { %4959 = vmatprep.subr.mxu0 %v1906_v4  ;;  %4875 = vmatmul.mubr.f32.gmra.mxu0 %v5970_v57 }
 0x157   :  { %4931 = vmatmul.mubr.f32.gmra.mxu1 %v5968_v14  ;;  %4960 = vmatpush3.msra.mxu0 %v1906_v4 }
 0x158   :  { %4877 = vmatprep.mubr.f32.mxu0 %v5979_v0  ;;  %4933 = vmatprep.mubr.f32.mxu1 %v5977_v17 }
 0x159   :  { %4961 = vmatprep.subr.mxu0 %v1905_v26 }
 0x15a   :  { %4962 = vmatpush3.msra.mxu0 %v1905_v26  ;;  %v2160_v26 = vld [vmem:[#allocation9 + $0x50] sm:$0xff] }
 0x15b   :  { %4963 = vmatprep.subr.mxu0 %v1904_v27  ;;  %4878 = vmatmul.mubr.f32.gmra.mxu0 %v5988_v45  ;;  %v1892_v45 = vld [vmem:[#allocation2 + $0x92] sm:$0xff] }
 0x15c   :  { %4934 = vmatmul.mubr.f32.gmra.mxu1 %v5986_v44  ;;  %4964 = vmatpush3.msra.mxu0 %v1904_v27  ;;  %v2188_v27 = vld [vmem:[#allocation9 + $0xb0] sm:$0xff] }
 0x15d   :  { %4880 = vmatprep.mubr.f32.mxu0 %v6049_v22  ;;  %4936 = vmatprep.mubr.f32.mxu1 %v6089_v16 }
 0x15e   :  { %4965 = vmatprep.subr.mxu0 %v1903_v37 }
 0x15f   :  { %4966 = vmatpush3.msra.mxu0 %v1903_v37 }
 0x160   :  { %4967 = vmatprep.subr.mxu0 %v1902_v2  ;;  %4881 = vmatmul.mubr.f32.gmra.mxu0 %v6097_v54 }
 0x161   :  { %4968 = vmatpush3.msra.mxu0 %v1902_v2  ;;  %4971 = vmatprep.mubr.f32.mxu0 %v5998_v28 }
 0x162   :  { %4969 = vmatprep.subr.mxu0 %v1901_v6  ;;  %4937 = vmatmul.mubr.f32.gmra.mxu1 %v1707_v8  ;;  %v2159_v8 = vld [vmem:[#allocation9 + $0x48] sm:$0xff] }
 0x163   :  { %4970 = vmatpush3.msra.mxu0 %v1901_v6 }
 0x164   :  { %4972 = vmatmul.mubr.f32.vlgmr.msra.gmra.mxu0 %v6002_v46  ;;  %5051 = vmatprep.subr.mxu0 %v2165_v50 }
 0x165   :  { %4974 = vmatprep.mubr.f32.mxu0 %v6006_v36  ;;  %5052 = vmatpush3.msra.mxu0 %v2165_v50  ;;  %v2153_v50 = vld [vmem:[#allocation9 + $0x18] sm:$0xff] }
 0x166   :  { %5053 = vmatprep.subr.mxu0 %v2164_v47 }
 0x167   :  { %5054 = vmatpush3.msra.mxu0 %v2164_v47 }
 0x168   :  { %4975 = vmatmul.mubr.f32.gmra.mxu0 %v6010_v49  ;;  %5055 = vmatprep.subr.mxu0 %v2163_v18 }
 0x169   :  { %4977 = vmatprep.mubr.f32.mxu0 %v6014_v3  ;;  %5056 = vmatpush3.msra.mxu0 %v2163_v18 }
 0x16a   :  { %v4525_v14 = vpop.f32.mrf.mxu0  ;;  %5057 = vmatprep.subr.mxu0 %v2162_v42 }
 0x16b   :  { %v4581_v57 = vpop.f32.mrf.mxu1  ;;  %5058 = vmatpush3.msra.mxu0 %v2162_v42  ;;  %v2150_v42 = vld [vmem:[#allocation9] sm:$0xff] }
 0x16c   :  { %v6120_v17 = vadd.f32 %v4581_v57, %v4525_v14  ;;  %4978 = vmatmul.mubr.f32.gmra.mxu0 %v6020_v30  ;;  %v6123_v0 = vpop.f32.mrf.mxu0  ;;  %5059 = vmatprep.subr.mxu0 %v2161_v13  ;;  %v2187_v14 = vld [vmem:[#allocation9 + $0xa8] sm:$0xff]  ;;  %v2158_v57 = vld [vmem:[#allocation9 + $0x40] sm:$0xff] }
 0x16d   :  { %v6125_v44 = vpop.f32.mrf.mxu1  ;;  %4980 = vmatprep.mubr.f32.mxu0 %v6072_v38  ;;  %5060 = vmatpush3.msra.mxu0 %v2161_v13 }
 0x16e   :  { %v4528_v28 = vpop.f32.mrf.mxu0  ;;  %5061 = vmatprep.subr.mxu0 %v2160_v26 }
 0x16f   :  { %v4584_v46 = vpop.f32.mrf.mxu1  ;;  %5062 = vmatpush3.msra.mxu0 %v2160_v26 }
 0x170   :  { %v6128_v36 = vadd.f32 %v4584_v46, %v4528_v28  ;;  %4981 = vmatmul.mubr.f32.gmra.mxu0 %v1892_v45  ;;  %v6132_v49 = vpop.f32.mrf.mxu0  ;;  %5063 = vmatprep.subr.mxu0 %v2159_v8  ;;  %v2186_v45 = vld [vmem:[#allocation9 + $0xa0] sm:$0xff] }
 0x171   :  { %4983 = vmatprep.mubr.f32.mxu0 %v6029_v34  ;;  %v6134_v3 = vpop.f32.mrf.mxu1  ;;  %5064 = vmatpush3.msra.mxu0 %v2159_v8 }
 0x172   :  { %5065 = vmatprep.subr.mxu0 %v2158_v57 }
 0x173   :  { %5066 = vmatpush3.msra.mxu0 %v2158_v57 }
 0x174   :  { %4984 = vmatmul.mubr.f32.gmra.mxu0 %v6033_v59  ;;  %v1900_v59 = vld [vmem:[#allocation2 + $0x132] sm:$0xff] }
 0x175   :  { %4986 = vmatprep.mubr.f32.mxu0 %v6037_v61 }
 0x176   :  { %v4531_v30 = vpop.f32.mrf.mxu0 }
 0x177   :  { %v4587_v22 = vpop.f32.mrf.mxu1 }
 0x178   :  { %v6137_v55 = vadd.f32 %v4587_v22, %v4531_v30  ;;  %4987 = vmatmul.mubr.f32.gmra.mxu0 %v6041_v40  ;;  %v6142_v38 = vpop.f32.mrf.mxu0  ;;  %v2157_v30 = vld [vmem:[#allocation9 + $0x38] sm:$0xff] }
 0x179   :  { %4989 = vmatprep.mubr.f32.mxu0 %v6045_v20  ;;  %v6144_v34 = vpop.f32.mrf.mxu1  ;;  %v2185_v22 = vld [vmem:[#allocation9 + $0x98] sm:$0xff]  ;;  %5067 = vmatprep.subr.mxu0 %v2157_v30 }
 0x17a   :  { %5068 = vmatpush3.msra.mxu0 %v2157_v30 }
 0x17c   :  { %4990 = vmatmul.mubr.f32.gmra.mxu0 %v6051_v23 }
 0x17d   :  { %4992 = vmatprep.mubr.f32.mxu0 %v6092_v10  ;;  %v2196_v10 = vld [vmem:[#allocation9 + $0xf0] sm:$0xff] }
 0x17e   :  { %v4534_v51 = vpop.f32.mrf.mxu0  ;;  %4997 = vmatprep.subr.mxu1 %v2196_v10 }
 0x17f   :  { %v4590_v39 = vpop.f32.mrf.mxu1  ;;  %4998 = vmatpush3.msra.mxu1 %v2196_v10  ;;  %v2154_v10 = vld [vmem:[#allocation9 + $0x20] sm:$0xff] }
 0x180   :  { %v6147_v61 = vadd.f32 %v4590_v39, %v4534_v51  ;;  %4993 = vmatmul.mubr.f32.gmra.mxu0 %v1900_v59  ;;  %v6149_v35 = vpop.f32.mrf.mxu0  ;;  %4999 = vmatprep.subr.mxu1 %v2195_v24  ;;  %v2156_v39 = vld [vmem:[#allocation9 + $0x30] sm:$0xff] }
 0x181   :  { %v6151_v60 = vpop.f32.mrf.mxu1  ;;  %5083 = vmatprep.mubr.f32.mxu0 %v6097_v54  ;;  %5000 = vmatpush3.msra.mxu1 %v2195_v24  ;;  %v2182_v24 = vld [vmem:[#allocation9 + $0x80] sm:$0xff] }
 0x182   :  { %v4537_v40 = vpop.f32.mrf.mxu0  ;;  %5001 = vmatprep.subr.mxu1 %v2194_v15  ;;  %5069 = vmatprep.subr.mxu0 %v2156_v39 }
 0x183   :  { %v4593_v20 = vpop.f32.mrf.mxu1  ;;  %5002 = vmatpush3.msra.mxu1 %v2194_v15  ;;  %5070 = vmatpush3.msra.mxu0 %v2156_v39 }
 0x184   :  { %v6154_v23 = vadd.f32 %v4593_v20, %v4537_v40  ;;  %v6156_v58 = vpop.f32.mrf.mxu0  ;;  %5003 = vmatprep.subr.mxu1 %v2193_v43  ;;  %v2184_v40 = vld [vmem:[#allocation9 + $0x90] sm:$0xff]  ;;  %v2183_v20 = vld [vmem:[#allocation9 + $0x88] sm:$0xff] }
 0x185   :  { %v6158_v62 = vpop.f32.mrf.mxu1  ;;  %5004 = vmatpush3.msra.mxu1 %v2193_v43  ;;  %v6205_v43 = vld [vmem:[#allocation9 + $0x178] sm:$0xff] }
 0x186   :  { %5005 = vmatprep.subr.mxu1 %v2192_v56  ;;  %6985 = vst [vmem:[#allocation14_spill] sm:$0xff] %v6205_v43 }
 0x187   :  { %5006 = vmatpush3.msra.mxu1 %v2192_v56 }
 0x188   :  { %5007 = vmatprep.subr.mxu1 %v2191_v32 }
 0x189   :  { %5008 = vmatpush3.msra.mxu1 %v2191_v32  ;;  %v2151_v32 = vld [vmem:[#allocation9 + $0x8] sm:$0xff] }
 0x18a   :  { %v4540_v63 = vpop.f32.mrf.mxu0  ;;  %5009 = vmatprep.subr.mxu1 %v2190_v52 }
 0x18b   :  { %v4596_v16 = vpop.f32.mrf.mxu1  ;;  %5010 = vmatpush3.msra.mxu1 %v2190_v52  ;;  %v6217_v52 = vld [vmem:[#allocation9 + $0x1f8] sm:$0xff] }
 0x18c   :  { %v6160_v19 = vadd.f32 %v4596_v16, %v4540_v63  ;;  %v6162_v12 = vpop.f32.mrf.mxu0  ;;  %5011 = vmatprep.subr.mxu1 %v2189_v48  ;;  %6986 = vst [vmem:[#allocation15_spill] sm:$0xff] %v6217_v52 }
 0x18d   :  { %v6164_v31 = vpop.f32.mrf.mxu1  ;;  %5012 = vmatpush3.msra.mxu1 %v2189_v48 }
 0x18e   :  { %5013 = vmatprep.subr.mxu1 %v2188_v27 }
 0x18f   :  { %5014 = vmatpush3.msra.mxu1 %v2188_v27 }
 0x190   :  { %5015 = vmatprep.subr.mxu1 %v2187_v14 }
 0x191   :  { %5016 = vmatpush3.msra.mxu1 %v2187_v14 }
 0x192   :  { %v4543_v25 = vpop.f32.mrf.mxu0  ;;  %5017 = vmatprep.subr.mxu1 %v2186_v45 }
 0x193   :  { %v4599_v7 = vpop.f32.mrf.mxu1  ;;  %5018 = vmatpush3.msra.mxu1 %v2186_v45 }
 0x194   :  { %v6166_v1 = vadd.f32 %v4599_v7, %v4543_v25  ;;  %v6168_v11 = vpop.f32.mrf.mxu0  ;;  %5019 = vmatprep.subr.mxu1 %v2185_v22  ;;  %v2166_v7 = vld [vmem:[#allocation3 + $0x1] sm:$0xff] }
 0x195   :  { %v6170_v21 = vpop.f32.mrf.mxu1  ;;  %5020 = vmatpush3.msra.mxu1 %v2185_v22  ;;  %5027 = vmatprep.mubr.f32.mxu1 %v2166_v7 }
 0x196   :  { %5021 = vmatprep.subr.mxu1 %v2184_v40 }
 0x197   :  { %5022 = vmatpush3.msra.mxu1 %v2184_v40 }
 0x198   :  { %5023 = vmatprep.subr.mxu1 %v2183_v20 }
 0x199   :  { %5024 = vmatpush3.msra.mxu1 %v2183_v20 }
 0x19a   :  { %v4546_v33 = vpop.f32.mrf.mxu0  ;;  %5025 = vmatprep.subr.mxu1 %v2182_v24 }
 0x19b   :  { %v4602_v41 = vpop.f32.mrf.mxu1  ;;  %5026 = vmatpush3.msra.mxu1 %v2182_v24 }
 0x19c   :  { %v6172_v5 = vadd.f32 %v4602_v41, %v4546_v33  ;;  %v6174_v53 = vpop.f32.mrf.mxu0  ;;  %5107 = vmatprep.subr.mxu1 %v6205_v43 }
 0x19d   :  { %v6176_v54 = vpop.f32.mrf.mxu1 }
 0x19e   :  { %v4637_v29 = vpop.f32.mrf.mxu0 }
 0x19f   :  { %v6178_v4 = vpop.f32.mrf.mxu1  ;;  %v6181_v37 = vadd.f32 %v4637_v29, %v6120_v17 }
 0x1a0   :  { %v6183_v2 = vpop.f32.mrf.mxu0 }
 0x1a1   :  { %v6185_v6 = vpop.f32.mrf.mxu1 }
 0x1a4   :  { %v4640_v28 = vpop.f32.mrf.mxu0  ;;  %v6190_v46 = vpop.f32.mrf.mxu1 }
 0x1a5   :  { %v6188_v17 = vadd.f32 %v4640_v28, %v6128_v36  ;;  %v2155_v36 = vld [vmem:[#allocation9 + $0x28] sm:$0xff] }
 0x1a6   :  { %v6192_v59 = vpop.f32.mrf.mxu0  ;;  %v6194_v51 = vpop.f32.mrf.mxu1  ;;  %5071 = vmatprep.subr.mxu0 %v2155_v36 }
 0x1a7   :  { %5072 = vmatpush3.msra.mxu0 %v2155_v36 }
 0x1a8   :  { %5073 = vmatprep.subr.mxu0 %v2154_v10 }
 0x1a9   :  { %5074 = vmatpush3.msra.mxu0 %v2154_v10 }
 0x1aa   :  { %v4643_v63 = vpop.f32.mrf.mxu0  ;;  %v6199_v9 = vpop.f32.mrf.mxu1  ;;  %5075 = vmatprep.subr.mxu0 %v2153_v50 }
 0x1ab   :  { %v6197_v16 = vadd.f32 %v4643_v63, %v6137_v55  ;;  %5076 = vmatpush3.msra.mxu0 %v2153_v50  ;;  %v2152_v55 = vld [vmem:[#allocation9 + $0x10] sm:$0xff] }
 0x1ac   :  { %v6201_v25 = vpop.f32.mrf.mxu0  ;;  %v6203_v15 = vpop.f32.mrf.mxu1  ;;  %5077 = vmatprep.subr.mxu0 %v2152_v55 }
 0x1ad   :  { %5078 = vmatpush3.msra.mxu0 %v2152_v55 }
 0x1ae   :  { %5079 = vmatprep.subr.mxu0 %v2151_v32 }
 0x1af   :  { %5080 = vmatpush3.msra.mxu0 %v2151_v32 }
 0x1b0   :  { %v4646_v47 = vpop.f32.mrf.mxu0  ;;  %v6211_v18 = vpop.f32.mrf.mxu1  ;;  %5081 = vmatprep.subr.mxu0 %v2150_v42 }
 0x1b1   :  { %v6209_v56 = vadd.f32 %v4646_v47, %v6147_v61  ;;  %5082 = vmatpush3.msra.mxu0 %v2150_v42 }
 0x1b2   :  { %v6213_v33 = vpop.f32.mrf.mxu0  ;;  %v6215_v41 = vpop.f32.mrf.mxu1  ;;  %5163 = vmatprep.subr.mxu0 %v6217_v52 }
 0x1b6   :  { %v4649_v13 = vpop.f32.mrf.mxu0  ;;  %v6223_v48 = vpop.f32.mrf.mxu1 }
 0x1b7   :  { %v6221_v61 = vadd.f32 %v4649_v13, %v6154_v23 }
 0x1b8   :  { %v6225_v29 = vpop.f32.mrf.mxu0  ;;  %v6227_v26 = vpop.f32.mrf.mxu1 }
 0x1bc   :  { %v4652_v27 = vpop.f32.mrf.mxu0  ;;  %v6232_v14 = vpop.f32.mrf.mxu1 }
 0x1bd   :  { %v6230_v8 = vadd.f32 %v4652_v27, %v6160_v19  ;;  %6988 = vst [vmem:[#allocation17_spill] sm:$0xff] %v6232_v14 }
 0x1be   :  { %v6234_v57 = vpop.f32.mrf.mxu0  ;;  %v6236_v45 = vpop.f32.mrf.mxu1 }
 0x1bf   :  { %6987 = vst [vmem:[#allocation16_spill] sm:$0xff] %v6230_v8  ;;  %6989 = vst [vmem:[#allocation18_spill] sm:$0xff] %v6236_v45 }
 0x1c2   :  { %v4655_v28 = vpop.f32.mrf.mxu0  ;;  %v6241_v30 = vpop.f32.mrf.mxu1 }
 0x1c3   :  { %v6239_v23 = vadd.f32 %v4655_v28, %v6166_v1  ;;  %6991 = vst [vmem:[#allocation20_spill] sm:$0xff] %v6241_v30 }
 0x1c4   :  { %v6243_v22 = vpop.f32.mrf.mxu0  ;;  %v6245_v39 = vpop.f32.mrf.mxu1 }
 0x1c5   :  { %6990 = vst [vmem:[#allocation19_spill] sm:$0xff] %v6239_v23  ;;  %6992 = vst [vmem:[#allocation21_spill] sm:$0xff] %v6243_v22 }
 0x1c6   :  { %6993 = vst [vmem:[#allocation22_spill] sm:$0xff] %v6245_v39 }
 0x1c8   :  { %v4658_v40 = vpop.f32.mrf.mxu0  ;;  %v6250_v36 = vpop.f32.mrf.mxu1 }
 0x1c9   :  { %v6248_v19 = vadd.f32 %v4658_v40, %v6172_v5  ;;  %6995 = vst [vmem:[#allocation24_spill] sm:$0xff] %v6250_v36 }
 0x1ca   :  { %v6252_v20 = vpop.f32.mrf.mxu0  ;;  %v6254_v63 = vpop.f32.mrf.mxu1 }
 0x1cb   :  { %6994 = vst [vmem:[#allocation23_spill] sm:$0xff] %v6248_v19  ;;  %6996 = vst [vmem:[#allocation25_spill] sm:$0xff] %v6252_v20 }
 0x1cc   :  { %6997 = vst [vmem:[#allocation26_spill] sm:$0xff] %v6254_v63 }
 0x1ce   :  { %v4749_v10 = vpop.f32.mrf.mxu0  ;;  %v6256_v24 = vpop.f32.mrf.mxu1 }
 0x1d0   :  { %v1210_v1 = vpop.f32.mrf.mxu0  ;;  %v6258_v7 = vpop.f32.mrf.mxu1 }
 0x1d4   :  { %v4752_v50 = vpop.f32.mrf.mxu0  ;;  %v6260_v55 = vpop.f32.mrf.mxu1 }
 0x1d6   :  { %v6262_v47 = vpop.f32.mrf.mxu0  ;;  %v6264_v32 = vpop.f32.mrf.mxu1 }
 0x1da   :  { %v6266_v5 = vpop.f32.mrf.mxu0  ;;  %v6268_v42 = vpop.f32.mrf.mxu1 }
 0x1dc   :  { %v6270_v13 = vpop.f32.mrf.mxu0  ;;  %v6272_v27 = vpop.f32.mrf.mxu1 }
 0x1dd   :  { %6998 = vst [vmem:[#allocation27_spill] sm:$0xff] %v6272_v27 }
 0x1e0   :  { %v6274_v28 = vpop.f32.mrf.mxu0  ;;  %v6276_v40 = vpop.f32.mrf.mxu1 }
 0x1e1   :  { %6999 = vst [vmem:[#allocation28_spill] sm:$0xff] %v6276_v40 }
 0x1e2   :  { %v6278_v52 = vpop.f32.mrf.mxu0  ;;  %v6280_v63 = vpop.f32.mrf.mxu1 }
 0x1e3   :  { %7000 = vst [vmem:[#allocation29_spill] sm:$0xff] %v6278_v52  ;;  %7001 = vst [vmem:[#allocation30_spill] sm:$0xff] %v6280_v63 }
 0x1e6   :  { %v6282_v20 = vpop.f32.mrf.mxu0  ;;  %v6284_v43 = vpop.f32.mrf.mxu1 }
 0x1e7   :  { %7002 = vst [vmem:[#allocation31_spill] sm:$0xff] %v6282_v20  ;;  %7003 = vst [vmem:[#allocation32_spill] sm:$0xff] %v6284_v43 }
 0x1e8   :  { %v6286_v36 = vpop.f32.mrf.mxu0  ;;  %v6288_v19 = vpop.f32.mrf.mxu1 }
 0x1e9   :  { %7004 = vst [vmem:[#allocation33_spill] sm:$0xff] %v6286_v36  ;;  %7005 = vst [vmem:[#allocation34_spill] sm:$0xff] %v6288_v19 }
 0x1ec   :  { %v6290_v39 = vpop.f32.mrf.mxu0  ;;  %v6292_v30 = vpop.f32.mrf.mxu1 }
 0x1ed   :  { %7006 = vst [vmem:[#allocation35_spill] sm:$0xff] %v6290_v39  ;;  %7007 = vst [vmem:[#allocation36_spill] sm:$0xff] %v6292_v30 }
 0x1ee   :  { %v6294_v23 = vpop.f32.mrf.mxu0  ;;  %v6296_v45 = vpop.f32.mrf.mxu1 }
 0x1ef   :  { %7008 = vst [vmem:[#allocation37_spill] sm:$0xff] %v6294_v23  ;;  %7009 = vst [vmem:[#allocation38_spill] sm:$0xff] %v6296_v45 }
 0x1f2   :  { %v6298_v40 = vpop.f32.mrf.mxu0  ;;  %v6302_v63 = vpop.f32.mrf.mxu1 }
 0x1f3   :  { %7010 = vst [vmem:[#allocation39_spill] sm:$0xff] %v6298_v40  ;;  %7012 = vst [vmem:[#allocation41_spill] sm:$0xff] %v6302_v63 }
 0x1f4   :  { %v6300_v52 = vpop.f32.mrf.mxu0  ;;  %v6306_v43 = vpop.f32.mrf.mxu1 }
 0x1f5   :  { %7011 = vst [vmem:[#allocation40_spill] sm:$0xff] %v6300_v52  ;;  %7014 = vst [vmem:[#allocation43_spill] sm:$0xff] %v6306_v43 }
 0x1f8   :  { %v6304_v20 = vpop.f32.mrf.mxu0  ;;  %v6310_v19 = vpop.f32.mrf.mxu1 }
 0x1f9   :  { %7013 = vst [vmem:[#allocation42_spill] sm:$0xff] %v6304_v20  ;;  %7016 = vst [vmem:[#allocation45_spill] sm:$0xff] %v6310_v19 }
 0x1fa   :  { %v6308_v36 = vpop.f32.mrf.mxu0  ;;  %v6312_v27 = vpop.f32.mrf.mxu1 }
 0x1fb   :  { %7015 = vst [vmem:[#allocation44_spill] sm:$0xff] %v6308_v36  ;;  %7017 = vst [vmem:[#allocation46_spill] sm:$0xff] %v6312_v27  ;;  %v648_v27 = vadd.f32 %v6125_v44, %v6123_v0 }
 0x1fe   :  { %v4861_v39 = vpop.f32.mrf.mxu0  ;;  %v4917_v45 = vpop.f32.mrf.mxu1 }
 0x200   :  { %v1597_v30 = vpop.f32.mrf.mxu0  ;;  %v1790_v52 = vpop.f32.mrf.mxu1 }
 0x202   :  { %v4864_v23 = vpop.f32.mrf.mxu0 }
 0x203   :  { %v6320_v20 = vpop.f32.mrf.mxu1 }
 0x204   :  { %v6314_v22 = vpop.f32.mrf.mxu0 }
 0x205   :  { %7018 = vst [vmem:[#allocation47_spill] sm:$0xff] %v6314_v22  ;;  %v6326_v19 = vpop.f32.mrf.mxu1 }
 0x206   :  { %7023 = vst [vmem:[#allocation52_spill] sm:$0xff] %v6326_v19 }
 0x207   :  { %v6316_v40 = vpop.f32.mrf.mxu0 }
 0x208   :  { %7019 = vst [vmem:[#allocation48_spill] sm:$0xff] %v6316_v40  ;;  %v6334_v22 = vpop.f32.mrf.mxu1  ;;  %v903_v40 = vadd.f32 %v6183_v2, %v648_v27  ;;  %v668_v2 = vadd.f32 %v6144_v34, %v6142_v38  ;;  %v1099_v27 = vadd.f32 %v6190_v46, %v6188_v17  ;;  %v688_v38 = vadd.f32 %v6158_v62, %v6156_v58 }
 0x209   :  { %v6318_v63 = vpop.f32.mrf.mxu0  ;;  %v1101_v34 = vadd.f32 %v6199_v9, %v6197_v16  ;;  %v698_v58 = vadd.f32 %v6164_v31, %v6162_v12  ;;  %v708_v62 = vadd.f32 %v6170_v21, %v6168_v11 }
 0x20a   :  { %7020 = vst [vmem:[#allocation49_spill] sm:$0xff] %v6318_v63  ;;  %v6343_v19 = vpop.f32.mrf.mxu1  ;;  %v1096_v0 = vadd.f32 %v6185_v6, %v903_v40 }
 0x20b   :  { %v913_v12 = vadd.f32 %v6234_v57, %v698_v58  ;;  %v6405_v57 = vld [vmem:[%s6979_s2] ss:$0 sm:$0xff] }
 0x20c   :  { %v6322_v43 = vpop.f32.mrf.mxu0 }
 0x20d   :  { %7021 = vst [vmem:[#allocation50_spill] sm:$0xff] %v6322_v43  ;;  %v658_v43 = vadd.f32 %v6134_v3, %v6132_v49  ;;  %v678_v3 = vadd.f32 %v6151_v60, %v6149_v35 }
 0x20e   :  { %v6324_v36 = vpop.f32.mrf.mxu0 }
 0x20f   :  { %7022 = vst [vmem:[#allocation51_spill] sm:$0xff] %v6324_v36  ;;  %v1097_v36 = vadd.f32 %v6178_v4, %v6181_v37  ;;  %v905_v44 = vadd.f32 %v6192_v59, %v658_v43  ;;  %v907_v4 = vadd.f32 %v6201_v25, %v668_v2  ;;  %v6358_v37 = vpop.f32.mrf.mxu1  ;;  %v1292_v43 = vadd.f32 %v4752_v50, %v1099_v27  ;;  %v7029_v50 = vld [vmem:[#allocation47_spill] sm:$0xff] }
 0x210   :  { %v909_v17 = vadd.f32 %v6213_v33, %v678_v3  ;;  %v911_v25 = vadd.f32 %v6225_v29, %v688_v38  ;;  %v1103_v33 = vadd.f32 %v6211_v18, %v6209_v56  ;;  %v7038_v38 = vld [vmem:[#allocation31_spill] sm:$0xff] }
 0x211   :  { %v6328_v14 = vpop.f32.mrf.mxu0  ;;  %v1098_v6 = vadd.f32 %v6194_v51, %v905_v44  ;;  %v1100_v51 = vadd.f32 %v6203_v15, %v907_v4  ;;  %v1485_v16 = vadd.f32 %v6260_v55, %v1292_v43  ;;  %v6385_v15 = vadd.f32 %v6176_v54, %v6174_v53  ;;  %v7036_v4 = vld [vmem:[#allocation20_spill] sm:$0xff] }
 0x212   :  { %7024 = vst [vmem:[#allocation53_spill] sm:$0xff] %v6328_v14  ;;  %v1102_v29 = vadd.f32 %v6215_v41, %v909_v17  ;;  %v1104_v53 = vadd.f32 %v6227_v26, %v911_v25  ;;  %v1296_v56 = vadd.f32 %v6274_v28, %v1103_v33  ;;  %v7030_v26 = vld [vmem:[#allocation21_spill] sm:$0xff] }
 0x213   :  { %v6332_v8 = vpop.f32.mrf.mxu0  ;;  %v1291_v60 = vadd.f32 %v6262_v47, %v1098_v6  ;;  %v1679_v21 = vadd.f32 %v4864_v23, %v1485_v16  ;;  %v915_v55 = vadd.f32 %v7030_v26, %v708_v62  ;;  %v7031_v47 = vld [vmem:[#allocation27_spill] sm:$0xff]  ;;  %v7039_v17 = vld [vmem:[#allocation49_spill] sm:$0xff]  ;;  %v7041_v62 = vld [vmem:[#allocation22_spill] sm:$0xff] }
 0x214   :  { %7025 = vst [vmem:[#allocation54_spill] sm:$0xff] %v6332_v8  ;;  %v1290_v8 = vadd.f32 %v4749_v10, %v1097_v36  ;;  %v6374_v10 = vpop.f32.mrf.mxu1 }
 0x215   :  { %v1484_v31 = vadd.f32 %v6264_v32, %v1291_v60  ;;  %v1872_v2 = vadd.f32 %v6320_v20, %v1679_v21  ;;  %v1108_v16 = vadd.f32 %v7041_v62, %v915_v55  ;;  %v2518_v55 = vld [vmem:[#allocation9 + $0x170] sm:$0xff]  ;;  %v2516_v62 = vld [vmem:[#allocation9 + $0x160] sm:$0xff] }
 0x216   :  { %v6337_v63 = vpop.f32.mrf.mxu0  ;;  %v1483_v59 = vadd.f32 %v6256_v24, %v1290_v8  ;;  %v1294_v8 = vadd.f32 %v6266_v5, %v1101_v34  ;;  %v6400_v18 = vpop.f32.mrf.mxu1  ;;  %v7032_v5 = vld [vmem:[#allocation29_spill] sm:$0xff] }
 0x217   :  { %7026 = vst [vmem:[#allocation55_spill] sm:$0xff] %v6337_v63  ;;  %v1289_v63 = vadd.f32 %v1210_v1, %v1096_v0  ;;  %v7027_v1 = vld [vmem:[#allocation16_spill] sm:$0xff]  ;;  %v7034_v0 = vld [vmem:[#allocation18_spill] sm:$0xff] }
 0x218   :  { %v6345_v14 = vpop.f32.mrf.mxu0  ;;  %v1677_v46 = vadd.f32 %v4861_v39, %v1483_v59  ;;  %v1293_v39 = vadd.f32 %v6270_v13, %v1100_v51  ;;  %v1487_v54 = vadd.f32 %v6268_v42, %v1294_v8  ;;  %v1295_v42 = vadd.f32 %v7032_v5, %v1102_v29  ;;  %v7033_v13 = vld [vmem:[#allocation48_spill] sm:$0xff]  ;;  %v6422_v60 = vpop.f32.mrf.mxu1  ;;  %v7043_v29 = vld [vmem:[#allocation33_spill] sm:$0xff] }
 0x219   :  { %v1482_v35 = vadd.f32 %v6258_v7, %v1289_v63  ;;  %v1106_v44 = vadd.f32 %v7034_v0, %v913_v12  ;;  %v7037_v59 = vld [vmem:[#allocation28_spill] sm:$0xff] }
 0x21a   :  { %v1870_v11 = vadd.f32 %v4917_v45, %v1677_v46  ;;  %v7028_v45 = vld [vmem:[#allocation17_spill] sm:$0xff]  ;;  %v1486_v32 = vadd.f32 %v7031_v47, %v1293_v39  ;;  %v1681_v28 = vadd.f32 %v7033_v13, %v1487_v54  ;;  %v1489_v43 = vadd.f32 %v7037_v59, %v1296_v56  ;;  %v7040_v51 = vld [vmem:[#allocation52_spill] sm:$0xff]  ;;  %v7049_v47 = vld [vmem:[#allocation51_spill] sm:$0xff] }
 0x21b   :  { %v6353_v49 = vpop.f32.mrf.mxu0  ;;  %v1676_v9 = vadd.f32 %v1597_v30, %v1482_v35  ;;  %v1105_v30 = vadd.f32 %v6223_v48, %v6221_v61  ;;  %v1107_v23 = vadd.f32 %v7028_v45, %v7027_v1  ;;  %v1678_v61 = vadd.f32 %v7029_v50, %v1484_v31  ;;  %v7046_v1 = vld [vmem:[#allocation24_spill] sm:$0xff] }
 0x21c   :  { %v1680_v35 = vadd.f32 %v7039_v17, %v1486_v32  ;;  %v1297_v39 = vadd.f32 %v7043_v29, %v1104_v53  ;;  %v1874_v12 = vadd.f32 %v6334_v22, %v1681_v28  ;;  %v6442_v22 = vpop.f32.mrf.mxu1  ;;  %v7050_v28 = vld [vmem:[#allocation34_spill] sm:$0xff]  ;;  %v7055_v17 = vld [vmem:[#allocation36_spill] sm:$0xff] }
 0x21d   :  { %v6362_v36 = vpop.f32.mrf.mxu0  ;;  %v1869_v7 = vadd.f32 %v1790_v52, %v1676_v9  ;;  %v7035_v52 = vld [vmem:[#allocation19_spill] sm:$0xff]  ;;  %v1298_v34 = vadd.f32 %v7038_v38, %v1105_v30  ;;  %v1871_v25 = vadd.f32 %v7040_v51, %v1678_v61  ;;  %v7042_v9 = vld [vmem:[#allocation30_spill] sm:$0xff] }
 0x21e   :  { %v1109_v6 = vadd.f32 %v7036_v4, %v7035_v52  ;;  %v1488_v33 = vadd.f32 %v7042_v9, %v1295_v42  ;;  %v7048_v61 = vld [vmem:[#allocation35_spill] sm:$0xff]  ;;  %v1873_v53 = vadd.f32 %v6343_v19, %v1680_v35  ;;  %v7052_v19 = vld [vmem:[#allocation53_spill] sm:$0xff] }
 0x21f   :  { %v2517_v52 = vld [vmem:[#allocation9 + $0x168] sm:$0xff] }
 0x220   :  { %v6376_v24 = vpop.f32.mrf.mxu0  ;;  %v1682_v32 = vadd.f32 %v7049_v47, %v1488_v33 }
 0x222   :  { %v6391_v63 = vpop.f32.mrf.mxu0  ;;  %v1875_v9 = vadd.f32 %v6374_v10, %v1682_v32  ;;  %v2515_v10 = vld [vmem:[#allocation9 + $0x158] sm:$0xff] }
 0x224   :  { %v4973_v41 = vpop.f32.mrf.mxu0 }
 0x225   :  { %v2063_v48 = vadd.f32 %v4973_v41, %v1870_v11  ;;  %v7044_v11 = vld [vmem:[#allocation50_spill] sm:$0xff]  ;;  %v7045_v41 = vld [vmem:[#allocation23_spill] sm:$0xff] }
 0x226   :  { %v1983_v40 = vpop.f32.mrf.mxu0  ;;  %v1683_v21 = vadd.f32 %v7044_v11, %v1489_v43  ;;  %v1111_v45 = vadd.f32 %v7046_v1, %v7045_v41 }
 0x227   :  { %v2086_v27 = vadd.f32 %v6405_v57, %v2063_v48  ;;  %v2062_v3 = vadd.f32 %v1983_v40, %v1869_v7  ;;  %v7047_v7 = vld [vmem:[#allocation32_spill] sm:$0xff]  ;;  %v1300_v48 = vadd.f32 %v7048_v61, %v1107_v23  ;;  %v1490_v40 = vadd.f32 %v7050_v28, %v1297_v39  ;;  %v7051_v23 = vld [vmem:[#allocation37_spill] sm:$0xff] }
 0x228   :  { %v4976_v46 = vpop.f32.mrf.mxu0  ;;  %v1491_v50 = vadd.f32 %v7047_v7, %v1298_v34  ;;  %v1299_v0 = vadd.f32 %v7051_v23, %v1106_v44  ;;  %v1876_v4 = vadd.f32 %v6358_v37, %v1683_v21  ;;  %v7054_v44 = vld [vmem:[#allocation25_spill] sm:$0xff] }
 0x229   :  { %v6425_v8 = vmax.f32 %v2086_v27, 0.0  ;;  %v2085_v20 = vadd.f32 %v6405_v57, %v2062_v3  ;;  %v2065_v58 = vadd.f32 %v4976_v46, %v1872_v2  ;;  %v7053_v3 = vld [vmem:[#allocation14_spill] sm:$0xff]  ;;  %v917_v34 = vadd.f32 %v7054_v44, %v6385_v15  ;;  %v7056_v46 = vld [vmem:[#allocation39_spill] sm:$0xff]  ;;  %v7062_v61 = vld [vmem:[#allocation41_spill] sm:$0xff] }
 0x22a   :  { %v1993_v31 = vpop.f32.mrf.mxu0  ;;  %v1685_v2 = vadd.f32 %v7052_v19, %v1491_v50  ;;  %v1493_v35 = vadd.f32 %v7055_v17, %v1300_v48  ;;  %v1302_v51 = vadd.f32 %v7056_v46, %v1109_v6  ;;  %v7058_v6 = vld [vmem:[#allocation38_spill] sm:$0xff]  ;;  %v7065_v19 = vld [vmem:[#allocation44_spill] sm:$0xff] }
 0x22b   :  { %2119 = vst [vmem:[#allocation3 + $0x21] sm:$0xff] %v6425_v8  ;;  %v6434_v30 = vmax.f32 %v2085_v20, 0.0  ;;  %v2088_v54 = vadd.f32 %v6405_v57, %v2065_v58  ;;  %v2064_v56 = vadd.f32 %v1993_v31, %v1871_v25  ;;  %v7057_v25 = vld [vmem:[#allocation54_spill] sm:$0xff]  ;;  %v6465_v58 = vpop.f32.mrf.mxu1  ;;  %v1492_v39 = vadd.f32 %v7058_v6, %v1299_v0 }
 0x22c   :  { %v4979_v26 = vpop.f32.mrf.mxu0  ;;  %v1684_v20 = vadd.f32 %v7057_v25, %v1490_v40  ;;  %v1878_v11 = vadd.f32 %v6400_v18, %v1685_v2  ;;  %v7061_v50 = vld [vmem:[#allocation26_spill] sm:$0xff]  ;;  %v1495_v18 = vadd.f32 %v7062_v61, %v1302_v51 }
 0x22d   :  { %2118 = vst [vmem:[#allocation3 + $0x11] sm:$0xff] %v6434_v30  ;;  %v6446_v5 = vmax.f32 %v2088_v54, 0.0  ;;  %v2087_v42 = vadd.f32 %v6405_v57, %v2064_v56  ;;  %v2067_v13 = vadd.f32 %v4979_v26, %v1874_v12  ;;  %5028 = vmatmul.mubr.f32.vlgmr.msra.gmra.mxu1 %v6434_v30  ;;  %v7059_v12 = vld [vmem:[#allocation40_spill] sm:$0xff]  ;;  %v7060_v54 = vld [vmem:[#allocation55_spill] sm:$0xff]  ;;  %v7063_v48 = vld [vmem:[#allocation42_spill] sm:$0xff] }
 0x22e   :  { %v2003_v27 = vpop.f32.mrf.mxu0  ;;  %5108 = vmatpush3.msra.mxu1 %v7053_v3  ;;  %5030 = vmatprep.mubr.f32.mxu1 %v6425_v8  ;;  %v1301_v31 = vadd.f32 %v7059_v12, %v1108_v16  ;;  %v1687_v56 = vadd.f32 %v7060_v54, %v1493_v35  ;;  %v1110_v16 = vadd.f32 %v7061_v50, %v917_v34  ;;  %v2707_v50 = vld [vmem:[#allocation9 + $0x1d0] sm:$0xff] }
 0x22f   :  { %2121 = vst [vmem:[#allocation3 + $0x41] sm:$0xff] %v6446_v5  ;;  %v6457_v59 = vmax.f32 %v2087_v42, 0.0  ;;  %v2090_v43 = vadd.f32 %v6405_v57, %v2067_v13  ;;  %v2066_v38 = vadd.f32 %v2003_v27, %v1873_v53  ;;  %5109 = vmatprep.subr.mxu1 %v2518_v55  ;;  %v1304_v53 = vadd.f32 %v7063_v48, %v1111_v45  ;;  %v2711_v42 = vld [vmem:[#allocation9 + $0x1f0] sm:$0xff] }
 0x230   :  { %v4982_v37 = vpop.f32.mrf.mxu0  ;;  %5110 = vmatpush3.msra.mxu1 %v2518_v55  ;;  %v1877_v26 = vadd.f32 %v6422_v60, %v1684_v20  ;;  %v4935_v55 = vpop.f32.mrf.mxu1  ;;  %v1686_v13 = vadd.f32 %v6345_v14, %v1492_v39  ;;  %v7064_v60 = vld [vmem:[#allocation43_spill] sm:$0xff]  ;;  %v1303_v2 = vadd.f32 %v7065_v19, %v1110_v16  ;;  %v1689_v27 = vadd.f32 %v6353_v49, %v1495_v18  ;;  %v7067_v49 = vld [vmem:[#allocation45_spill] sm:$0xff] }
 0x231   :  { %2120 = vst [vmem:[#allocation3 + $0x31] sm:$0xff] %v6457_v59  ;;  %v6469_v33 = vmax.f32 %v2090_v43, 0.0  ;;  %v2089_v29 = vadd.f32 %v6405_v57, %v2066_v38  ;;  %v2069_v15 = vadd.f32 %v4982_v37, %v1876_v4  ;;  %5111 = vmatprep.subr.mxu1 %v2517_v52  ;;  %5031 = vmatmul.mubr.f32.gmra.mxu1 %v6457_v59  ;;  %v7066_v14 = vld [vmem:[#allocation15_spill] sm:$0xff] }
 0x232   :  { %v2013_v21 = vpop.f32.mrf.mxu0  ;;  %5112 = vmatpush3.msra.mxu1 %v2517_v52  ;;  %5033 = vmatprep.mubr.f32.mxu1 %v6446_v5  ;;  %v6495_v45 = vld [vmem:[#allocation3 + $0x20] sm:$0xff]  ;;  %v1494_v0 = vadd.f32 %v7064_v60, %v1301_v31  ;;  %v2710_v52 = vld [vmem:[#allocation9 + $0x1e8] sm:$0xff]  ;;  %v1880_v4 = vadd.f32 %v6442_v22, %v1687_v56  ;;  %v1497_v34 = vadd.f32 %v7067_v49, %v1304_v53  ;;  %v1850_v35 = vpop.f32.mrf.mxu1 }
 0x233   :  { %2123 = vst [vmem:[#allocation3 + $0x61] sm:$0xff] %v6469_v33  ;;  %v6479_v41 = vmax.f32 %v2089_v29, 0.0  ;;  %v6482_v1 = vadd.f32 %v6405_v57, %v2069_v15  ;;  %v2068_v7 = vadd.f32 %v2013_v21, %v1875_v9  ;;  %5113 = vmatprep.subr.mxu1 %v2516_v62  ;;  %v2709_v22 = vld [vmem:[#allocation9 + $0x1e0] sm:$0xff]  ;;  %v1879_v25 = vadd.f32 %v6465_v58, %v1686_v13  ;;  %v2514_v9 = vld [vmem:[#allocation9 + $0x150] sm:$0xff]  ;;  %v2708_v58 = vld [vmem:[#allocation9 + $0x1d8] sm:$0xff] }
 0x234   :  { %v4985_v47 = vpop.f32.mrf.mxu0  ;;  %v6488_v32 = vld [vmem:[#allocation3 + $0x10] sm:$0xff]  ;;  %5114 = vmatpush3.msra.mxu1 %v2516_v62  ;;  %v1688_v17 = vadd.f32 %v6362_v36, %v1494_v0  ;;  %v7068_v29 = vld [vmem:[#allocation46_spill] sm:$0xff]  ;;  %v1882_v6 = vadd.f32 %v4935_v55, %v1689_v27  ;;  %v4938_v39 = vpop.f32.mrf.mxu1  ;;  %v1691_v31 = vadd.f32 %v6376_v24, %v1497_v34  ;;  %v2513_v53 = vld [vmem:[#allocation9 + $0x148] sm:$0xff] }
 0x235   :  { %2122 = vst [vmem:[#allocation3 + $0x51] sm:$0xff] %v6479_v41  ;;  %v2108_v28 = vmax.f32 %v6482_v1, 0.0  ;;  %v2091_v40 = vadd.f32 %v6405_v57, %v2068_v7  ;;  %v2071_v23 = vadd.f32 %v4985_v47, %v1878_v11  ;;  %5084 = vmatmul.mubr.f32.vlgmr.msra.gmra.mxu0 %v6488_v32  ;;  %5115 = vmatprep.subr.mxu1 %v2515_v10  ;;  %v2512_v0 = vld [vmem:[#allocation9 + $0x140] sm:$0xff]  ;;  %v2511_v34 = vld [vmem:[#allocation9 + $0x138] sm:$0xff]  ;;  %v3283_v1 = vld [vmem:[#allocation9 + $0x330] sm:$0xff] }
 0x236   :  { %v2023_v3 = vpop.f32.mrf.mxu0  ;;  %5086 = vmatprep.mubr.f32.mxu0 %v6495_v45  ;;  %5164 = vmatpush3.msra.mxu0 %v7066_v14  ;;  %v6519_v36 = vld [vmem:[#allocation3 + $0x40] sm:$0xff]  ;;  %v1496_v15 = vadd.f32 %v7068_v29, %v1303_v2  ;;  %v1881_v54 = vadd.f32 %v1850_v35, %v1688_v17  ;;  %v1884_v47 = vadd.f32 %v4938_v39, %v1691_v31  ;;  %v2509_v29 = vld [vmem:[#allocation9 + $0x128] sm:$0xff]  ;;  %v2507_v31 = vld [vmem:[#allocation9 + $0x118] sm:$0xff] }
 0x237   :  { %2125 = vst [vmem:[#allocation3 + $0x81] sm:$0xff] %v2108_v28  ;;  %v6505_v43 = vmax.f32 %v2091_v40, 0.0  ;;  %v2094_v38 = vadd.f32 %v6405_v57, %v2071_v23  ;;  %v2070_v44 = vadd.f32 %v2023_v3, %v1877_v26  ;;  %5165 = vmatprep.subr.mxu0 %v2711_v42  ;;  %5034 = vmatmul.mubr.f32.gmra.mxu1 %v6479_v41  ;;  %v1860_v26 = vpop.f32.mrf.mxu1  ;;  %v2706_v40 = vld [vmem:[#allocation9 + $0x1c8] sm:$0xff]  ;;  %v2705_v14 = vld [vmem:[#allocation9 + $0x1c0] sm:$0xff] }
 0x238   :  { %v4988_v46 = vpop.f32.mrf.mxu0  ;;  %5166 = vmatpush3.msra.mxu0 %v2711_v42  ;;  %v6511_v51 = vld [vmem:[#allocation3 + $0x30] sm:$0xff]  ;;  %5116 = vmatpush3.msra.mxu1 %v2515_v10  ;;  %v1690_v16 = vadd.f32 %v6391_v63, %v1496_v15  ;;  %v2508_v39 = vld [vmem:[#allocation9 + $0x120] sm:$0xff] }
 0x239   :  { %2124 = vst [vmem:[#allocation3 + $0x71] sm:$0xff] %v6505_v43  ;;  %v6515_v20 = vmax.f32 %v2094_v38, 0.0  ;;  %v2093_v37 = vadd.f32 %v6405_v57, %v2070_v44  ;;  %v2073_v62 = vadd.f32 %v4988_v46, %v1880_v4  ;;  %5087 = vmatmul.mubr.f32.gmra.mxu0 %v6511_v51  ;;  %5167 = vmatprep.subr.mxu0 %v2710_v52  ;;  %v2174_v4 = vld [vmem:[#allocation3 + $0xa1] sm:$0xff] }
 0x23a   :  { %v2033_v12 = vpop.f32.mrf.mxu0  ;;  %5089 = vmatprep.mubr.f32.mxu0 %v6519_v36  ;;  %5168 = vmatpush3.msra.mxu0 %v2710_v52  ;;  %v6537_v48 = vld [vmem:[#allocation3 + $0x60] sm:$0xff]  ;;  %v1883_v19 = vadd.f32 %v1860_v26, %v1690_v16  ;;  %v2505_v16 = vld [vmem:[#allocation9 + $0x108] sm:$0xff] }
 0x23b   :  { %2127 = vst [vmem:[#allocation3 + $0xc1] sm:$0xff] %v6515_v20  ;;  %v6525_v11 = vmax.f32 %v2093_v37, 0.0  ;;  %v2096_v21 = vadd.f32 %v6405_v57, %v2073_v62  ;;  %v2072_v10 = vadd.f32 %v2033_v12, %v1879_v25  ;;  %5169 = vmatprep.subr.mxu0 %v2709_v22  ;;  %5036 = vmatprep.mubr.f32.mxu1 %v6469_v33  ;;  %v2704_v25 = vld [vmem:[#allocation9 + $0x1b8] sm:$0xff]  ;;  %v2510_v62 = vld [vmem:[#allocation9 + $0x130] sm:$0xff]  ;;  %v2697_v26 = vld [vmem:[#allocation9 + $0x180] sm:$0xff] }
 0x23c   :  { %v4991_v56 = vpop.f32.mrf.mxu0  ;;  %5170 = vmatpush3.msra.mxu0 %v2709_v22  ;;  %v6529_v7 = vld [vmem:[#allocation3 + $0x50] sm:$0xff]  ;;  %5117 = vmatprep.subr.mxu1 %v2514_v9  ;;  %v6563_v22 = vld [vmem:[#allocation2] sm:$0xff] }
 0x23d   :  { %2126 = vst [vmem:[#allocation3 + $0xb1] sm:$0xff] %v6525_v11  ;;  %v6533_v24 = vmax.f32 %v2096_v21, 0.0  ;;  %v2095_v61 = vadd.f32 %v6405_v57, %v2072_v10  ;;  %v2075_v18 = vadd.f32 %v4991_v56, %v1882_v6  ;;  %5090 = vmatmul.mubr.f32.gmra.mxu0 %v6529_v7  ;;  %5171 = vmatprep.subr.mxu0 %v2708_v58  ;;  %v2702_v6 = vld [vmem:[#allocation9 + $0x1a8] sm:$0xff]  ;;  %v2700_v10 = vld [vmem:[#allocation9 + $0x198] sm:$0xff] }
 0x23e   :  { %v2043_v55 = vpop.f32.mrf.mxu0  ;;  %5092 = vmatprep.mubr.f32.mxu0 %v6537_v48  ;;  %5172 = vmatpush3.msra.mxu0 %v2708_v58  ;;  %v2701_v58 = vld [vmem:[#allocation9 + $0x1a0] sm:$0xff] }
 0x23f   :  { %2129 = vst [vmem:[#allocation3 + $0xe1] sm:$0xff] %v6533_v24  ;;  %v6541_v63 = vmax.f32 %v2095_v61, 0.0  ;;  %v2098_v42 = vadd.f32 %v6405_v57, %v2075_v18  ;;  %v2074_v13 = vadd.f32 %v2043_v55, %v1881_v54  ;;  %5118 = vmatpush3.msra.mxu1 %v2514_v9  ;;  %5173 = vmatprep.subr.mxu0 %v2707_v50  ;;  %v2703_v9 = vld [vmem:[#allocation9 + $0x1b0] sm:$0xff]  ;;  %v2698_v18 = vld [vmem:[#allocation9 + $0x188] sm:$0xff] }
 0x240   :  { %v4994_v23 = vpop.f32.mrf.mxu0  ;;  %5119 = vmatprep.subr.mxu1 %v2513_v53  ;;  %5174 = vmatpush3.msra.mxu0 %v2707_v50  ;;  %v6544_v60 = vld [vmem:[#allocation3 + $0x70] sm:$0xff]  ;;  %v2488_v55 = vld [vmem:[#allocation3 + $0x2] sm:$0xff] }
 0x241   :  { %2128 = vst [vmem:[#allocation3 + $0xd1] sm:$0xff] %v6541_v63  ;;  %v6547_v2 = vmax.f32 %v2098_v42, 0.0  ;;  %v2097_v27 = vadd.f32 %v6405_v57, %v2074_v13  ;;  %v2077_v3 = vadd.f32 %v4994_v23, %v1884_v47  ;;  %5037 = vmatmul.mubr.f32.gmra.mxu1 %v6505_v43  ;;  %5093 = vmatmul.mubr.f32.gmra.mxu0 %v6544_v60  ;;  %v2506_v54 = vld [vmem:[#allocation9 + $0x110] sm:$0xff]  ;;  %v2905_v47 = vld [vmem:[#allocation9 + $0x278] sm:$0xff]  ;;  %v6602_v23 = vld [vmem:[#allocation3 + $0x22] sm:$0xff] }
 0x242   :  { %5120 = vmatpush3.msra.mxu1 %v2513_v53  ;;  %5175 = vmatprep.subr.mxu0 %v2706_v40  ;;  %v2053_v52 = vpop.f32.mrf.mxu0  ;;  %v2699_v50 = vld [vmem:[#allocation9 + $0x190] sm:$0xff]  ;;  %v2504_v53 = vld [vmem:[#allocation9 + $0x100] sm:$0xff]  ;;  %v3098_v42 = vld [vmem:[#allocation9 + $0x2f8] sm:$0xff] }
 0x243   :  { %2131 = vst [vmem:[#allocation3 + $0x101] sm:$0xff] %v6547_v2  ;;  %v6553_v38 = vmax.f32 %v2097_v27, 0.0  ;;  %v6556_v44 = vadd.f32 %v6405_v57, %v2077_v3  ;;  %v2076_v49 = vadd.f32 %v2053_v52, %v1883_v19  ;;  %5121 = vmatprep.subr.mxu1 %v2512_v0  ;;  %5176 = vmatpush3.msra.mxu0 %v2706_v40  ;;  %v6598_v13 = vld [vmem:[#allocation3 + $0x12] sm:$0xff]  ;;  %v3096_v19 = vld [vmem:[#allocation9 + $0x2e8] sm:$0xff]  ;;  %v2902_v3 = vld [vmem:[#allocation9 + $0x260] sm:$0xff] }
 0x244   :  { %5122 = vmatpush3.msra.mxu1 %v2512_v0  ;;  %5177 = vmatprep.subr.mxu0 %v2705_v14  ;;  %v6558_v17 = vld [vmem:[#allocation3 + $0xb0] sm:$0xff]  ;;  %v3095_v52 = vld [vmem:[#allocation9 + $0x2e0] sm:$0xff] }
 0x245   :  { %2130 = vst [vmem:[#allocation3 + $0xf1] sm:$0xff] %v6553_v38  ;;  %v2116_v35 = vmax.f32 %v6556_v44, 0.0  ;;  %v2099_v46 = vadd.f32 %v6405_v57, %v2076_v49  ;;  %5039 = vmatprep.mubr.f32.mxu1 %v2174_v4  ;;  %5095 = vmatprep.mubr.f32.mxu0 %v6563_v22  ;;  %v6572_v57 = vld [vmem:[#allocation3 + $0xc0] sm:$0xff]  ;;  %v2904_v40 = vld [vmem:[#allocation9 + $0x270] sm:$0xff]  ;;  %v2901_v4 = vld [vmem:[#allocation9 + $0x258] sm:$0xff] }
 0x246   :  { %5123 = vmatprep.subr.mxu1 %v2511_v34  ;;  %5178 = vmatpush3.msra.mxu0 %v2705_v14  ;;  %v6581_v12 = vld [vmem:[#allocation3 + $0xe0] sm:$0xff]  ;;  %v3097_v0 = vld [vmem:[#allocation9 + $0x2f0] sm:$0xff]  ;;  %v3094_v49 = vld [vmem:[#allocation9 + $0x2d8] sm:$0xff] }
 0x247   :  { %2133 = vst [vmem:[#allocation3 + $0x121] sm:$0xff] %v2116_v35  ;;  %v6568_v37 = vmax.f32 %v2099_v46, 0.0  ;;  %5040 = vmatmul.mubr.f32.gmra.mxu1 %v6525_v11  ;;  %5096 = vmatmul.mubr.f32.gmra.mxu0 %v6558_v17  ;;  %v6606_v27 = vld [vmem:[#allocation3 + $0x32] sm:$0xff]  ;;  %v6610_v14 = vld [vmem:[#allocation3 + $0x42] sm:$0xff] }
 0x248   :  { %5124 = vmatpush3.msra.mxu1 %v2511_v34  ;;  %5179 = vmatprep.subr.mxu0 %v2704_v25  ;;  %v6577_v15 = vld [vmem:[#allocation3 + $0xd0] sm:$0xff]  ;;  %v3456_v44 = vld [vmem:[#allocation3 + $0x41] sm:$0xff] }
 0x249   :  { %2132 = vst [vmem:[#allocation3 + $0x111] sm:$0xff] %v6568_v37  ;;  %5042 = vmatprep.mubr.f32.mxu1 %v6515_v20  ;;  %5098 = vmatprep.mubr.f32.mxu0 %v6572_v57  ;;  %v6614_v34 = vld [vmem:[#allocation3 + $0x52] sm:$0xff] }
 0x24a   :  { %5125 = vmatprep.subr.mxu1 %v2510_v62  ;;  %5180 = vmatpush3.msra.mxu0 %v2704_v25  ;;  %v6589_v56 = vld [vmem:[#allocation3 + $0x100] sm:$0xff]  ;;  %v2900_v46 = vld [vmem:[#allocation9 + $0x250] sm:$0xff] }
 0x24b   :  { %5126 = vmatpush3.msra.mxu1 %v2510_v62  ;;  %5181 = vmatprep.subr.mxu0 %v2703_v9  ;;  %v6618_v25 = vld [vmem:[#allocation3 + $0x62] sm:$0xff]  ;;  %v3093_v62 = vld [vmem:[#allocation9 + $0x2d0] sm:$0xff] }
 0x24c   :  { %5127 = vmatprep.subr.mxu1 %v2509_v29  ;;  %5182 = vmatpush3.msra.mxu0 %v2703_v9  ;;  %v6585_v21 = vld [vmem:[#allocation3 + $0xf0] sm:$0xff]  ;;  %v2899_v9 = vld [vmem:[#allocation9 + $0x248] sm:$0xff] }
 0x24d   :  { %5043 = vmatmul.mubr.f32.gmra.mxu1 %v6541_v63  ;;  %5099 = vmatmul.mubr.f32.gmra.mxu0 %v6577_v15 }
 0x24e   :  { %5128 = vmatpush3.msra.mxu1 %v2509_v29  ;;  %5183 = vmatprep.subr.mxu0 %v2702_v6  ;;  %v3092_v29 = vld [vmem:[#allocation9 + $0x2c8] sm:$0xff] }
 0x24f   :  { %5045 = vmatprep.mubr.f32.mxu1 %v6533_v24  ;;  %5101 = vmatprep.mubr.f32.mxu0 %v6581_v12 }
 0x250   :  { %5129 = vmatprep.subr.mxu1 %v2508_v39  ;;  %5184 = vmatpush3.msra.mxu0 %v2702_v6  ;;  %v6593_v61 = vld [vmem:[#allocation3 + $0x110] sm:$0xff] }
 0x251   :  { %5130 = vmatpush3.msra.mxu1 %v2508_v39  ;;  %5185 = vmatprep.subr.mxu0 %v2701_v58  ;;  %v6622_v6 = vld [vmem:[#allocation3 + $0x72] sm:$0xff]  ;;  %v6624_v39 = vld [vmem:[#allocation3 + $0x80] sm:$0xff] }
 0x252   :  { %5131 = vmatprep.subr.mxu1 %v2507_v31  ;;  %5186 = vmatpush3.msra.mxu0 %v2701_v58  ;;  %v2898_v58 = vld [vmem:[#allocation9 + $0x240] sm:$0xff] }
 0x253   :  { %5046 = vmatmul.mubr.f32.gmra.mxu1 %v6553_v38  ;;  %5102 = vmatmul.mubr.f32.gmra.mxu0 %v6585_v21 }
 0x254   :  { %5132 = vmatpush3.msra.mxu1 %v2507_v31  ;;  %5187 = vmatprep.subr.mxu0 %v2700_v10  ;;  %v3091_v31 = vld [vmem:[#allocation9 + $0x2c0] sm:$0xff] }
 0x255   :  { %5048 = vmatprep.mubr.f32.mxu1 %v6547_v2  ;;  %5104 = vmatprep.mubr.f32.mxu0 %v6589_v56 }
 0x256   :  { %5133 = vmatprep.subr.mxu1 %v2506_v54  ;;  %5188 = vmatpush3.msra.mxu0 %v2700_v10  ;;  %v2496_v10 = vld [vmem:[#allocation3 + $0xa2] sm:$0xff] }
 0x257   :  { %5134 = vmatpush3.msra.mxu1 %v2506_v54  ;;  %5189 = vmatprep.subr.mxu0 %v2699_v50  ;;  %v2897_v54 = vld [vmem:[#allocation9 + $0x238] sm:$0xff] }
 0x258   :  { %5135 = vmatprep.subr.mxu1 %v2505_v16  ;;  %5190 = vmatpush3.msra.mxu0 %v2699_v50  ;;  %v3090_v50 = vld [vmem:[#allocation9 + $0x2b8] sm:$0xff] }
 0x259   :  { %5049 = vmatmul.mubr.f32.gmra.mxu1 %v6568_v37  ;;  %5105 = vmatmul.mubr.f32.gmra.mxu0 %v6593_v61 }
 0x25a   :  { %5136 = vmatpush3.msra.mxu1 %v2505_v16  ;;  %5191 = vmatprep.subr.mxu0 %v2698_v18  ;;  %v6629_v16 = vld [vmem:[#allocation3 + $0xb2] sm:$0xff] }
 0x25b   :  { %5137 = vmatprep.subr.mxu1 %v2504_v53  ;;  %5192 = vmatpush3.msra.mxu0 %v2698_v18  ;;  %v2896_v18 = vld [vmem:[#allocation9 + $0x230] sm:$0xff] }
 0x25c   :  { %5195 = vmatprep.mubr.f32.mxu0 %v6488_v32  ;;  %5138 = vmatpush3.msra.mxu1 %v2504_v53  ;;  %v2903_v32 = vld [vmem:[#allocation9 + $0x268] sm:$0xff] }
 0x25d   :  { %5193 = vmatprep.subr.mxu0 %v2697_v26  ;;  %5139 = vmatprep.mubr.f32.mxu1 %v2488_v55  ;;  %v6633_v53 = vld [vmem:[#allocation3 + $0xc2] sm:$0xff] }
 0x25e   :  { %5194 = vmatpush3.msra.mxu0 %v2697_v26  ;;  %5219 = vmatprep.subr.mxu1 %v2905_v47  ;;  %v2895_v26 = vld [vmem:[#allocation9 + $0x228] sm:$0xff] }
 0x25f   :  { %5140 = vmatmul.mubr.f32.vlgmr.msra.gmra.mxu1 %v6598_v13  ;;  %5196 = vmatmul.mubr.f32.vlgmr.msra.gmra.mxu0 %v6495_v45  ;;  %v3088_v55 = vld [vmem:[#allocation9 + $0x2a8] sm:$0xff] }
 0x260   :  { %5220 = vmatpush3.msra.mxu1 %v2905_v47  ;;  %5275 = vmatprep.subr.mxu0 %v3098_v42  ;;  %v6637_v47 = vld [vmem:[#allocation3 + $0xd2] sm:$0xff] }
 0x261   :  { %5142 = vmatprep.mubr.f32.mxu1 %v6602_v23  ;;  %5198 = vmatprep.mubr.f32.mxu0 %v6511_v51 }
 0x262   :  { %5221 = vmatprep.subr.mxu1 %v2904_v40  ;;  %5276 = vmatpush3.msra.mxu0 %v3098_v42  ;;  %v2894_v42 = vld [vmem:[#allocation9 + $0x220] sm:$0xff] }
 0x263   :  { %5222 = vmatpush3.msra.mxu1 %v2904_v40  ;;  %5277 = vmatprep.subr.mxu0 %v3097_v0  ;;  %v6641_v40 = vld [vmem:[#allocation3 + $0xe2] sm:$0xff] }
 0x264   :  { %5223 = vmatprep.subr.mxu1 %v2903_v32  ;;  %5278 = vmatpush3.msra.mxu0 %v3097_v0  ;;  %v3087_v0 = vld [vmem:[#allocation9 + $0x2a0] sm:$0xff] }
 0x265   :  { %5143 = vmatmul.mubr.f32.gmra.mxu1 %v6606_v27  ;;  %5199 = vmatmul.mubr.f32.gmra.mxu0 %v6519_v36 }
 0x266   :  { %5224 = vmatpush3.msra.mxu1 %v2903_v32  ;;  %5279 = vmatprep.subr.mxu0 %v3096_v19  ;;  %v2893_v32 = vld [vmem:[#allocation9 + $0x218] sm:$0xff] }
 0x267   :  { %5145 = vmatprep.mubr.f32.mxu1 %v6610_v14  ;;  %5201 = vmatprep.mubr.f32.mxu0 %v6529_v7 }
 0x268   :  { %5225 = vmatprep.subr.mxu1 %v2902_v3  ;;  %5280 = vmatpush3.msra.mxu0 %v3096_v19  ;;  %v3086_v19 = vld [vmem:[#allocation9 + $0x298] sm:$0xff] }
 0x269   :  { %5226 = vmatpush3.msra.mxu1 %v2902_v3  ;;  %5281 = vmatprep.subr.mxu0 %v3095_v52  ;;  %v6645_v3 = vld [vmem:[#allocation3 + $0xf2] sm:$0xff] }
 0x26a   :  { %5227 = vmatprep.subr.mxu1 %v2901_v4  ;;  %5282 = vmatpush3.msra.mxu0 %v3095_v52  ;;  %v2892_v52 = vld [vmem:[#allocation9 + $0x210] sm:$0xff] }
 0x26b   :  { %5146 = vmatmul.mubr.f32.gmra.mxu1 %v6614_v34  ;;  %5202 = vmatmul.mubr.f32.gmra.mxu0 %v6537_v48 }
 0x26c   :  { %5228 = vmatpush3.msra.mxu1 %v2901_v4  ;;  %5283 = vmatprep.subr.mxu0 %v3094_v49  ;;  %v6649_v4 = vld [vmem:[#allocation3 + $0x102] sm:$0xff] }
 0x26d   :  { %5148 = vmatprep.mubr.f32.mxu1 %v6618_v25  ;;  %5204 = vmatprep.mubr.f32.mxu0 %v6544_v60 }
 0x26e   :  { %5229 = vmatprep.subr.mxu1 %v2900_v46  ;;  %5284 = vmatpush3.msra.mxu0 %v3094_v49  ;;  %v3085_v49 = vld [vmem:[#allocation9 + $0x290] sm:$0xff] }
 0x26f   :  { %5230 = vmatpush3.msra.mxu1 %v2900_v46  ;;  %5285 = vmatprep.subr.mxu0 %v3093_v62  ;;  %v2891_v46 = vld [vmem:[#allocation9 + $0x208] sm:$0xff] }
 0x270   :  { %5231 = vmatprep.subr.mxu1 %v2899_v9  ;;  %5286 = vmatpush3.msra.mxu0 %v3093_v62  ;;  %v3084_v62 = vld [vmem:[#allocation9 + $0x288] sm:$0xff] }
 0x271   :  { %5149 = vmatmul.mubr.f32.gmra.mxu1 %v6622_v6  ;;  %5205 = vmatmul.mubr.f32.gmra.mxu0 %v6624_v39 }
 0x272   :  { %5232 = vmatpush3.msra.mxu1 %v2899_v9  ;;  %5287 = vmatprep.subr.mxu0 %v3092_v29  ;;  %v6653_v9 = vld [vmem:[#allocation3 + $0x112] sm:$0xff] }
 0x273   :  { %5207 = vmatprep.mubr.f32.mxu0 %v6558_v17  ;;  %5233 = vmatprep.subr.mxu1 %v2898_v58  ;;  %v3089_v17 = vld [vmem:[#allocation9 + $0x2b0] sm:$0xff] }
 0x274   :  { %5288 = vmatpush3.msra.mxu0 %v3092_v29  ;;  %5234 = vmatpush3.msra.mxu1 %v2898_v58  ;;  %v6655_v29 = vld [vmem:[#allocation3 + $0x120] sm:$0xff] }
 0x275   :  { %5289 = vmatprep.subr.mxu0 %v3091_v31  ;;  %5151 = vmatprep.mubr.f32.mxu1 %v2496_v10  ;;  %v2890_v58 = vld [vmem:[#allocation9 + $0x200] sm:$0xff]  ;;  %v3292_v10 = vld [vmem:[#allocation9 + $0x378] sm:$0xff] }
 0x276   :  { %5235 = vmatprep.subr.mxu1 %v2897_v54  ;;  %5290 = vmatpush3.msra.mxu0 %v3091_v31  ;;  %v3083_v31 = vld [vmem:[#allocation9 + $0x280] sm:$0xff] }
 0x277   :  { %5152 = vmatmul.mubr.f32.gmra.mxu1 %v6629_v16  ;;  %5208 = vmatmul.mubr.f32.gmra.mxu0 %v6572_v57 }
 0x278   :  { %5236 = vmatpush3.msra.mxu1 %v2897_v54  ;;  %5291 = vmatprep.subr.mxu0 %v3090_v50  ;;  %v3485_v54 = vld [vmem:[#allocation9 + $0x3f8] sm:$0xff] }
 0x279   :  { %5154 = vmatprep.mubr.f32.mxu1 %v6633_v53  ;;  %5210 = vmatprep.mubr.f32.mxu0 %v6577_v15 }
 0x27a   :  { %5237 = vmatprep.subr.mxu1 %v2896_v18  ;;  %5292 = vmatpush3.msra.mxu0 %v3090_v50  ;;  %v3291_v50 = vld [vmem:[#allocation9 + $0x370] sm:$0xff] }
 0x27b   :  { %5238 = vmatpush3.msra.mxu1 %v2896_v18  ;;  %5293 = vmatprep.subr.mxu0 %v3089_v17  ;;  %v3484_v18 = vld [vmem:[#allocation9 + $0x3f0] sm:$0xff] }
 0x27c   :  { %5239 = vmatprep.subr.mxu1 %v2895_v26  ;;  %5294 = vmatpush3.msra.mxu0 %v3089_v17  ;;  %v3482_v17 = vld [vmem:[#allocation9 + $0x3e0] sm:$0xff] }
 0x27d   :  { %5155 = vmatmul.mubr.f32.gmra.mxu1 %v6637_v47  ;;  %5211 = vmatmul.mubr.f32.gmra.mxu0 %v6581_v12 }
 0x27e   :  { %5240 = vmatpush3.msra.mxu1 %v2895_v26  ;;  %5295 = vmatprep.subr.mxu0 %v3088_v55  ;;  %v3481_v26 = vld [vmem:[#allocation9 + $0x3d8] sm:$0xff] }
 0x27f   :  { %5157 = vmatprep.mubr.f32.mxu1 %v6641_v40  ;;  %5213 = vmatprep.mubr.f32.mxu0 %v6585_v21 }
 0x280   :  { %5241 = vmatprep.subr.mxu1 %v2894_v42  ;;  %5296 = vmatpush3.msra.mxu0 %v3088_v55  ;;  %v3480_v55 = vld [vmem:[#allocation9 + $0x3d0] sm:$0xff] }
 0x281   :  { %5242 = vmatpush3.msra.mxu1 %v2894_v42  ;;  %5297 = vmatprep.subr.mxu0 %v3087_v0  ;;  %v3479_v42 = vld [vmem:[#allocation9 + $0x3c8] sm:$0xff] }
 0x282   :  { %5243 = vmatprep.subr.mxu1 %v2893_v32  ;;  %5298 = vmatpush3.msra.mxu0 %v3087_v0  ;;  %v6673_v0 = vld [vmem:[#allocation3 + $0x82] sm:$0xff] }
 0x283   :  { %5158 = vmatmul.mubr.f32.gmra.mxu1 %v6645_v3  ;;  %5214 = vmatmul.mubr.f32.gmra.mxu0 %v6589_v56 }
 0x284   :  { %5244 = vmatpush3.msra.mxu1 %v2893_v32  ;;  %5299 = vmatprep.subr.mxu0 %v3086_v19  ;;  %v3284_v32 = vld [vmem:[#allocation9 + $0x338] sm:$0xff] }
 0x285   :  { %5160 = vmatprep.mubr.f32.mxu1 %v6649_v4  ;;  %5216 = vmatprep.mubr.f32.mxu0 %v6593_v61 }
 0x286   :  { %5245 = vmatprep.subr.mxu1 %v2892_v52  ;;  %5300 = vmatpush3.msra.mxu0 %v3086_v19  ;;  %v3477_v19 = vld [vmem:[#allocation9 + $0x3b8] sm:$0xff] }
 0x287   :  { %5246 = vmatpush3.msra.mxu1 %v2892_v52  ;;  %5301 = vmatprep.subr.mxu0 %v3085_v49  ;;  %v3474_v52 = vld [vmem:[#allocation9 + $0x3a0] sm:$0xff] }
 0x288   :  { %5247 = vmatprep.subr.mxu1 %v2891_v46  ;;  %5302 = vmatpush3.msra.mxu0 %v3085_v49  ;;  %v3473_v49 = vld [vmem:[#allocation9 + $0x398] sm:$0xff] }
 0x289   :  { %5161 = vmatmul.mubr.f32.gmra.mxu1 %v6653_v9  ;;  %5217 = vmatmul.mubr.f32.gmra.mxu0 %v6655_v29 }
 0x28a   :  { %5248 = vmatpush3.msra.mxu1 %v2891_v46  ;;  %5303 = vmatprep.subr.mxu0 %v3084_v62  ;;  %v3472_v46 = vld [vmem:[#allocation9 + $0x390] sm:$0xff] }
 0x28b   :  { %5249 = vmatprep.subr.mxu1 %v2890_v58  ;;  %5251 = vmatprep.mubr.f32.mxu1 %v6434_v30  ;;  %v3290_v30 = vld [vmem:[#allocation9 + $0x368] sm:$0xff] }
 0x28c   :  { %5304 = vmatpush3.msra.mxu0 %v3084_v62  ;;  %5307 = vmatprep.mubr.f32.mxu0 %v6598_v13  ;;  %v3483_v13 = vld [vmem:[#allocation9 + $0x3e8] sm:$0xff] }
 0x28d   :  { %5250 = vmatpush3.msra.mxu1 %v2890_v58  ;;  %5305 = vmatprep.subr.mxu0 %v3083_v31  ;;  %v3471_v62 = vld [vmem:[#allocation9 + $0x388] sm:$0xff] }
 0x28e   :  { %5306 = vmatpush3.msra.mxu0 %v3083_v31  ;;  %5331 = vmatprep.subr.mxu1 %v3292_v10  ;;  %v6692_v58 = vld [vmem:[#allocation3 + $0x122] sm:$0xff] }
 0x28f   :  { %5252 = vmatmul.mubr.f32.vlgmr.msra.gmra.mxu1 %v6425_v8  ;;  %5308 = vmatmul.mubr.f32.vlgmr.msra.gmra.mxu0 %v6602_v23  ;;  %v3289_v8 = vld [vmem:[#allocation9 + $0x360] sm:$0xff] }
 0x290   :  { %5332 = vmatpush3.msra.mxu1 %v3292_v10  ;;  %5387 = vmatprep.subr.mxu0 %v3485_v54  ;;  %v3470_v31 = vld [vmem:[#allocation9 + $0x380] sm:$0xff] }
 0x291   :  { %5254 = vmatprep.mubr.f32.mxu1 %v6457_v59  ;;  %5310 = vmatprep.mubr.f32.mxu0 %v6606_v27  ;;  %v3288_v59 = vld [vmem:[#allocation9 + $0x358] sm:$0xff]  ;;  %v3454_v10 = vld [vmem:[#allocation3 + $0x21] sm:$0xff] }
 0x292   :  { %5333 = vmatprep.subr.mxu1 %v3291_v50  ;;  %5388 = vmatpush3.msra.mxu0 %v3485_v54  ;;  %v3678_v54 = vld [vmem:[#allocation9 + $0x478] sm:$0xff] }
 0x293   :  { %5334 = vmatpush3.msra.mxu1 %v3291_v50  ;;  %5389 = vmatprep.subr.mxu0 %v3484_v18  ;;  %v3455_v50 = vld [vmem:[#allocation3 + $0x31] sm:$0xff] }
 0x294   :  { %5335 = vmatprep.subr.mxu1 %v3290_v30  ;;  %5390 = vmatpush3.msra.mxu0 %v3484_v18  ;;  %v3677_v18 = vld [vmem:[#allocation9 + $0x470] sm:$0xff] }
 0x295   :  { %5255 = vmatmul.mubr.f32.gmra.mxu1 %v6446_v5  ;;  %5311 = vmatmul.mubr.f32.gmra.mxu0 %v6610_v14  ;;  %v3287_v5 = vld [vmem:[#allocation9 + $0x350] sm:$0xff] }
 0x296   :  { %5336 = vmatpush3.msra.mxu1 %v3290_v30  ;;  %5391 = vmatprep.subr.mxu0 %v3483_v13  ;;  %v3675_v30 = vld [vmem:[#allocation9 + $0x460] sm:$0xff] }
 0x297   :  { %5257 = vmatprep.mubr.f32.mxu1 %v6479_v41  ;;  %5313 = vmatprep.mubr.f32.mxu0 %v6614_v34  ;;  %v3286_v41 = vld [vmem:[#allocation9 + $0x348] sm:$0xff] }
 0x298   :  { %5337 = vmatprep.subr.mxu1 %v3289_v8  ;;  %5392 = vmatpush3.msra.mxu0 %v3483_v13  ;;  %v3458_v13 = vld [vmem:[#allocation3 + $0x61] sm:$0xff] }
 0x299   :  { %5338 = vmatpush3.msra.mxu1 %v3289_v8  ;;  %5393 = vmatprep.subr.mxu0 %v3482_v17  ;;  %v3673_v8 = vld [vmem:[#allocation9 + $0x450] sm:$0xff] }
 0x29a   :  { %5339 = vmatprep.subr.mxu1 %v3288_v59  ;;  %5394 = vmatpush3.msra.mxu0 %v3482_v17  ;;  %v3460_v17 = vld [vmem:[#allocation3 + $0x81] sm:$0xff] }
 0x29b   :  { %5258 = vmatmul.mubr.f32.gmra.mxu1 %v6469_v33  ;;  %5314 = vmatmul.mubr.f32.gmra.mxu0 %v6618_v25  ;;  %v3285_v33 = vld [vmem:[#allocation9 + $0x340] sm:$0xff] }
 0x29c   :  { %5340 = vmatpush3.msra.mxu1 %v3288_v59  ;;  %5395 = vmatprep.subr.mxu0 %v3481_v26  ;;  %v3461_v59 = vld [vmem:[#allocation3 + $0x91] sm:$0xff] }
 0x29d   :  { %5260 = vmatprep.mubr.f32.mxu1 %v6505_v43  ;;  %5316 = vmatprep.mubr.f32.mxu0 %v6622_v6  ;;  %v3478_v43 = vld [vmem:[#allocation9 + $0x3c0] sm:$0xff] }
 0x29e   :  { %5341 = vmatprep.subr.mxu1 %v3287_v5  ;;  %5396 = vmatpush3.msra.mxu0 %v3481_v26  ;;  %v3462_v26 = vld [vmem:[#allocation3 + $0xc1] sm:$0xff] }
 0x29f   :  { %5342 = vmatpush3.msra.mxu1 %v3287_v5  ;;  %5397 = vmatprep.subr.mxu0 %v3480_v55  ;;  %v3669_v5 = vld [vmem:[#allocation9 + $0x430] sm:$0xff] }
 0x2a0   :  { %5343 = vmatprep.subr.mxu1 %v3286_v41  ;;  %5398 = vmatpush3.msra.mxu0 %v3480_v55  ;;  %v3464_v55 = vld [vmem:[#allocation3 + $0xe1] sm:$0xff] }
 0x2a1   :  { %5261 = vmatmul.mubr.f32.gmra.mxu1 %v2108_v28  ;;  %5317 = vmatmul.mubr.f32.gmra.mxu0 %v6673_v0  ;;  %v3476_v28 = vld [vmem:[#allocation9 + $0x3b0] sm:$0xff] }
 0x2a2   :  { %5344 = vmatpush3.msra.mxu1 %v3286_v41  ;;  %5399 = vmatprep.subr.mxu0 %v3479_v42  ;;  %v3668_v41 = vld [vmem:[#allocation9 + $0x428] sm:$0xff] }
 0x2a3   :  { %5263 = vmatprep.mubr.f32.mxu1 %v6525_v11  ;;  %5319 = vmatprep.mubr.f32.mxu0 %v6629_v16  ;;  %v3282_v11 = vld [vmem:[#allocation9 + $0x328] sm:$0xff] }
 0x2a4   :  { %5345 = vmatprep.subr.mxu1 %v3285_v33  ;;  %5400 = vmatpush3.msra.mxu0 %v3479_v42  ;;  %v3475_v16 = vld [vmem:[#allocation9 + $0x3a8] sm:$0xff]  ;;  %v3667_v42 = vld [vmem:[#allocation9 + $0x420] sm:$0xff] }
 0x2a5   :  { %5346 = vmatpush3.msra.mxu1 %v3285_v33  ;;  %5401 = vmatprep.subr.mxu0 %v3478_v43  ;;  %v3466_v33 = vld [vmem:[#allocation3 + $0x101] sm:$0xff] }
 0x2a6   :  { %5347 = vmatprep.subr.mxu1 %v3284_v32  ;;  %5402 = vmatpush3.msra.mxu0 %v3478_v43  ;;  %v3468_v43 = vld [vmem:[#allocation3 + $0x121] sm:$0xff] }
 0x2a7   :  { %5264 = vmatmul.mubr.f32.gmra.mxu1 %v6515_v20  ;;  %5320 = vmatmul.mubr.f32.gmra.mxu0 %v6633_v53  ;;  %v3281_v20 = vld [vmem:[#allocation9 + $0x320] sm:$0xff] }
 0x2a8   :  { %5348 = vmatpush3.msra.mxu1 %v3284_v32  ;;  %5403 = vmatprep.subr.mxu0 %v3477_v19  ;;  %v3663_v32 = vld [vmem:[#allocation9 + $0x400] sm:$0xff] }
 0x2a9   :  { %5266 = vmatprep.mubr.f32.mxu1 %v6541_v63  ;;  %5322 = vmatprep.mubr.f32.mxu0 %v6637_v47  ;;  %v3280_v63 = vld [vmem:[#allocation9 + $0x318] sm:$0xff] }
 0x2aa   :  { %5349 = vmatprep.subr.mxu1 %v3283_v1  ;;  %5404 = vmatpush3.msra.mxu0 %v3477_v19 }
 0x2ab   :  { %5350 = vmatpush3.msra.mxu1 %v3283_v1  ;;  %5405 = vmatprep.subr.mxu0 %v3476_v28 }
 0x2ac   :  { %5351 = vmatprep.subr.mxu1 %v3282_v11  ;;  %5406 = vmatpush3.msra.mxu0 %v3476_v28 }
 0x2ad   :  { %5267 = vmatmul.mubr.f32.gmra.mxu1 %v6533_v24  ;;  %5323 = vmatmul.mubr.f32.gmra.mxu0 %v6641_v40  ;;  %v3279_v24 = vld [vmem:[#allocation9 + $0x310] sm:$0xff] }
 0x2ae   :  { %5352 = vmatpush3.msra.mxu1 %v3282_v11  ;;  %5407 = vmatprep.subr.mxu0 %v3475_v16  ;;  %v3662_v11 = vld [vmem:[#allocation3 + $0x132] sm:$0xff] }
 0x2af   :  { %5269 = vmatprep.mubr.f32.mxu1 %v6553_v38  ;;  %5325 = vmatprep.mubr.f32.mxu0 %v6645_v3  ;;  %v3278_v38 = vld [vmem:[#allocation9 + $0x308] sm:$0xff] }
 0x2b0   :  { %5353 = vmatprep.subr.mxu1 %v3281_v20  ;;  %5408 = vmatpush3.msra.mxu0 %v3475_v16 }
 0x2b1   :  { %5354 = vmatpush3.msra.mxu1 %v3281_v20  ;;  %5409 = vmatprep.subr.mxu0 %v3474_v52 }
 0x2b2   :  { %5355 = vmatprep.subr.mxu1 %v3280_v63  ;;  %5410 = vmatpush3.msra.mxu0 %v3474_v52 }
 0x2b3   :  { %5270 = vmatmul.mubr.f32.gmra.mxu1 %v6547_v2  ;;  %5326 = vmatmul.mubr.f32.gmra.mxu0 %v6649_v4  ;;  %v3277_v2 = vld [vmem:[#allocation9 + $0x300] sm:$0xff] }
 0x2b4   :  { %5356 = vmatpush3.msra.mxu1 %v3280_v63  ;;  %5411 = vmatprep.subr.mxu0 %v3473_v49 }
 0x2b5   :  { %5272 = vmatprep.mubr.f32.mxu1 %v6568_v37  ;;  %5328 = vmatprep.mubr.f32.mxu0 %v6653_v9 }
 0x2b6   :  { %5357 = vmatprep.subr.mxu1 %v3279_v24  ;;  %5412 = vmatpush3.msra.mxu0 %v3473_v49 }
 0x2b7   :  { %5358 = vmatpush3.msra.mxu1 %v3279_v24  ;;  %5413 = vmatprep.subr.mxu0 %v3472_v46 }
 0x2b8   :  { %5359 = vmatprep.subr.mxu1 %v3278_v38  ;;  %5414 = vmatpush3.msra.mxu0 %v3472_v46 }
 0x2b9   :  { %5273 = vmatmul.mubr.f32.gmra.mxu1 %v2116_v35  ;;  %5329 = vmatmul.mubr.f32.gmra.mxu0 %v6692_v58  ;;  %v3676_v35 = vld [vmem:[#allocation9 + $0x468] sm:$0xff] }
 0x2ba   :  { %5360 = vmatpush3.msra.mxu1 %v3278_v38  ;;  %5415 = vmatprep.subr.mxu0 %v3471_v62 }
 0x2bb   :  { %5361 = vmatprep.subr.mxu1 %v3277_v2  ;;  %5363 = vmatprep.mubr.f32.mxu1 %v6495_v45  ;;  %v3457_v45 = vld [vmem:[#allocation3 + $0x51] sm:$0xff] }
 0x2bc   :  { %5416 = vmatpush3.msra.mxu0 %v3471_v62  ;;  %5419 = vmatprep.mubr.f32.mxu0 %v3454_v10 }
 0x2bd   :  { %5362 = vmatpush3.msra.mxu1 %v3277_v2  ;;  %5417 = vmatprep.subr.mxu0 %v3470_v31 }
 0x2be   :  { %5418 = vmatpush3.msra.mxu0 %v3470_v31  ;;  %5443 = vmatprep.subr.mxu1 %v3678_v54 }
 0x2bf   :  { %5364 = vmatmul.mubr.f32.vlgmr.msra.gmra.mxu1 %v6511_v51  ;;  %5420 = vmatmul.mubr.f32.vlgmr.msra.gmra.mxu0 %v3455_v50  ;;  %v3674_v51 = vld [vmem:[#allocation9 + $0x458] sm:$0xff] }
 0x2c0   :  { %5444 = vmatpush3.msra.mxu1 %v3678_v54  ;;  %5366 = vmatprep.mubr.f32.mxu1 %v6519_v36  ;;  %v3459_v36 = vld [vmem:[#allocation3 + $0x71] sm:$0xff] }
 0x2c1   :  { %5422 = vmatprep.mubr.f32.mxu0 %v3456_v44  ;;  %5445 = vmatprep.subr.mxu1 %v3677_v18 }
 0x2c2   :  { %5446 = vmatpush3.msra.mxu1 %v3677_v18 }
 0x2c3   :  { %5447 = vmatprep.subr.mxu1 %v3676_v35  ;;  %5367 = vmatmul.mubr.f32.gmra.mxu1 %v6529_v7  ;;  %v3672_v7 = vld [vmem:[#allocation9 + $0x448] sm:$0xff] }
 0x2c4   :  { %5423 = vmatmul.mubr.f32.gmra.mxu0 %v3457_v45  ;;  %5448 = vmatpush3.msra.mxu1 %v3676_v35 }
 0x2c5   :  { %5369 = vmatprep.mubr.f32.mxu1 %v6537_v48  ;;  %5425 = vmatprep.mubr.f32.mxu0 %v3458_v13  ;;  %v3671_v48 = vld [vmem:[#allocation9 + $0x440] sm:$0xff] }
 0x2c6   :  { %5449 = vmatprep.subr.mxu1 %v3675_v30 }
 0x2c7   :  { %5450 = vmatpush3.msra.mxu1 %v3675_v30 }
 0x2c8   :  { %5451 = vmatprep.subr.mxu1 %v3674_v51  ;;  %5370 = vmatmul.mubr.f32.gmra.mxu1 %v6544_v60  ;;  %v3670_v60 = vld [vmem:[#allocation9 + $0x438] sm:$0xff] }
 0x2c9   :  { %5426 = vmatmul.mubr.f32.gmra.mxu0 %v3459_v36  ;;  %5452 = vmatpush3.msra.mxu1 %v3674_v51 }
 0x2ca   :  { %5372 = vmatprep.mubr.f32.mxu1 %v6624_v39  ;;  %5428 = vmatprep.mubr.f32.mxu0 %v3460_v17  ;;  %v3463_v39 = vld [vmem:[#allocation3 + $0xd1] sm:$0xff] }
 0x2cb   :  { %5453 = vmatprep.subr.mxu1 %v3673_v8 }
 0x2cc   :  { %5454 = vmatpush3.msra.mxu1 %v3673_v8 }
 0x2cd   :  { %5455 = vmatprep.subr.mxu1 %v3672_v7  ;;  %5373 = vmatmul.mubr.f32.gmra.mxu1 %v6563_v22 }
 0x2ce   :  { %5429 = vmatmul.mubr.f32.gmra.mxu0 %v3461_v59  ;;  %5456 = vmatpush3.msra.mxu1 %v3672_v7 }
 0x2cf   :  { %5375 = vmatprep.mubr.f32.mxu1 %v6572_v57  ;;  %5431 = vmatprep.mubr.f32.mxu0 %v3462_v26  ;;  %v3465_v57 = vld [vmem:[#allocation3 + $0xf1] sm:$0xff] }
 0x2d0   :  { %5457 = vmatprep.subr.mxu1 %v3671_v48 }
 0x2d1   :  { %5458 = vmatpush3.msra.mxu1 %v3671_v48 }
 0x2d2   :  { %5459 = vmatprep.subr.mxu1 %v3670_v60  ;;  %5376 = vmatmul.mubr.f32.gmra.mxu1 %v6577_v15  ;;  %v3666_v15 = vld [vmem:[#allocation9 + $0x418] sm:$0xff] }
 0x2d3   :  { %5432 = vmatmul.mubr.f32.gmra.mxu0 %v3463_v39  ;;  %5460 = vmatpush3.msra.mxu1 %v3670_v60 }
 0x2d4   :  { %5378 = vmatprep.mubr.f32.mxu1 %v6581_v12  ;;  %5434 = vmatprep.mubr.f32.mxu0 %v3464_v55  ;;  %v3665_v12 = vld [vmem:[#allocation9 + $0x410] sm:$0xff] }
 0x2d5   :  { %5461 = vmatprep.subr.mxu1 %v3669_v5 }
 0x2d6   :  { %5462 = vmatpush3.msra.mxu1 %v3669_v5 }
 0x2d7   :  { %5463 = vmatprep.subr.mxu1 %v3668_v41  ;;  %5379 = vmatmul.mubr.f32.gmra.mxu1 %v6585_v21  ;;  %v3664_v21 = vld [vmem:[#allocation9 + $0x408] sm:$0xff] }
 0x2d8   :  { %5435 = vmatmul.mubr.f32.gmra.mxu0 %v3465_v57  ;;  %5464 = vmatpush3.msra.mxu1 %v3668_v41 }
 0x2d9   :  { %5381 = vmatprep.mubr.f32.mxu1 %v6589_v56  ;;  %5437 = vmatprep.mubr.f32.mxu0 %v3466_v33  ;;  %v3469_v56 = vld [vmem:[#allocation3 + $0x131] sm:$0xff] }
 0x2da   :  { %5465 = vmatprep.subr.mxu1 %v3667_v42 }
 0x2db   :  { %5466 = vmatpush3.msra.mxu1 %v3667_v42 }
 0x2dc   :  { %5467 = vmatprep.subr.mxu1 %v3666_v15  ;;  %5382 = vmatmul.mubr.f32.gmra.mxu1 %v6593_v61 }
 0x2dd   :  { %5438 = vmatmul.mubr.f32.gmra.mxu0 %v6568_v37  ;;  %5468 = vmatpush3.msra.mxu1 %v3666_v15 }
 0x2de   :  { %5384 = vmatprep.mubr.f32.mxu1 %v6655_v29  ;;  %5440 = vmatprep.mubr.f32.mxu0 %v3468_v43 }
 0x2df   :  { %5469 = vmatprep.subr.mxu1 %v3665_v12 }
 0x2e0   :  { %5470 = vmatpush3.msra.mxu1 %v3665_v12 }
 0x2e1   :  { %5471 = vmatprep.subr.mxu1 %v3664_v21  ;;  %5385 = vmatmul.mubr.f32.gmra.mxu1 %v6563_v22  ;;  %v3654_v22 = vld [vmem:[#allocation3 + $0x92] sm:$0xff] }
 0x2e2   :  { %5472 = vmatpush3.msra.mxu1 %v3664_v21  ;;  %5475 = vmatprep.mubr.f32.mxu1 %v6602_v23 }
 0x2e3   :  { %5473 = vmatprep.subr.mxu1 %v3663_v32  ;;  %5441 = vmatmul.mubr.f32.gmra.mxu0 %v3469_v56 }
 0x2e4   :  { %5474 = vmatpush3.msra.mxu1 %v3663_v32 }
 0x2e5   :  { %5476 = vmatmul.mubr.f32.vlgmr.msra.gmra.mxu1 %v6606_v27 }
 0x2e6   :  { %5478 = vmatprep.mubr.f32.mxu1 %v6610_v14 }
 0x2e9   :  { %5479 = vmatmul.mubr.f32.gmra.mxu1 %v6614_v34 }
 0x2ea   :  { %5481 = vmatprep.mubr.f32.mxu1 %v6618_v25 }
 0x2ed   :  { %5482 = vmatmul.mubr.f32.gmra.mxu1 %v6622_v6  ;;  %v5029_v37 = vpop.f32.mrf.mxu1 }
 0x2ee   :  { %5484 = vmatprep.mubr.f32.mxu1 %v6673_v0 }
 0x2ef   :  { %v2264_v61 = vpop.f32.mrf.mxu1 }
 0x2f1   :  { %5485 = vmatmul.mubr.f32.gmra.mxu1 %v3654_v22  ;;  %v5032_v23 = vpop.f32.mrf.mxu1 }
 0x2f2   :  { %5487 = vmatprep.mubr.f32.mxu1 %v6633_v53 }
 0x2f3   :  { %v2274_v29 = vpop.f32.mrf.mxu1 }
 0x2f5   :  { %5488 = vmatmul.mubr.f32.gmra.mxu1 %v6637_v47  ;;  %v5085_v27 = vpop.f32.mrf.mxu0 }
 0x2f6   :  { %5490 = vmatprep.mubr.f32.mxu1 %v6641_v40  ;;  %v2415_v14 = vadd.f32 %v5085_v27, %v5029_v37 }
 0x2f7   :  { %v2409_v34 = vpop.f32.mrf.mxu0  ;;  %v5035_v19 = vpop.f32.mrf.mxu1 }
 0x2f8   :  { %v2410_v25 = vadd.f32 %v2409_v34, %v2264_v61 }
 0x2f9   :  { %5491 = vmatmul.mubr.f32.gmra.mxu1 %v6645_v3  ;;  %v5088_v6 = vpop.f32.mrf.mxu0  ;;  %v2284_v47 = vpop.f32.mrf.mxu1 }
 0x2fa   :  { %5493 = vmatprep.mubr.f32.mxu1 %v6649_v4  ;;  %v2425_v0 = vadd.f32 %v5088_v6, %v5032_v23 }
 0x2fb   :  { %v2419_v1 = vpop.f32.mrf.mxu0 }
 0x2fc   :  { %v2420_v28 = vadd.f32 %v2419_v1, %v2274_v29 }
 0x2fd   :  { %5494 = vmatmul.mubr.f32.gmra.mxu1 %v6653_v9  ;;  %v5091_v53 = vpop.f32.mrf.mxu0 }
 0x2fe   :  { %5496 = vmatprep.mubr.f32.mxu1 %v6692_v58  ;;  %v2435_v40 = vadd.f32 %v5091_v53, %v5035_v19 }
 0x2ff   :  { %v2429_v16 = vpop.f32.mrf.mxu0 }
 0x300   :  { %v2430_v20 = vadd.f32 %v2429_v16, %v2284_v47 }
 0x301   :  { %5497 = vmatmul.mubr.f32.gmra.mxu1 %v3662_v11  ;;  %v5038_v52 = vpop.f32.mrf.mxu1  ;;  %v5094_v3 = vpop.f32.mrf.mxu0 }
 0x302   :  { %v2445_v63 = vadd.f32 %v5094_v3, %v5038_v52 }
 0x303   :  { %v2294_v49 = vpop.f32.mrf.mxu1  ;;  %v2439_v24 = vpop.f32.mrf.mxu0 }
 0x304   :  { %v2440_v4 = vadd.f32 %v2439_v24, %v2294_v49 }
 0x307   :  { %v5041_v46 = vpop.f32.mrf.mxu1  ;;  %v5097_v38 = vpop.f32.mrf.mxu0 }
 0x308   :  { %v2455_v62 = vadd.f32 %v5097_v38, %v5041_v46 }
 0x309   :  { %v2304_v2 = vpop.f32.mrf.mxu1  ;;  %v2449_v9 = vpop.f32.mrf.mxu0 }
 0x30a   :  { %v2450_v31 = vadd.f32 %v2449_v9, %v2304_v2 }
 0x30d   :  { %v5044_v10 = vpop.f32.mrf.mxu1  ;;  %v5100_v54 = vpop.f32.mrf.mxu0 }
 0x30e   :  { %v2465_v58 = vadd.f32 %v5100_v54, %v5044_v10 }
 0x30f   :  { %v2314_v50 = vpop.f32.mrf.mxu1  ;;  %v2459_v18 = vpop.f32.mrf.mxu0 }
 0x310   :  { %v2460_v44 = vadd.f32 %v2459_v18, %v2314_v50 }
 0x313   :  { %v5047_v35 = vpop.f32.mrf.mxu1  ;;  %v5103_v45 = vpop.f32.mrf.mxu0 }
 0x314   :  { %v2475_v30 = vadd.f32 %v5103_v45, %v5047_v35 }
 0x315   :  { %v2324_v13 = vpop.f32.mrf.mxu1  ;;  %v2469_v51 = vpop.f32.mrf.mxu0 }
 0x316   :  { %v2470_v36 = vadd.f32 %v2469_v51, %v2324_v13 }
 0x319   :  { %v5050_v8 = vpop.f32.mrf.mxu1  ;;  %v5106_v17 = vpop.f32.mrf.mxu0 }
 0x31a   :  { %v2485_v7 = vadd.f32 %v5106_v17, %v5050_v8 }
 0x31b   :  { %v2334_v59 = vpop.f32.mrf.mxu1  ;;  %v2479_v48 = vpop.f32.mrf.mxu0 }
 0x31c   :  { %v2480_v26 = vadd.f32 %v2479_v48, %v2334_v59 }
 0x31f   :  { %v5141_v60 = vpop.f32.mrf.mxu1  ;;  %v6728_v39 = vpop.f32.mrf.mxu0 }
 0x320   :  { %v6730_v5 = vadd.f32 %v5141_v60, %v2415_v14 }
 0x321   :  { %v2586_v55 = vpop.f32.mrf.mxu1  ;;  %v6732_v41 = vpop.f32.mrf.mxu0 }
 0x322   :  { %v6734_v57 = vadd.f32 %v2586_v55, %v2410_v25 }
 0x325   :  { %v5144_v42 = vpop.f32.mrf.mxu1  ;;  %v6736_v33 = vpop.f32.mrf.mxu0 }
 0x326   :  { %v6738_v15 = vadd.f32 %v5144_v42, %v2425_v0 }
 0x327   :  { %v2596_v12 = vpop.f32.mrf.mxu1  ;;  %v6740_v43 = vpop.f32.mrf.mxu0 }
 0x328   :  { %v6742_v21 = vadd.f32 %v2596_v12, %v2420_v28 }
 0x32b   :  { %v5147_v32 = vpop.f32.mrf.mxu1  ;;  %v6744_v56 = vpop.f32.mrf.mxu0 }
 0x32c   :  { %v6746_v37 = vadd.f32 %v5147_v32, %v2435_v40 }
 0x32d   :  { %v2606_v22 = vpop.f32.mrf.mxu1  ;;  %v6748_v61 = vpop.f32.mrf.mxu0 }
 0x32e   :  { %v6750_v23 = vadd.f32 %v2606_v22, %v2430_v20 }
 0x331   :  { %v5150_v27 = vpop.f32.mrf.mxu1  ;;  %v6752_v29 = vpop.f32.mrf.mxu0 }
 0x332   :  { %v6754_v14 = vadd.f32 %v5150_v27, %v2445_v63 }
 0x333   :  { %v2616_v34 = vpop.f32.mrf.mxu1  ;;  %v6756_v25 = vpop.f32.mrf.mxu0 }
 0x334   :  { %v6758_v6 = vadd.f32 %v2616_v34, %v2440_v4 }
 0x337   :  { %v5153_v19 = vpop.f32.mrf.mxu1  ;;  %v6760_v0 = vpop.f32.mrf.mxu0 }
 0x338   :  { %v6762_v1 = vadd.f32 %v5153_v19, %v2455_v62 }
 0x339   :  { %v2626_v28 = vpop.f32.mrf.mxu1  ;;  %v6764_v53 = vpop.f32.mrf.mxu0 }
 0x33a   :  { %v6766_v47 = vadd.f32 %v2626_v28, %v2450_v31 }
 0x33d   :  { %v5156_v11 = vpop.f32.mrf.mxu1  ;;  %v6768_v40 = vpop.f32.mrf.mxu0 }
 0x33e   :  { %v6770_v16 = vadd.f32 %v5156_v11, %v2465_v58 }
 0x33f   :  { %v2636_v20 = vpop.f32.mrf.mxu1  ;;  %v6772_v52 = vpop.f32.mrf.mxu0 }
 0x340   :  { %7069 = vst [vmem:[#allocation16_spill] sm:$0xff] %v6772_v52  ;;  %v6774_v3 = vadd.f32 %v2636_v20, %v2460_v44  ;;  %v2858_v52 = vadd.f32 %v6732_v41, %v6734_v57 }
 0x342   :  { %7070 = vst [vmem:[#allocation17_spill] sm:$0xff] %v6774_v3 }
 0x343   :  { %v5159_v63 = vpop.f32.mrf.mxu1  ;;  %v6776_v49 = vpop.f32.mrf.mxu0 }
 0x344   :  { %7071 = vst [vmem:[#allocation47_spill] sm:$0xff] %v6776_v49  ;;  %v6778_v24 = vadd.f32 %v5159_v63, %v2475_v30 }
 0x345   :  { %v2646_v4 = vpop.f32.mrf.mxu1  ;;  %v6780_v46 = vpop.f32.mrf.mxu0 }
 0x346   :  { %7072 = vst [vmem:[#allocation21_spill] sm:$0xff] %v6778_v24  ;;  %7073 = vst [vmem:[#allocation27_spill] sm:$0xff] %v6780_v46  ;;  %v6782_v38 = vadd.f32 %v2646_v4, %v2470_v36 }
 0x348   :  { %7074 = vst [vmem:[#allocation29_spill] sm:$0xff] %v6782_v38 }
 0x349   :  { %v5162_v62 = vpop.f32.mrf.mxu1  ;;  %v6784_v2 = vpop.f32.mrf.mxu0 }
 0x34a   :  { %7075 = vst [vmem:[#allocation48_spill] sm:$0xff] %v6784_v2  ;;  %v6786_v9 = vadd.f32 %v5162_v62, %v2485_v7 }
 0x34b   :  { %v2656_v31 = vpop.f32.mrf.mxu1  ;;  %v6788_v10 = vpop.f32.mrf.mxu0 }
 0x34c   :  { %7076 = vst [vmem:[#allocation18_spill] sm:$0xff] %v6786_v9  ;;  %7077 = vst [vmem:[#allocation19_spill] sm:$0xff] %v6788_v10  ;;  %v6790_v54 = vadd.f32 %v2656_v31, %v2480_v26 }
 0x34e   :  { %7078 = vst [vmem:[#allocation20_spill] sm:$0xff] %v6790_v54 }
 0x34f   :  { %v5253_v58 = vpop.f32.mrf.mxu1  ;;  %v5309_v50 = vpop.f32.mrf.mxu0 }
 0x351   :  { %v2972_v18 = vpop.f32.mrf.mxu1  ;;  %v3165_v44 = vpop.f32.mrf.mxu0 }
 0x355   :  { %v5256_v35 = vpop.f32.mrf.mxu1  ;;  %v6792_v45 = vpop.f32.mrf.mxu0 }
 0x357   :  { %v2982_v30 = vpop.f32.mrf.mxu1  ;;  %v6794_v13 = vpop.f32.mrf.mxu0 }
 0x35b   :  { %v6796_v51 = vpop.f32.mrf.mxu1  ;;  %v6798_v36 = vpop.f32.mrf.mxu0 }
 0x35d   :  { %v6800_v8 = vpop.f32.mrf.mxu1  ;;  %v6802_v17 = vpop.f32.mrf.mxu0 }
 0x361   :  { %v6804_v7 = vpop.f32.mrf.mxu1  ;;  %v6806_v59 = vpop.f32.mrf.mxu0 }
 0x363   :  { %v6808_v48 = vpop.f32.mrf.mxu1  ;;  %v6810_v26 = vpop.f32.mrf.mxu0 }
 0x367   :  { %v6812_v60 = vpop.f32.mrf.mxu1  ;;  %v6814_v55 = vpop.f32.mrf.mxu0 }
 0x368   :  { %7079 = vst [vmem:[#allocation28_spill] sm:$0xff] %v6814_v55 }
 0x369   :  { %v6816_v42 = vpop.f32.mrf.mxu1  ;;  %v6818_v12 = vpop.f32.mrf.mxu0 }
 0x36a   :  { %7080 = vst [vmem:[#allocation31_spill] sm:$0xff] %v6816_v42  ;;  %7081 = vst [vmem:[#allocation49_spill] sm:$0xff] %v6818_v12 }
 0x36d   :  { %v6820_v32 = vpop.f32.mrf.mxu1  ;;  %v6822_v22 = vpop.f32.mrf.mxu0 }
 0x36e   :  { %7082 = vst [vmem:[#allocation52_spill] sm:$0xff] %v6820_v32  ;;  %7083 = vst [vmem:[#allocation22_spill] sm:$0xff] %v6822_v22  ;;  %v2859_v32 = vadd.f32 %v6728_v39, %v6730_v5 }
 0x36f   :  { %v6824_v27 = vpop.f32.mrf.mxu1  ;;  %v6826_v34 = vpop.f32.mrf.mxu0 }
 0x370   :  { %7084 = vst [vmem:[#allocation30_spill] sm:$0xff] %v6824_v27  ;;  %7085 = vst [vmem:[#allocation33_spill] sm:$0xff] %v6826_v34 }
 0x373   :  { %v6828_v19 = vpop.f32.mrf.mxu1  ;;  %v6830_v28 = vpop.f32.mrf.mxu0 }
 0x374   :  { %7086 = vst [vmem:[#allocation50_spill] sm:$0xff] %v6828_v19  ;;  %7087 = vst [vmem:[#allocation23_spill] sm:$0xff] %v6830_v28 }
 0x375   :  { %v6832_v11 = vpop.f32.mrf.mxu1  ;;  %v6834_v20 = vpop.f32.mrf.mxu0 }
 0x376   :  { %7088 = vst [vmem:[#allocation24_spill] sm:$0xff] %v6832_v11  ;;  %7089 = vst [vmem:[#allocation32_spill] sm:$0xff] %v6834_v20 }
 0x379   :  { %v6836_v63 = vpop.f32.mrf.mxu1  ;;  %v6838_v4 = vpop.f32.mrf.mxu0 }
 0x37a   :  { %7090 = vst [vmem:[#allocation35_spill] sm:$0xff] %v6836_v63  ;;  %7091 = vst [vmem:[#allocation51_spill] sm:$0xff] %v6838_v4 }
 0x37b   :  { %v6840_v62 = vpop.f32.mrf.mxu1  ;;  %v6842_v31 = vpop.f32.mrf.mxu0 }
 0x37c   :  { %7092 = vst [vmem:[#allocation34_spill] sm:$0xff] %v6840_v62  ;;  %7093 = vst [vmem:[#allocation37_spill] sm:$0xff] %v6842_v31 }
 0x37f   :  { %v5365_v10 = vpop.f32.mrf.mxu1  ;;  %v5421_v2 = vpop.f32.mrf.mxu0 }
 0x381   :  { %v3359_v54 = vpop.f32.mrf.mxu1  ;;  %v3552_v19 = vpop.f32.mrf.mxu0 }
 0x383   :  { %v5368_v9 = vpop.f32.mrf.mxu1 }
 0x384   :  { %v5424_v38 = vpop.f32.mrf.mxu0 }
 0x385   :  { %v3369_v34 = vpop.f32.mrf.mxu1 }
 0x386   :  { %v3562_v20 = vpop.f32.mrf.mxu0 }
 0x388   :  { %v5371_v46 = vpop.f32.mrf.mxu1 }
 0x389   :  { %v5427_v4 = vpop.f32.mrf.mxu0 }
 0x38a   :  { %v3379_v28 = vpop.f32.mrf.mxu1 }
 0x38b   :  { %v6852_v31 = vpop.f32.mrf.mxu0 }
 0x38d   :  { %v6844_v11 = vpop.f32.mrf.mxu1 }
 0x38e   :  { %v6858_v24 = vpop.f32.mrf.mxu0 }
 0x38f   :  { %v6846_v27 = vpop.f32.mrf.mxu1  ;;  %7099 = vst [vmem:[#allocation54_spill] sm:$0xff] %v6858_v24  ;;  %v2860_v24 = vadd.f32 %v6740_v43, %v6742_v21  ;;  %v2862_v43 = vadd.f32 %v6748_v61, %v6750_v23 }
 0x390   :  { %7094 = vst [vmem:[#allocation53_spill] sm:$0xff] %v6846_v27 }
 0x391   :  { %v3053_v55 = vadd.f32 %v2982_v30, %v2860_v24  ;;  %v6889_v24 = vld [vmem:[%s6981_s4] ss:$0 sm:$0xff]  ;;  %s5602_s4 = smov [#allocation10]  }
 0x392   :  { %v6848_v63 = vpop.f32.mrf.mxu1  ;;  %s3900_s11 = sshll.u32 %s5602_s4, 4  ;;  %s3901_s11 = int_to_ptr.vmem [resolvable:$true] %s3900_s11 }
 0x393   :  { %7095 = vst [vmem:[#allocation14_spill] sm:$0xff] %v6848_v63  ;;  %v3052_v63 = vadd.f32 %v5253_v58, %v2859_v32  ;;  %v2863_v58 = vadd.f32 %v6744_v56, %v6746_v37  ;;  %v3246_v21 = vadd.f32 %v6794_v13, %v3053_v55  ;;  %v2865_v37 = vadd.f32 %v6752_v29, %v6754_v14  ;;  %s5569_s12 = scalar_lea.vmem %s3901_s11, 2048  ;;  %p5574_p2 = scmp.lt.s32.totalorder %s3901_s11, %s3901_s11 }
 0x394   :  { %v6850_v62 = vpop.f32.mrf.mxu1  ;;  %v2864_v13 = vadd.f32 %v6756_v25, %v6758_v6  ;;  %p5570_p1 = scmp.ne.s32.totalorder %s3901_s11, %s5569_s12  ;;  %p5575_p3 = scmp.lt.s32.totalorder %s5569_s12, %s5569_s12 }
 0x395   :  { %7096 = vst [vmem:[#allocation25_spill] sm:$0xff] %v6850_v62  ;;  %v6868_v62 = vpop.f32.mrf.mxu0  ;;  %v3245_v27 = vadd.f32 %v5309_v50, %v3052_v63 }
 0x396   :  { %p5576_p4 = por %p5575_p3, %p5574_p2 }
 0x397   :  { %v6854_v22 = vpop.f32.mrf.mxu1  ;;  %v6876_v41 = vpop.f32.mrf.mxu0 }
 0x398   :  { %7097 = vst [vmem:[#allocation36_spill] sm:$0xff] %v6854_v22  ;;  %v2861_v22 = vadd.f32 %v6736_v33, %v6738_v15  ;;  %p5577_p5 = pnand %p5576_p4, %p5570_p1 }
 0x399   :  { %v6856_v49 = vpop.f32.mrf.mxu1  ;;  %v6895_v61 = vpop.f32.mrf.mxu0 }
 0x39a   :  { %7098 = vst [vmem:[#allocation39_spill] sm:$0xff] %v6856_v49  ;;  %v3051_v49 = vadd.f32 %v2972_v18, %v2858_v52  ;;  %v3054_v5 = vadd.f32 %v5256_v35, %v2861_v22  ;;  %v3057_v22 = vadd.f32 %v6808_v48, %v2864_v13  ;;  %v7111_v13 = vld [vmem:[#allocation47_spill] sm:$0xff] }
 0x39b   :  { %v6908_v25 = vpop.f32.mrf.mxu0 }
 0x39c   :  { %v6862_v12 = vpop.f32.mrf.mxu1  ;;  %v3244_v39 = vadd.f32 %v3165_v44, %v3051_v49  ;;  %v3247_v33 = vadd.f32 %v6792_v45, %v3054_v5  ;;  %v7101_v5 = vld [vmem:[#allocation28_spill] sm:$0xff] }
 0x39d   :  { %7100 = vst [vmem:[#allocation38_spill] sm:$0xff] %v6862_v12  ;;  %v3439_v12 = vadd.f32 %v5365_v10, %v3245_v27  ;;  %v3056_v10 = vadd.f32 %v6796_v51, %v2863_v58  ;;  %v3058_v51 = vadd.f32 %v6804_v7, %v2865_v37 }
 0x39e   :  { %v6866_v3 = vpop.f32.mrf.mxu1  ;;  %v3438_v52 = vadd.f32 %v3359_v54, %v3244_v39  ;;  %v3441_v18 = vadd.f32 %v5368_v9, %v3247_v33  ;;  %v3440_v54 = vadd.f32 %v3369_v34, %v3246_v21  ;;  %v2869_v39 = vadd.f32 %v6768_v40, %v6770_v16  ;;  %v7108_v16 = vld [vmem:[#allocation52_spill] sm:$0xff] }
 0x39f   :  { %v3632_v15 = vadd.f32 %v5421_v2, %v3439_v12  ;;  %v3055_v2 = vadd.f32 %v6800_v8, %v2862_v43  ;;  %v3249_v44 = vadd.f32 %v6798_v36, %v3056_v10  ;;  %v3251_v36 = vadd.f32 %v6806_v59, %v3058_v51  ;;  %v7106_v10 = vld [vmem:[#allocation16_spill] sm:$0xff]  ;;  %v7112_v51 = vld [vmem:[#allocation22_spill] sm:$0xff] }
 0x3a0   :  { %v3631_v50 = vadd.f32 %v3552_v19, %v3438_v52  ;;  %v3634_v35 = vadd.f32 %v5424_v38, %v3441_v18  ;;  %v3633_v29 = vadd.f32 %v3562_v20, %v3440_v54  ;;  %v2867_v38 = vadd.f32 %v6760_v0, %v6762_v1  ;;  %v7107_v18 = vld [vmem:[#allocation49_spill] sm:$0xff]  ;;  %v7109_v54 = vld [vmem:[#allocation14_spill] sm:$0xff] }
 0x3a1   :  { %v6874_v42 = vpop.f32.mrf.mxu1  ;;  %v3248_v9 = vadd.f32 %v6802_v17, %v3055_v2  ;;  %v3443_v8 = vadd.f32 %v5371_v46, %v3249_v44  ;;  %v2866_v19 = vadd.f32 %v6764_v53, %v6766_v47  ;;  %v3250_v20 = vadd.f32 %v6810_v26, %v3057_v22  ;;  %v7102_v53 = vld [vmem:[#allocation31_spill] sm:$0xff]  ;;  %v7103_v26 = vld [vmem:[#allocation53_spill] sm:$0xff] }
 0x3a2   :  { %v3060_v0 = vadd.f32 %v6812_v60, %v2867_v38  ;;  %v3445_v48 = vadd.f32 %v6844_v11, %v3251_v36  ;;  %v3602_v60 = vpop.f32.mrf.mxu0 }
 0x3a3   :  { %v6878_v57 = vpop.f32.mrf.mxu1  ;;  %v3442_v27 = vadd.f32 %v3379_v28, %v3248_v9  ;;  %v3636_v17 = vadd.f32 %v5427_v4, %v3443_v8  ;;  %v3059_v47 = vadd.f32 %v7102_v53, %v2866_v19  ;;  %v3444_v33 = vadd.f32 %v7103_v26, %v3250_v20  ;;  %v7118_v19 = vld [vmem:[#allocation50_spill] sm:$0xff] }
 0x3a4   :  { %v3253_v58 = vadd.f32 %v7101_v5, %v3060_v0 }
 0x3a5   :  { %v5477_v49 = vpop.f32.mrf.mxu1  ;;  %v3635_v1 = vadd.f32 %v6852_v31, %v3442_v27  ;;  %v7104_v31 = vld [vmem:[#allocation54_spill] sm:$0xff]  ;;  %v3252_v40 = vadd.f32 %v7107_v18, %v3059_v47  ;;  %v3637_v37 = vadd.f32 %v6868_v62, %v3444_v33  ;;  %v7123_v47 = vld [vmem:[#allocation24_spill] sm:$0xff]  ;;  %v7124_v33 = vld [vmem:[#allocation39_spill] sm:$0xff] }
 0x3a6   :  { %v3825_v56 = vadd.f32 %v5477_v49, %v3632_v15  ;;  %v3638_v52 = vadd.f32 %v7104_v31, %v3445_v48  ;;  %v7105_v49 = vld [vmem:[#allocation17_spill] sm:$0xff]  ;;  %v7127_v18 = vld [vmem:[#allocation32_spill] sm:$0xff] }
 0x3a7   :  { %v3745_v23 = vpop.f32.mrf.mxu1 }
 0x3a8   :  { %v3848_v45 = vadd.f32 %v6889_v24, %v3825_v56  ;;  %v3824_v30 = vadd.f32 %v3745_v23, %v3631_v50  ;;  %v2868_v50 = vadd.f32 %v7106_v10, %v7105_v49  ;;  %v3062_v56 = vadd.f32 %v7108_v16, %v2869_v39  ;;  %v7121_v39 = vld [vmem:[#allocation48_spill] sm:$0xff]  ;;  %v7126_v10 = vld [vmem:[#allocation19_spill] sm:$0xff] }
 0x3a9   :  { %v5480_v14 = vpop.f32.mrf.mxu1  ;;  %v3447_v23 = vadd.f32 %v7109_v54, %v3253_v58  ;;  %v7122_v58 = vld [vmem:[#allocation23_spill] sm:$0xff]  ;;  %v7125_v49 = vld [vmem:[#allocation20_spill] sm:$0xff]  ;;  %v7129_v54 = vld [vmem:[#allocation38_spill] sm:$0xff] }
 0x3aa   :  { %v3864_v55 = vmax.f32 %v3848_v45, 0.0  ;;  %v3847_v12 = vadd.f32 %v6889_v24, %v3824_v30  ;;  %v3827_v32 = vadd.f32 %v5480_v14, %v3634_v35  ;;  %v7110_v30 = vld [vmem:[#allocation21_spill] sm:$0xff]  ;;  %v7113_v14 = vld [vmem:[#allocation30_spill] sm:$0xff]  ;;  %v7128_v16 = vld [vmem:[#allocation35_spill] sm:$0xff] }
 0x3ab   :  { %v3755_v6 = vpop.f32.mrf.mxu1  ;;  %v2871_v9 = vadd.f32 %v7111_v13, %v7110_v30  ;;  %v3061_v8 = vadd.f32 %v7113_v14, %v2868_v50  ;;  %v3640_v62 = vadd.f32 %v6876_v41, %v3447_v23  ;;  %v2872_v50 = vadd.f32 %v7126_v10, %v7125_v49  ;;  %v7131_v13 = vld [vmem:[#allocation34_spill] sm:$0xff] }
 0x3ac   :  { %3880 = vst [vmem:[#allocation10 + $0x8] sm:$0xff] %v3864_v55  ;;  %v3863_v7 = vmax.f32 %v3847_v12, 0.0  ;;  %v3850_v46 = vadd.f32 %v6889_v24, %v3827_v32  ;;  %v3826_v34 = vadd.f32 %v3755_v6, %v3633_v29  ;;  %v3255_v29 = vadd.f32 %v7112_v51, %v3062_v56  ;;  %v7114_v55 = vld [vmem:[#allocation25_spill] sm:$0xff]  ;;  %v5439_v32 = vpop.f32.mrf.mxu0 }
 0x3ad   :  { %v5483_v59 = vpop.f32.mrf.mxu1  ;;  %v3446_v12 = vadd.f32 %v7114_v55, %v3252_v40  ;;  %v7115_v6 = vld [vmem:[#allocation29_spill] sm:$0xff]  ;;  %v3064_v20 = vadd.f32 %v7118_v19, %v2871_v9  ;;  %v3065_v9 = vadd.f32 %v7131_v13, %v2872_v50 }
 0x3ae   :  { %3879 = vst [vmem:[#allocation10] sm:$0xff] %v3863_v7  ;;  %v3866_v28 = vmax.f32 %v3850_v46, 0.0  ;;  %v3849_v63 = vadd.f32 %v6889_v24, %v3826_v34  ;;  %v3829_v4 = vadd.f32 %v5483_v59, %v3636_v17  ;;  %v7116_v17 = vld [vmem:[#allocation27_spill] sm:$0xff]  ;;  %v7117_v46 = vld [vmem:[#allocation33_spill] sm:$0xff]  ;;  %v7119_v59 = vld [vmem:[#allocation36_spill] sm:$0xff]  ;;  %v3612_v31 = vpop.f32.mrf.mxu0 }
 0x3af   :  { %v3765_v15 = vpop.f32.mrf.mxu1  ;;  %v2870_v7 = vadd.f32 %v7116_v17, %v7115_v6  ;;  %v3254_v34 = vadd.f32 %v7117_v46, %v3061_v8  ;;  %v3639_v0 = vadd.f32 %v6895_v61, %v3446_v12  ;;  %v3449_v48 = vadd.f32 %v7119_v59, %v3255_v29 }
 0x3b0   :  { %3882 = vst [vmem:[#allocation10 + $0x18] sm:$0xff] %v3866_v28  ;;  %v3865_v11 = vmax.f32 %v3849_v63, 0.0  ;;  %v3852_v43 = vadd.f32 %v6889_v24, %v3829_v4  ;;  %v3828_v21 = vadd.f32 %v3765_v15, %v3635_v1  ;;  %v7120_v4 = vld [vmem:[#allocation18_spill] sm:$0xff]  ;;  %v3257_v53 = vadd.f32 %v7122_v58, %v3064_v20  ;;  %v5442_v29 = vpop.f32.mrf.mxu0 }
 0x3b1   :  { %v5486_v2 = vpop.f32.mrf.mxu1  ;;  %v2873_v5 = vadd.f32 %v7121_v39, %v7120_v4  ;;  %v3063_v26 = vadd.f32 %v7123_v47, %v2870_v7  ;;  %v3448_v15 = vadd.f32 %v7124_v33, %v3254_v34  ;;  %v3642_v61 = vadd.f32 %v6908_v25, %v3449_v48 }
 0x3b2   :  { %3881 = vst [vmem:[#allocation10 + $0x10] sm:$0xff] %v3865_v11  ;;  %v3868_v44 = vmax.f32 %v3852_v43, 0.0  ;;  %v3851_v35 = vadd.f32 %v6889_v24, %v3828_v21  ;;  %v3831_v45 = vadd.f32 %v5486_v2, %v3638_v52  ;;  %v3451_v23 = vadd.f32 %v7129_v54, %v3257_v53  ;;  %v3622_v46 = vpop.f32.mrf.mxu0 }
 0x3b3   :  { %v3775_v38 = vpop.f32.mrf.mxu1  ;;  %v3256_v40 = vadd.f32 %v7127_v18, %v3063_v26  ;;  %v3066_v56 = vadd.f32 %v7128_v16, %v2873_v5 }
 0x3b4   :  { %3884 = vst [vmem:[#allocation10 + $0x28] sm:$0xff] %v3868_v44  ;;  %v3867_v36 = vmax.f32 %v3851_v35, 0.0  ;;  %v3854_v22 = vadd.f32 %v6889_v24, %v3831_v45  ;;  %v3830_v27 = vadd.f32 %v3775_v38, %v3637_v37  ;;  %v3641_v37 = vadd.f32 %v3602_v60, %v3448_v15  ;;  %v7130_v45 = vld [vmem:[#allocation51_spill] sm:$0xff]  ;;  %v7132_v38 = vld [vmem:[#allocation37_spill] sm:$0xff] }
 0x3b5   :  { %v5489_v1 = vpop.f32.mrf.mxu1  ;;  %v3259_v30 = vadd.f32 %v7130_v45, %v3066_v56  ;;  %v3450_v51 = vadd.f32 %v6866_v3, %v3256_v40  ;;  %v3644_v8 = vadd.f32 %v5439_v32, %v3451_v23 }
 0x3b6   :  { %3883 = vst [vmem:[#allocation10 + $0x20] sm:$0xff] %v3867_v36  ;;  %v3870_v28 = vmax.f32 %v3854_v22, 0.0  ;;  %v3853_v41 = vadd.f32 %v6889_v24, %v3830_v27  ;;  %v3833_v63 = vadd.f32 %v5489_v1, %v3640_v62  ;;  %v3258_v62 = vadd.f32 %v7132_v38, %v3065_v9 }
 0x3b7   :  { %v3785_v52 = vpop.f32.mrf.mxu1  ;;  %v3643_v36 = vadd.f32 %v3612_v31, %v3450_v51  ;;  %v3453_v27 = vadd.f32 %v6874_v42, %v3259_v30 }
 0x3b8   :  { %3886 = vst [vmem:[#allocation10 + $0x38] sm:$0xff] %v3870_v28  ;;  %v3869_v11 = vmax.f32 %v3853_v41, 0.0  ;;  %v3856_v43 = vadd.f32 %v6889_v24, %v3833_v63  ;;  %v3832_v21 = vadd.f32 %v3785_v52, %v3639_v0  ;;  %v3452_v3 = vadd.f32 %v6878_v57, %v3258_v62 }
 0x3b9   :  { %v5492_v2 = vpop.f32.mrf.mxu1  ;;  %v3646_v34 = vadd.f32 %v5442_v29, %v3453_v27 }
 0x3ba   :  { %3885 = vst [vmem:[#allocation10 + $0x30] sm:$0xff] %v3869_v11  ;;  %v3872_v44 = vmax.f32 %v3856_v43, 0.0  ;;  %v3855_v25 = vadd.f32 %v6889_v24, %v3832_v21  ;;  %v3835_v35 = vadd.f32 %v5492_v2, %v3642_v61  ;;  %v3645_v59 = vadd.f32 %v3622_v46, %v3452_v3 }
 0x3bb   :  { %v3795_v14 = vpop.f32.mrf.mxu1 }
 0x3bc   :  { %3888 = vst [vmem:[#allocation10 + $0x48] sm:$0xff] %v3872_v44  ;;  %v3871_v55 = vmax.f32 %v3855_v25, 0.0  ;;  %v3858_v60 = vadd.f32 %v6889_v24, %v3835_v35  ;;  %v3834_v12 = vadd.f32 %v3795_v14, %v3641_v37 }
 0x3bd   :  { %v5495_v22 = vpop.f32.mrf.mxu1 }
 0x3be   :  { %3887 = vst [vmem:[#allocation10 + $0x40] sm:$0xff] %v3871_v55  ;;  %v3874_v6 = vmax.f32 %v3858_v60, 0.0  ;;  %v3857_v17 = vadd.f32 %v6889_v24, %v3834_v12  ;;  %v3837_v7 = vadd.f32 %v5495_v22, %v3644_v8 }
 0x3bf   :  { %v3805_v32 = vpop.f32.mrf.mxu1 }
 0x3c0   :  { %3890 = vst [vmem:[#allocation10 + $0x58] sm:$0xff] %v3874_v6  ;;  %v3873_v19 = vmax.f32 %v3857_v17, 0.0  ;;  %v3860_v20 = vadd.f32 %v6889_v24, %v3837_v7  ;;  %v3836_v0 = vadd.f32 %v3805_v32, %v3643_v36 }
 0x3c1   :  { %v5498_v1 = vpop.f32.mrf.mxu1 }
 0x3c2   :  { %3889 = vst [vmem:[#allocation10 + $0x50] sm:$0xff] %v3873_v19  ;;  %v3876_v48 = vmax.f32 %v3860_v20, 0.0  ;;  %v3859_v42 = vadd.f32 %v6889_v24, %v3836_v0  ;;  %v3839_v28 = vadd.f32 %v5498_v1, %v3646_v34 }
 0x3c3   :  { %v3815_v41 = vpop.f32.mrf.mxu1 }
 0x3c4   :  { %3892 = vst [vmem:[#allocation10 + $0x68] sm:$0xff] %v3876_v48  ;;  %v3875_v63 = vmax.f32 %v3859_v42, 0.0  ;;  %v3862_v57 = vadd.f32 %v6889_v24, %v3839_v28  ;;  %v3838_v4 = vadd.f32 %v3815_v41, %v3645_v59 }
 0x3c6   :  { %3891 = vst [vmem:[#allocation10 + $0x60] sm:$0xff] %v3875_v63  ;;  %v3878_v39 = vmax.f32 %v3862_v57, 0.0  ;;  %v3861_v5 = vadd.f32 %v6889_v24, %v3838_v4 }
 0x3c8   :  { %3894 = vst [vmem:[#allocation10 + $0x78] sm:$0xff] %v3878_v39  ;;  %v3877_v58 = vmax.f32 %v3861_v5, 0.0 }
 0x3ca   :  { %3893 = vst [vmem:[#allocation10 + $0x70] sm:$0xff] %v3877_v58 }
 0x3cb   :  { %5580 = shalt.err (!%p5577_p5)
}
 0x3cc   :  { %3906 = dma.vmem_to_hbm [thread:$0]  %s3901_s11, 2048, %s6982_s5, [#allocation6], %s5597_s23, %s5597_s23, %s5598_s24  }
 0x3cd   :  { %5593 = dma.done.wait [#allocation6], 2048  }
 0x3ce   :  { %5594 = vsyncadd [#allocation6], 4294965248 }
 0x3cf   :  { %3910 = vsyncpa [#allocation5], 1 }
 0x3d0   :  { %3911 = vsyncpa [#allocation8], 1 }
 0x3d1   :  { %3912 = vsyncpa [#allocation6], 1 }

</bundles_post_ra>
